<compile_context>
chip_gen: v7x
topology: tpu7x:2x2x1
jax: 0.10.0
libtpu: 0.0.40
codegen_flags: <defaults>
</compile_context>

<pallas_src>
import functools

import jax
import jax.numpy as jnp
from jax.experimental import pallas as pl
from jax.experimental.pallas import tpu as pltpu


# ----------------------------- Pallas kernel -------------------------------

def _matmul_bias_lrelu_kernel(p_ref, w_ref, b_ref, o_ref, *, slope):
    """o = LeakyReLU(P @ W + b).  P/W may be bf16; accumulation is f32."""
    y = jnp.dot(p_ref[...], w_ref[...], preferred_element_type=jnp.float32)
    y = y + b_ref[...]                  # folded conv-bias + BN(eval) shift
    o_ref[...] = jnp.where(y > 0, y, slope * y)


def _choose_tile(n, cap):
    """Largest exact divisor of n that is <= cap (guards the tiling)."""
    if n <= cap:
        return n
    for t in range(cap, 0, -1):
        if n % t == 0:
            return t
    return n


def matmul_bias_lrelu(P, Wm, bias, *, slope=0.1):
    """Fused (M,K) @ (K,Cout) + bias + LeakyReLU on the MXU/VPU."""
    M, K = P.shape
    Cout = Wm.shape[1]
    tile_m = _choose_tile(M, 1024)       # single block at these problem sizes
    tile_co = _choose_tile(Cout, 512)    # lane-dense output (up to 512 wide)
    grid = (M // tile_m, Cout // tile_co)

    return pl.pallas_call(
        functools.partial(_matmul_bias_lrelu_kernel, slope=slope),
        out_shape=jax.ShapeDtypeStruct((M, Cout), jnp.float32),
        grid=grid,
        in_specs=[
            pl.BlockSpec((tile_m, K), lambda i, j: (i, 0)),      # patches
            pl.BlockSpec((K, tile_co), lambda i, j: (0, j)),     # folded weights
            pl.BlockSpec((1, tile_co), lambda i, j: (0, j)),     # folded bias
        ],
        out_specs=pl.BlockSpec((tile_m, tile_co), lambda i, j: (i, j)),
        compiler_params=pltpu.CompilerParams(
            dimension_semantics=("parallel", "parallel"),
            vmem_limit_bytes=32 * 1024 * 1024),
    )(P, Wm, bias)


# ------------------------------- glue (JAX) --------------------------------

def _im2col_nhwc(x, k, stride, pad):
    """x: (N, H, W, C) -> (N*Ho*Wo, k*k*C); column order = (kh, kw, Cin)."""
    x = jnp.pad(x, ((0, 0), (pad, pad), (pad, pad), (0, 0)))
    N, H, W, C = x.shape
    Ho = (H - k) // stride + 1
    Wo = (W - k) // stride + 1
    cols = []
    for i in range(k):
        for j in range(k):
            cols.append(x[:, i:i + stride * Ho:stride,
                           j:j + stride * Wo:stride, :])
    p = jnp.concatenate(cols, axis=-1)                 # (N, Ho, Wo, k*k*C)
    return p.reshape(N * Ho * Wo, k * k * C), Ho, Wo


def _fold_conv_bn(p, eps=1e-5):
    """Fold conv bias + eval-mode BatchNorm into (K, Cout) weights and bias.

    w' = w * gamma/sqrt(rv+eps);  b' = (b - rm) * gamma/sqrt(rv+eps) + beta.
    Weight rows are ordered (kh, kw, Cin) to match `_im2col_nhwc` columns.
    """
    w = p["w"]                                         # (Cout, Cin, kh, kw)
    Cout, Cin, kh, kw = w.shape
    scale = p["gamma"] * jax.lax.rsqrt(p["rv"] + eps)  # (Cout,)
    Wm = w.transpose(2, 3, 1, 0).reshape(kh * kw * Cin, Cout) * scale[None, :]
    bias = (p["b"] - p["rm"]) * scale + p["beta"]
    return Wm.astype(jnp.float32), bias.reshape(1, Cout).astype(jnp.float32)


def conv_bn_lrelu_block(x_nhwc, p, *, k, stride, pad, compute_dtype):
    """One encoder block, NHWC in -> NHWC out.  Dropout = identity (eval)."""
    N = x_nhwc.shape[0]
    Wm, bias = _fold_conv_bn(p)
    P, Ho, Wo = _im2col_nhwc(x_nhwc, k, stride, pad)
    Cout = Wm.shape[1]
    out = matmul_bias_lrelu(P.astype(compute_dtype),
                            Wm.astype(compute_dtype), bias)
    return out.reshape(N, Ho, Wo, Cout)                # stays NHWC, no transpose


def encoder_forward(params, x_nchw, kernel_size, compute_dtype=jnp.bfloat16):
    """Encoder.forward: (out_conv1, ..., out_conv4) in NCHW like PyTorch."""
    pad = (kernel_size - 1) // 2
    h = jnp.transpose(x_nchw, (0, 2, 3, 1))            # NCHW -> NHWC once
    outs = []
    for p in params:
        h = conv_bn_lrelu_block(h, p, k=kernel_size, stride=2, pad=pad,
                                compute_dtype=compute_dtype)
        outs.append(jnp.transpose(h, (0, 3, 1, 2)))    # NCHW only for returns
    return tuple(outs)


# ------------------------------ Encoder setup ------------------------------

def init_encoder_params(key, input_channels, kernel_size):
    """Mirrors Encoder.__init__.

    torch's `weight.data.normal_(0, 0.002/n)` takes (mean, std), so the conv
    weight std is 0.002/n with n = kh*kw*Cout; bias = 0; BN = identity stats.
    """
    chans = [input_channels, 64, 128, 256, 512]
    params = []
    for li in range(4):
        cin, cout = chans[li], chans[li + 1]
        key, wk = jax.random.split(key)
        n = kernel_size * kernel_size * cout
        w = jax.random.normal(wk, (cout, cin, kernel_size, kernel_size),
                              jnp.float32) * (0.002 / n)
        params.append(dict(
            w=w,
            b=jnp.zeros((cout,), jnp.float32),
            gamma=jnp.ones((cout,), jnp.float32),
            beta=jnp.zeros((cout,), jnp.float32),
            rm=jnp.zeros((cout,), jnp.float32),
            rv=jnp.ones((cout,), jnp.float32),
        ))
    return params


# ----------------------------- pure-JAX reference ---------------------------

def _ref_block(x, p, stride, pad, eps=1e-5):
    y = jax.lax.conv_general_dilated(
        x, p["w"], window_strides=(stride, stride),
        padding=[(pad, pad), (pad, pad)],
        dimension_numbers=("NCHW", "OIHW", "NCHW"))
    y = y + p["b"][None, :, None, None]
    y = (y - p["rm"][None, :, None, None]) * jax.lax.rsqrt(
        p["rv"][None, :, None, None] + eps) * p["gamma"][None, :, None, None] \
        + p["beta"][None, :, None, None]
    return jnp.where(y > 0, y, 0.1 * y)


def encoder_reference(params, x, kernel_size):
    pad = (kernel_size - 1) // 2
    outs = []
    h = x
    for p in params:
        h = _ref_block(h, p, 2, pad)
        outs.append(h)
    return tuple(outs)


# ---------------------------------- main ------------------------------------

if __name__ == "__main__":
    kernel_size = 3
    input_channels = 4
    key = jax.random.PRNGKey(0)
    key, xk = jax.random.split(key)
    x = jax.random.normal(xk, (2, input_channels, 16, 16), jnp.float32)

    params = init_encoder_params(jax.random.PRNGKey(0), input_channels,
                                 kernel_size)

    fwd_bf16 = jax.jit(functools.partial(encoder_forward,
                                         kernel_size=kernel_size,
                                         compute_dtype=jnp.bfloat16))
    fwd_f32 = jax.jit(functools.partial(encoder_forward,
                                        kernel_size=kernel_size,
                                        compute_dtype=jnp.float32))

    refs = encoder_reference(params, x, kernel_size)
    expected_shapes = [(2, 64, 8, 8), (2, 128, 4, 4), (2, 256, 2, 2),
                       (2, 512, 1, 1)]

    # f32 path checks kernel logic tightly; bf16 path (the fast/default path)
    # is checked against the bf16-roundoff envelope of a 4-layer stack.
    for fwd, tol, name in ((fwd_f32, 2e-3, "f32"), (fwd_bf16, 2e-2, "bf16")):
        outs = jax.block_until_ready(fwd(params, x))
        for o, r, es in zip(outs, refs, expected_shapes):
            assert o.shape == es, (name, o.shape, es)
            scale = float(jnp.max(jnp.abs(r))) + 1e-30
            err = float(jnp.max(jnp.abs(o - r)))
            assert err <= tol * scale, (name, err, tol * scale)

    print("KERNEL_OK")
</pallas_src>

<mosaic_0001>
module attributes {stable_mosaic.version = 11 : i64} {
  func.func @_matmul_bias_lrelu_kernel(%arg0: i32, %arg1: i32, %arg2: memref<128x36xf32, #tpu.memory_space<vmem>>, %arg3: memref<36x64xf32, #tpu.memory_space<vmem>>, %arg4: memref<1x64xf32, #tpu.memory_space<vmem>>, %arg5: memref<128x64xf32, #tpu.memory_space<vmem>>) attributes {dimension_semantics = [#tpu.dimension_semantics<parallel>, #tpu.dimension_semantics<parallel>], iteration_bounds = array<i64: 1, 1>, scalar_prefetch = 0 : i64, scratch_operands = 0 : i64, tpu.core_type = #tpu.core_type<tc>, window_params = [{transform_indices = @transform_0, window_bounds = array<i64: 128, 36>}, {transform_indices = @transform_1, window_bounds = array<i64: 36, 64>}, {transform_indices = @transform_2, window_bounds = array<i64: 1, 64>}, {transform_indices = @transform_3, window_bounds = array<i64: 128, 64>}]} {
    %c0 = arith.constant 0 : index
    %c0_0 = arith.constant 0 : index
    %0 = vector.load %arg2[%c0, %c0_0] : memref<128x36xf32, #tpu.memory_space<vmem>>, vector<128x36xf32>
    %c0_1 = arith.constant 0 : index
    %c0_2 = arith.constant 0 : index
    %1 = vector.load %arg3[%c0_1, %c0_2] : memref<36x64xf32, #tpu.memory_space<vmem>>, vector<36x64xf32>
    %cst = arith.constant dense<0.000000e+00> : vector<128x64xf32>
    %2 = tpu.matmul %0, %1, %cst {dimension_numbers = #tpu.dot_dimension_numbers<[1], [0], [0], [1], [0, 0, 1, 1], [], []>} : vector<128x36xf32>, vector<36x64xf32>, vector<128x64xf32> -> vector<128x64xf32>
    %c0_3 = arith.constant 0 : index
    %c0_4 = arith.constant 0 : index
    %3 = vector.load %arg4[%c0_3, %c0_4] : memref<1x64xf32, #tpu.memory_space<vmem>>, vector<1x64xf32>
    %4 = vector.broadcast %3 : vector<1x64xf32> to vector<128x64xf32>
    %5 = arith.addf %2, %4 : vector<128x64xf32>
    %cst_5 = arith.constant 0.000000e+00 : f32
    %6 = vector.broadcast %cst_5 : f32 to vector<128x64xf32>
    %7 = arith.cmpf ogt, %5, %6 : vector<128x64xf32>
    %cst_6 = arith.constant 1.000000e-01 : f32
    %8 = vector.broadcast %cst_6 : f32 to vector<128x64xf32>
    %9 = arith.mulf %8, %5 : vector<128x64xf32>
    %10 = arith.select %7, %5, %9 : vector<128x64xi1>, vector<128x64xf32>
    %c0_7 = arith.constant 0 : index
    %c0_8 = arith.constant 0 : index
    %11 = vector.load %arg5[%c0_7, %c0_8] : memref<128x64xf32, #tpu.memory_space<vmem>>, vector<128x64xf32>
    tpu.vector_store %arg5[%c0_7, %c0_8], %10 {strides = array<i32>} : memref<128x64xf32, #tpu.memory_space<vmem>>, vector<128x64xf32>,
    return
  }
  func.func @transform_0(%arg0: i32, %arg1: i32) -> (i32, i32) {
    %c0_i32 = arith.constant 0 : i32
    %c0_i32_0 = arith.constant 0 : i32
    return %arg0, %c0_i32 : i32, i32
  }
  func.func @transform_1(%arg0: i32, %arg1: i32) -> (i32, i32) {
    %c0_i32 = arith.constant 0 : i32
    %c0_i32_0 = arith.constant 0 : i32
    return %c0_i32, %arg1 : i32, i32
  }
  func.func @transform_2(%arg0: i32, %arg1: i32) -> (i32, i32) {
    %c0_i32 = arith.constant 0 : i32
    %c0_i32_0 = arith.constant 0 : i32
    return %c0_i32, %arg1 : i32, i32
  }
  func.func @transform_3(%arg0: i32, %arg1: i32) -> (i32, i32) {
    %c0_i32 = arith.constant 0 : i32
    return %arg0, %arg1 : i32, i32
  }
}

module attributes {stable_mosaic.version = 11 : i64} {
  func.func @_matmul_bias_lrelu_kernel(%arg0: i32, %arg1: i32, %arg2: memref<32x576xf32, #tpu.memory_space<vmem>>, %arg3: memref<576x128xf32, #tpu.memory_space<vmem>>, %arg4: memref<1x128xf32, #tpu.memory_space<vmem>>, %arg5: memref<32x128xf32, #tpu.memory_space<vmem>>) attributes {dimension_semantics = [#tpu.dimension_semantics<parallel>, #tpu.dimension_semantics<parallel>], iteration_bounds = array<i64: 1, 1>, scalar_prefetch = 0 : i64, scratch_operands = 0 : i64, tpu.core_type = #tpu.core_type<tc>, window_params = [{transform_indices = @transform_0, window_bounds = array<i64: 32, 576>}, {transform_indices = @transform_1, window_bounds = array<i64: 576, 128>}, {transform_indices = @transform_2, window_bounds = array<i64: 1, 128>}, {transform_indices = @transform_3, window_bounds = array<i64: 32, 128>}]} {
    %c0 = arith.constant 0 : index
    %c0_0 = arith.constant 0 : index
    %0 = vector.load %arg2[%c0, %c0_0] : memref<32x576xf32, #tpu.memory_space<vmem>>, vector<32x576xf32>
    %c0_1 = arith.constant 0 : index
    %c0_2 = arith.constant 0 : index
    %1 = vector.load %arg3[%c0_1, %c0_2] : memref<576x128xf32, #tpu.memory_space<vmem>>, vector<576x128xf32>
    %cst = arith.constant dense<0.000000e+00> : vector<32x128xf32>
    %2 = tpu.matmul %0, %1, %cst {dimension_numbers = #tpu.dot_dimension_numbers<[1], [0], [0], [1], [0, 0, 1, 1], [], []>} : vector<32x576xf32>, vector<576x128xf32>, vector<32x128xf32> -> vector<32x128xf32>
    %c0_3 = arith.constant 0 : index
    %c0_4 = arith.constant 0 : index
    %3 = vector.load %arg4[%c0_3, %c0_4] : memref<1x128xf32, #tpu.memory_space<vmem>>, vector<1x128xf32>
    %4 = vector.broadcast %3 : vector<1x128xf32> to vector<32x128xf32>
    %5 = arith.addf %2, %4 : vector<32x128xf32>
    %cst_5 = arith.constant 0.000000e+00 : f32
    %6 = vector.broadcast %cst_5 : f32 to vector<32x128xf32>
    %7 = arith.cmpf ogt, %5, %6 : vector<32x128xf32>
    %cst_6 = arith.constant 1.000000e-01 : f32
    %8 = vector.broadcast %cst_6 : f32 to vector<32x128xf32>
    %9 = arith.mulf %8, %5 : vector<32x128xf32>
    %10 = arith.select %7, %5, %9 : vector<32x128xi1>, vector<32x128xf32>
    %c0_7 = arith.constant 0 : index
    %c0_8 = arith.constant 0 : index
    %11 = vector.load %arg5[%c0_7, %c0_8] : memref<32x128xf32, #tpu.memory_space<vmem>>, vector<32x128xf32>
    tpu.vector_store %arg5[%c0_7, %c0_8], %10 {strides = array<i32>} : memref<32x128xf32, #tpu.memory_space<vmem>>, vector<32x128xf32>,
    return
  }
  func.func @transform_0(%arg0: i32, %arg1: i32) -> (i32, i32) {
    %c0_i32 = arith.constant 0 : i32
    %c0_i32_0 = arith.constant 0 : i32
    return %arg0, %c0_i32 : i32, i32
  }
  func.func @transform_1(%arg0: i32, %arg1: i32) -> (i32, i32) {
    %c0_i32 = arith.constant 0 : i32
    %c0_i32_0 = arith.constant 0 : i32
    return %c0_i32, %arg1 : i32, i32
  }
  func.func @transform_2(%arg0: i32, %arg1: i32) -> (i32, i32) {
    %c0_i32 = arith.constant 0 : i32
    %c0_i32_0 = arith.constant 0 : i32
    return %c0_i32, %arg1 : i32, i32
  }
  func.func @transform_3(%arg0: i32, %arg1: i32) -> (i32, i32) {
    %c0_i32 = arith.constant 0 : i32
    return %arg0, %arg1 : i32, i32
  }
}

module attributes {stable_mosaic.version = 11 : i64} {
  func.func @_matmul_bias_lrelu_kernel(%arg0: i32, %arg1: i32, %arg2: memref<8x1152xf32, #tpu.memory_space<vmem>>, %arg3: memref<1152x256xf32, #tpu.memory_space<vmem>>, %arg4: memref<1x256xf32, #tpu.memory_space<vmem>>, %arg5: memref<8x256xf32, #tpu.memory_space<vmem>>) attributes {dimension_semantics = [#tpu.dimension_semantics<parallel>, #tpu.dimension_semantics<parallel>], iteration_bounds = array<i64: 1, 1>, scalar_prefetch = 0 : i64, scratch_operands = 0 : i64, tpu.core_type = #tpu.core_type<tc>, window_params = [{transform_indices = @transform_0, window_bounds = array<i64: 8, 1152>}, {transform_indices = @transform_1, window_bounds = array<i64: 1152, 256>}, {transform_indices = @transform_2, window_bounds = array<i64: 1, 256>}, {transform_indices = @transform_3, window_bounds = array<i64: 8, 256>}]} {
    %c0 = arith.constant 0 : index
    %c0_0 = arith.constant 0 : index
    %0 = vector.load %arg2[%c0, %c0_0] : memref<8x1152xf32, #tpu.memory_space<vmem>>, vector<8x1152xf32>
    %c0_1 = arith.constant 0 : index
    %c0_2 = arith.constant 0 : index
    %1 = vector.load %arg3[%c0_1, %c0_2] : memref<1152x256xf32, #tpu.memory_space<vmem>>, vector<1152x256xf32>
    %cst = arith.constant dense<0.000000e+00> : vector<8x256xf32>
    %2 = tpu.matmul %0, %1, %cst {dimension_numbers = #tpu.dot_dimension_numbers<[1], [0], [0], [1], [0, 0, 1, 1], [], []>} : vector<8x1152xf32>, vector<1152x256xf32>, vector<8x256xf32> -> vector<8x256xf32>
    %c0_3 = arith.constant 0 : index
    %c0_4 = arith.constant 0 : index
    %3 = vector.load %arg4[%c0_3, %c0_4] : memref<1x256xf32, #tpu.memory_space<vmem>>, vector<1x256xf32>
    %4 = vector.broadcast %3 : vector<1x256xf32> to vector<8x256xf32>
    %5 = arith.addf %2, %4 : vector<8x256xf32>
    %cst_5 = arith.constant 0.000000e+00 : f32
    %6 = vector.broadcast %cst_5 : f32 to vector<8x256xf32>
    %7 = arith.cmpf ogt, %5, %6 : vector<8x256xf32>
    %cst_6 = arith.constant 1.000000e-01 : f32
    %8 = vector.broadcast %cst_6 : f32 to vector<8x256xf32>
    %9 = arith.mulf %8, %5 : vector<8x256xf32>
    %10 = arith.select %7, %5, %9 : vector<8x256xi1>, vector<8x256xf32>
    %c0_7 = arith.constant 0 : index
    %c0_8 = arith.constant 0 : index
    %11 = vector.load %arg5[%c0_7, %c0_8] : memref<8x256xf32, #tpu.memory_space<vmem>>, vector<8x256xf32>
    tpu.vector_store %arg5[%c0_7, %c0_8], %10 {strides = array<i32>} : memref<8x256xf32, #tpu.memory_space<vmem>>, vector<8x256xf32>,
    return
  }
  func.func @transform_0(%arg0: i32, %arg1: i32) -> (i32, i32) {
    %c0_i32 = arith.constant 0 : i32
    %c0_i32_0 = arith.constant 0 : i32
    return %arg0, %c0_i32 : i32, i32
  }
  func.func @transform_1(%arg0: i32, %arg1: i32) -> (i32, i32) {
    %c0_i32 = arith.constant 0 : i32
    %c0_i32_0 = arith.constant 0 : i32
    return %c0_i32, %arg1 : i32, i32
  }
  func.func @transform_2(%arg0: i32, %arg1: i32) -> (i32, i32) {
    %c0_i32 = arith.constant 0 : i32
    %c0_i32_0 = arith.constant 0 : i32
    return %c0_i32, %arg1 : i32, i32
  }
  func.func @transform_3(%arg0: i32, %arg1: i32) -> (i32, i32) {
    %c0_i32 = arith.constant 0 : i32
    return %arg0, %arg1 : i32, i32
  }
}

module attributes {stable_mosaic.version = 11 : i64} {
  func.func @_matmul_bias_lrelu_kernel(%arg0: i32, %arg1: i32, %arg2: memref<2x2304xf32, #tpu.memory_space<vmem>>, %arg3: memref<2304x512xf32, #tpu.memory_space<vmem>>, %arg4: memref<1x512xf32, #tpu.memory_space<vmem>>, %arg5: memref<2x512xf32, #tpu.memory_space<vmem>>) attributes {dimension_semantics = [#tpu.dimension_semantics<parallel>, #tpu.dimension_semantics<parallel>], iteration_bounds = array<i64: 1, 1>, scalar_prefetch = 0 : i64, scratch_operands = 0 : i64, tpu.core_type = #tpu.core_type<tc>, window_params = [{transform_indices = @transform_0, window_bounds = array<i64: 2, 2304>}, {transform_indices = @transform_1, window_bounds = array<i64: 2304, 512>}, {transform_indices = @transform_2, window_bounds = array<i64: 1, 512>}, {transform_indices = @transform_3, window_bounds = array<i64: 2, 512>}]} {
    %c0 = arith.constant 0 : index
    %c0_0 = arith.constant 0 : index
    %0 = vector.load %arg2[%c0, %c0_0] : memref<2x2304xf32, #tpu.memory_space<vmem>>, vector<2x2304xf32>
    %c0_1 = arith.constant 0 : index
    %c0_2 = arith.constant 0 : index
    %1 = vector.load %arg3[%c0_1, %c0_2] : memref<2304x512xf32, #tpu.memory_space<vmem>>, vector<2304x512xf32>
    %cst = arith.constant dense<0.000000e+00> : vector<2x512xf32>
    %2 = tpu.matmul %0, %1, %cst {dimension_numbers = #tpu.dot_dimension_numbers<[1], [0], [0], [1], [0, 0, 1, 1], [], []>} : vector<2x2304xf32>, vector<2304x512xf32>, vector<2x512xf32> -> vector<2x512xf32>
    %c0_3 = arith.constant 0 : index
    %c0_4 = arith.constant 0 : index
    %3 = vector.load %arg4[%c0_3, %c0_4] : memref<1x512xf32, #tpu.memory_space<vmem>>, vector<1x512xf32>
    %4 = vector.broadcast %3 : vector<1x512xf32> to vector<2x512xf32>
    %5 = arith.addf %2, %4 : vector<2x512xf32>
    %cst_5 = arith.constant 0.000000e+00 : f32
    %6 = vector.broadcast %cst_5 : f32 to vector<2x512xf32>
    %7 = arith.cmpf ogt, %5, %6 : vector<2x512xf32>
    %cst_6 = arith.constant 1.000000e-01 : f32
    %8 = vector.broadcast %cst_6 : f32 to vector<2x512xf32>
    %9 = arith.mulf %8, %5 : vector<2x512xf32>
    %10 = arith.select %7, %5, %9 : vector<2x512xi1>, vector<2x512xf32>
    %c0_7 = arith.constant 0 : index
    %c0_8 = arith.constant 0 : index
    %11 = vector.load %arg5[%c0_7, %c0_8] : memref<2x512xf32, #tpu.memory_space<vmem>>, vector<2x512xf32>
    tpu.vector_store %arg5[%c0_7, %c0_8], %10 {strides = array<i32>} : memref<2x512xf32, #tpu.memory_space<vmem>>, vector<2x512xf32>,
    return
  }
  func.func @transform_0(%arg0: i32, %arg1: i32) -> (i32, i32) {
    %c0_i32 = arith.constant 0 : i32
    %c0_i32_0 = arith.constant 0 : i32
    return %arg0, %c0_i32 : i32, i32
  }
  func.func @transform_1(%arg0: i32, %arg1: i32) -> (i32, i32) {
    %c0_i32 = arith.constant 0 : i32
    %c0_i32_0 = arith.constant 0 : i32
    return %c0_i32, %arg1 : i32, i32
  }
  func.func @transform_2(%arg0: i32, %arg1: i32) -> (i32, i32) {
    %c0_i32 = arith.constant 0 : i32
    %c0_i32_0 = arith.constant 0 : i32
    return %c0_i32, %arg1 : i32, i32
  }
  func.func @transform_3(%arg0: i32, %arg1: i32) -> (i32, i32) {
    %c0_i32 = arith.constant 0 : i32
    return %arg0, %arg1 : i32, i32
  }
}

</mosaic_0001>

<bundles_post_ra>
// kernel: encoder_forward.4
= control target key start
LH: loop header
LB: loop body
LE: loop exit
PB: predicated region body
PF: predicated region fallthrough
CT: control target
= control target key end

     0   :  { %vm42_vm0 = vcmask 293888   ;;  %vm91_vm1 = vcmask 1043456   ;;  %vm288_vm2 = vcmask 523264   ;;  %s580_s1 = inlined_call_operand.vmem [shape: f32[36,64], index: 1, kind: input, shape index: {}]   ;;  %s581_s0 = inlined_call_operand.vmem [shape: f32[128,36], index: 0, kind: input, shape index: {}]   ;;  %s582_s2 = inlined_call_operand.vmem [shape: f32[1,64], index: 2, kind: input, shape index: {}]   ;;  %s583_s3 = inlined_call_operand.vmem [shape: f32[128,64], index: 3, kind: output, shape index: {}]  }
   0x1   :  { %v30_v0 = vld [vmem:[%s580_s1] sm:$0xff]  ;;  %v31_v1 = vld [vmem:[%s580_s1 + $0x8] sm:$0xff]  ;;  %v32_v2 = vld [vmem:[%s580_s1 + $0x10] sm:$0xff] }
   0x2   :  { %v382_v3 = vpack.c.bf16 %v31_v1, %v30_v0  ;;  %v33_v4 = vld [vmem:[%s580_s1 + $0x18] sm:$0xff]  ;;  %v14_v5 = vld [vmem:[%s581_s0] sm:$0xff]  ;;  %v15_v9 = vld [vmem:[%s581_s0 + $0x8] sm:$0xff] }
   0x3   :  { %v386_v6 = vpack.c.bf16 %v33_v4, %v32_v2  ;;  %358 = vmatprep.mubr.msk.f32.mxu0 %vm42_vm0, %v14_v5  ;;  %v22_v7 = vld [vmem:[%s581_s0 + $0x40] sm:$0xff]  ;;  %v23_v10 = vld [vmem:[%s581_s0 + $0x48] sm:$0xff]  ;;  %v16_v11 = vld [vmem:[%s581_s0 + $0x10] sm:$0xff] }
   0x4   :  { %383 = vmatprep.subr.bf16.mxu0 %v382_v3  ;;  %390 = vmatprep.subr.bf16.mxu1 %v382_v3  ;;  %v34_v8 = vld [vmem:[%s580_s1 + $0x20] sm:$0xf]  ;;  %v24_v12 = vld [vmem:[%s581_s0 + $0x50] sm:$0xff]  ;;  %v17_v13 = vld [vmem:[%s581_s0 + $0x18] sm:$0xff] }
   0x5   :  { %385 = vmatpush3.bf16.msra.mxu0 %v382_v3  ;;  %393 = vmatpush3.bf16.msra.mxu1 %v382_v3  ;;  %v25_v14 = vld [vmem:[%s581_s0 + $0x58] sm:$0xff]  ;;  %v18_v15 = vld [vmem:[%s581_s0 + $0x20] sm:$0xff]  ;;  %v19_v17 = vld [vmem:[%s581_s0 + $0x28] sm:$0xff] }
   0x6   :  { %387 = vmatprep.subr.bf16.mxu0 %v386_v6  ;;  %391 = vmatprep.subr.bf16.mxu1 %v386_v6  ;;  %v26_v16 = vld [vmem:[%s581_s0 + $0x60] sm:$0xff]  ;;  %v27_v18 = vld [vmem:[%s581_s0 + $0x68] sm:$0xff]  ;;  %v20_v19 = vld [vmem:[%s581_s0 + $0x30] sm:$0xff] }
   0x7   :  { %370 = vmatprep.mubr.msk.f32.mxu1 %vm42_vm0, %v22_v7  ;;  %v28_v20 = vld [vmem:[%s581_s0 + $0x70] sm:$0xff]  ;;  %v21_v21 = vld [vmem:[%s581_s0 + $0x38] sm:$0xff]  ;;  %v498_v23 = vld [vmem:[%s582_s2] ss:$0 sm:$0xff] }
   0x8   :  { %v29_v22 = vld [vmem:[%s581_s0 + $0x78] sm:$0xff] }
   0x9   :  { %389 = vmatpush3.bf16.msra.mxu0 %v386_v6  ;;  %394 = vmatpush3.bf16.msra.mxu1 %v386_v6 }
   0xa   :  { %356 = vmatprep.subr.msk.mxu0 %vm91_vm1, %v34_v8  ;;  %392 = vmatprep.subr.msk.mxu1 %vm91_vm1, %v34_v8 }
   0xd   :  { %357 = vmatpush3.msk.msra.mxu0 %vm91_vm1, %v34_v8  ;;  %395 = vmatpush3.msk.msra.mxu1 %vm91_vm1, %v34_v8 }
   0xe   :  { %359 = vmatmul.mubr.msk.f32.vlgmr.msra.gmra.mrb[0].mxu0 %vm42_vm0, %v15_v9  ;;  %371 = vmatmul.mubr.msk.f32.vlgmr.msra.gmra.mrb[0].mxu1 %vm42_vm0, %v23_v10 }
   0xf   :  { %361 = vmatprep.mubr.msk.f32.mxu0 %vm42_vm0, %v16_v11  ;;  %373 = vmatprep.mubr.msk.f32.mxu1 %vm42_vm0, %v24_v12 }
  0x12   :  { %362 = vmatmul.mubr.msk.f32.gmra.mrb[2].mxu0 %vm42_vm0, %v17_v13  ;;  %374 = vmatmul.mubr.msk.f32.gmra.mrb[2].mxu1 %vm42_vm0, %v25_v14 }
  0x13   :  { %364 = vmatprep.mubr.msk.f32.mxu0 %vm42_vm0, %v18_v15  ;;  %376 = vmatprep.mubr.msk.f32.mxu1 %vm42_vm0, %v26_v16 }
  0x16   :  { %365 = vmatmul.mubr.msk.f32.gmra.mrb[4].mxu0 %vm42_vm0, %v19_v17  ;;  %377 = vmatmul.mubr.msk.f32.gmra.mrb[4].mxu1 %vm42_vm0, %v27_v18 }
  0x17   :  { %367 = vmatprep.mubr.msk.f32.mxu0 %vm42_vm0, %v20_v19  ;;  %379 = vmatprep.mubr.msk.f32.mxu1 %vm42_vm0, %v28_v20 }
  0x1a   :  { %368 = vmatmul.mubr.msk.f32.gmra.mrb[6].mxu0 %vm42_vm0, %v21_v21  ;;  %380 = vmatmul.mubr.msk.f32.gmra.mrb[6].mxu1 %vm42_vm0, %v29_v22 }
  0xe1   :  { %v360_v24 = vpop.f32.mrb[0].mxu0  ;;  %v372_v25 = vpop.f32.mrb[0].mxu1 }
  0xe2   :  { %v167_v26 = vadd.f32 %v360_v24, %v498_v23  ;;  %v207_v27 = vadd.f32 %v372_v25, %v498_v23  ;;  %v161_v28 = vpop.f32.mrb[1].mxu0  ;;  %v201_v29 = vpop.f32.mrb[1].mxu1 }
  0xe3   :  { %v162_v30 = vadd.f32 %v498_v23, %v161_v28  ;;  %v202_v31 = vadd.f32 %v498_v23, %v201_v29 }
  0xe4   :  { %vm241_vm3 = vcmp.gt.f32.partialorder %v167_v26, 0.0  ;;  %v257_v32 = vmul.f32 0.1, %v167_v26  ;;  %vm249_vm4 = vcmp.gt.f32.partialorder %v207_v27, 0.0  ;;  %v265_v33 = vmul.f32 0.1, %v207_v27 }
  0xe5   :  { %vm240_vm5 = vcmp.gt.f32.partialorder %v162_v30, 0.0  ;;  %v256_v34 = vmul.f32 0.1, %v162_v30  ;;  %vm248_vm6 = vcmp.gt.f32.partialorder %v202_v31, 0.0  ;;  %v264_v35 = vmul.f32 0.1, %v202_v31 }
  0xe6   :  { %v273_v36 = vsel %vm241_vm3, %v167_v26, %v257_v32  ;;  %v281_v37 = vsel %vm249_vm4, %v207_v27, %v265_v33  ;;  %v363_v38 = vpop.f32.mrb[2].mxu0  ;;  %v375_v39 = vpop.f32.mrb[2].mxu1 }
  0xe7   :  { %290 = vst.msk [vmem:[%s583_s3 + $0x8] sm:$0xff] %vm288_vm2, %v273_v36  ;;  %298 = vst.msk [vmem:[%s583_s3 + $0x48] sm:$0xff] %vm288_vm2, %v281_v37  ;;  %v272_v40 = vsel %vm240_vm5, %v162_v30, %v256_v34  ;;  %v280_v41 = vsel %vm248_vm6, %v202_v31, %v264_v35  ;;  %v177_v42 = vadd.f32 %v363_v38, %v498_v23  ;;  %v171_v44 = vpop.f32.mrb[3].mxu0  ;;  %v211_v45 = vpop.f32.mrb[3].mxu1 }
  0xe8   :  { %v217_v43 = vadd.f32 %v375_v39, %v498_v23  ;;  %289 = vst.msk [vmem:[%s583_s3] sm:$0xff] %vm288_vm2, %v272_v40  ;;  %297 = vst.msk [vmem:[%s583_s3 + $0x40] sm:$0xff] %vm288_vm2, %v280_v41  ;;  %v172_v46 = vadd.f32 %v498_v23, %v171_v44  ;;  %v212_v47 = vadd.f32 %v498_v23, %v211_v45 }
  0xe9   :  { %vm243_vm7 = vcmp.gt.f32.partialorder %v177_v42, 0.0  ;;  %v259_v48 = vmul.f32 0.1, %v177_v42  ;;  %v366_v54 = vpop.f32.mrb[4].mxu0  ;;  %v378_v55 = vpop.f32.mrb[4].mxu1 }
  0xea   :  { %vm251_vm8 = vcmp.gt.f32.partialorder %v217_v43, 0.0  ;;  %v267_v49 = vmul.f32 0.1, %v217_v43  ;;  %vm242_vm9 = vcmp.gt.f32.partialorder %v172_v46, 0.0  ;;  %v258_v50 = vmul.f32 0.1, %v172_v46 }
  0xeb   :  { %vm250_vm10 = vcmp.gt.f32.partialorder %v212_v47, 0.0  ;;  %v266_v51 = vmul.f32 0.1, %v212_v47  ;;  %v275_v52 = vsel %vm243_vm7, %v177_v42, %v259_v48  ;;  %v187_v58 = vadd.f32 %v366_v54, %v498_v23  ;;  %v181_v60 = vpop.f32.mrb[5].mxu0  ;;  %v221_v61 = vpop.f32.mrb[5].mxu1 }
  0xec   :  { %v283_v53 = vsel %vm251_vm8, %v217_v43, %v267_v49  ;;  %292 = vst.msk [vmem:[%s583_s3 + $0x18] sm:$0xff] %vm288_vm2, %v275_v52  ;;  %v274_v56 = vsel %vm242_vm9, %v172_v46, %v258_v50  ;;  %v227_v59 = vadd.f32 %v378_v55, %v498_v23  ;;  %v182_v62 = vadd.f32 %v498_v23, %v181_v60 }
  0xed   :  { %300 = vst.msk [vmem:[%s583_s3 + $0x58] sm:$0xff] %vm288_vm2, %v283_v53  ;;  %v282_v57 = vsel %vm250_vm10, %v212_v47, %v266_v51  ;;  %291 = vst.msk [vmem:[%s583_s3 + $0x10] sm:$0xff] %vm288_vm2, %v274_v56  ;;  %v222_v63 = vadd.f32 %v498_v23, %v221_v61  ;;  %v369_v0 = vpop.f32.mrb[6].mxu0  ;;  %v381_v1 = vpop.f32.mrb[6].mxu1  ;;  %vm245_vm11 = vcmp.gt.f32.partialorder %v187_v58, 0.0 }
  0xee   :  { %299 = vst.msk [vmem:[%s583_s3 + $0x50] sm:$0xff] %vm288_vm2, %v282_v57  ;;  %v261_v2 = vmul.f32 0.1, %v187_v58  ;;  %vm253_vm12 = vcmp.gt.f32.partialorder %v227_v59, 0.0  ;;  %v269_v3 = vmul.f32 0.1, %v227_v59  ;;  %v197_v8 = vadd.f32 %v369_v0, %v498_v23 }
  0xef   :  { %vm244_vm13 = vcmp.gt.f32.partialorder %v182_v62, 0.0  ;;  %v260_v4 = vmul.f32 0.1, %v182_v62  ;;  %vm252_vm14 = vcmp.gt.f32.partialorder %v222_v63, 0.0  ;;  %v268_v5 = vmul.f32 0.1, %v222_v63 }
  0xf0   :  { %v277_v6 = vsel %vm245_vm11, %v187_v58, %v261_v2  ;;  %v285_v7 = vsel %vm253_vm12, %v227_v59, %v269_v3  ;;  %v237_v9 = vadd.f32 %v381_v1, %v498_v23  ;;  %v191_v10 = vpop.f32.mrb[7].mxu0  ;;  %v231_v11 = vpop.f32.mrb[7].mxu1  ;;  %vm247_vm15 = vcmp.gt.f32.partialorder %v197_v8, 0.0 }
  0xf1   :  { %294 = vst.msk [vmem:[%s583_s3 + $0x28] sm:$0xff] %vm288_vm2, %v277_v6  ;;  %302 = vst.msk [vmem:[%s583_s3 + $0x68] sm:$0xff] %vm288_vm2, %v285_v7  ;;  %v276_v12 = vsel %vm244_vm13, %v182_v62, %v260_v4  ;;  %v284_v13 = vsel %vm252_vm14, %v222_v63, %v268_v5  ;;  %v192_v14 = vadd.f32 %v498_v23, %v191_v10  ;;  %v263_v16 = vmul.f32 0.1, %v197_v8 }
  0xf2   :  { %v232_v15 = vadd.f32 %v498_v23, %v231_v11  ;;  %293 = vst.msk [vmem:[%s583_s3 + $0x20] sm:$0xff] %vm288_vm2, %v276_v12  ;;  %301 = vst.msk [vmem:[%s583_s3 + $0x60] sm:$0xff] %vm288_vm2, %v284_v13  ;;  %vm255_vm0 = vcmp.gt.f32.partialorder %v237_v9, 0.0  ;;  %v271_v17 = vmul.f32 0.1, %v237_v9 }
  0xf3   :  { %vm246_vm1 = vcmp.gt.f32.partialorder %v192_v14, 0.0  ;;  %v262_v18 = vmul.f32 0.1, %v192_v14  ;;  %v279_v20 = vsel %vm247_vm15, %v197_v8, %v263_v16 }
  0xf4   :  { %vm254_vm3 = vcmp.gt.f32.partialorder %v232_v15, 0.0  ;;  %v270_v19 = vmul.f32 0.1, %v232_v15  ;;  %v287_v21 = vsel %vm255_vm0, %v237_v9, %v271_v17  ;;  %296 = vst.msk [vmem:[%s583_s3 + $0x38] sm:$0xff] %vm288_vm2, %v279_v20 }
  0xf5   :  { %304 = vst.msk [vmem:[%s583_s3 + $0x78] sm:$0xff] %vm288_vm2, %v287_v21  ;;  %v278_v22 = vsel %vm246_vm1, %v192_v14, %v262_v18 }
  0xf6   :  { %v286_v23 = vsel %vm254_vm3, %v232_v15, %v270_v19  ;;  %295 = vst.msk [vmem:[%s583_s3 + $0x30] sm:$0xff] %vm288_vm2, %v278_v22 }
  0xf7   :  { %303 = vst.msk [vmem:[%s583_s3 + $0x70] sm:$0xff] %vm288_vm2, %v286_v23 }

// kernel: encoder_forward.5
= control target key start
LH: loop header
LB: loop body
LE: loop exit
PB: predicated region body
PF: predicated region fallthrough
CT: control target
= control target key end

     0   :  { %vm113_vm0 = vcmask 523264   ;;  %s927_s1 = inlined_call_operand.vmem [shape: f32[576,128], index: 1, kind: input, shape index: {}]   ;;  %s928_s0 = inlined_call_operand.vmem [shape: f32[32,576], index: 0, kind: input, shape index: {}]   ;;  %s929_s2 = inlined_call_operand.vmem [shape: f32[1,128], index: 2, kind: input, shape index: {}]   ;;  %s930_s3 = inlined_call_operand.vmem [shape: f32[32,128], index: 3, kind: output, shape index: {}]  }
   0x1   :  { %v50_v0 = vld [vmem:[%s927_s1 + $0x80] sm:$0xff]  ;;  %v51_v1 = vld [vmem:[%s927_s1 + $0x88] sm:$0xff]  ;;  %v52_v11 = vld [vmem:[%s927_s1 + $0x90] sm:$0xff] }
   0x2   :  { %v82_v2 = vld [vmem:[%s927_s1 + $0x180] sm:$0xff]  ;;  %v528_v3 = vpack.c.bf16 %v51_v1, %v50_v0  ;;  %v83_v4 = vld [vmem:[%s927_s1 + $0x188] sm:$0xff]  ;;  %v53_v13 = vld [vmem:[%s927_s1 + $0x98] sm:$0xff] }
   0x3   :  { %v34_v5 = vld [vmem:[%s927_s1] sm:$0xff]  ;;  %v35_v6 = vld [vmem:[%s927_s1 + $0x8] sm:$0xff]  ;;  %v560_v7 = vpack.c.bf16 %v83_v4, %v82_v2  ;;  %v84_v14 = vld [vmem:[%s927_s1 + $0x190] sm:$0xff]  ;;  %v532_v16 = vpack.c.bf16 %v53_v13, %v52_v11 }
   0x4   :  { %v530_v8 = vpack.c.bf16 %v35_v6, %v34_v5  ;;  %v66_v9 = vld [vmem:[%s927_s1 + $0x100] sm:$0xff]  ;;  %v67_v10 = vld [vmem:[%s927_s1 + $0x108] sm:$0xff]  ;;  %529 = vmatprep.subr.bf16.mxu0 %v528_v3  ;;  %v85_v15 = vld [vmem:[%s927_s1 + $0x198] sm:$0xff] }
   0x5   :  { %v562_v12 = vpack.c.bf16 %v67_v10, %v66_v9  ;;  %561 = vmatprep.subr.bf16.mxu1 %v560_v7  ;;  %v564_v17 = vpack.c.bf16 %v85_v15, %v84_v14  ;;  %v36_v18 = vld [vmem:[%s927_s1 + $0x10] sm:$0xff]  ;;  %v37_v19 = vld [vmem:[%s927_s1 + $0x18] sm:$0xff]  ;;  %v54_v23 = vld [vmem:[%s927_s1 + $0xa0] sm:$0xff] }
   0x6   :  { %531 = vmatpush3.bf16.msra.mxu0 %v530_v8  ;;  %v68_v20 = vld [vmem:[%s927_s1 + $0x110] sm:$0xff]  ;;  %v534_v21 = vpack.c.bf16 %v37_v19, %v36_v18  ;;  %v69_v22 = vld [vmem:[%s927_s1 + $0x118] sm:$0xff]  ;;  %v55_v24 = vld [vmem:[%s927_s1 + $0xa8] sm:$0xff] }
   0x7   :  { %563 = vmatpush3.bf16.msra.mxu1 %v562_v12  ;;  %533 = vmatprep.subr.bf16.mxu0 %v532_v16  ;;  %v566_v25 = vpack.c.bf16 %v69_v22, %v68_v20  ;;  %v536_v26 = vpack.c.bf16 %v55_v24, %v54_v23  ;;  %v86_v27 = vld [vmem:[%s927_s1 + $0x1a0] sm:$0xff]  ;;  %v87_v28 = vld [vmem:[%s927_s1 + $0x1a8] sm:$0xff]  ;;  %v56_v35 = vld [vmem:[%s927_s1 + $0xb0] sm:$0xff] }
   0x8   :  { %565 = vmatprep.subr.bf16.mxu1 %v564_v17  ;;  %v38_v29 = vld [vmem:[%s927_s1 + $0x20] sm:$0xff]  ;;  %v568_v30 = vpack.c.bf16 %v87_v28, %v86_v27  ;;  %v39_v31 = vld [vmem:[%s927_s1 + $0x28] sm:$0xff]  ;;  %v57_v36 = vld [vmem:[%s927_s1 + $0xb8] sm:$0xff] }
   0x9   :  { %v70_v32 = vld [vmem:[%s927_s1 + $0x120] sm:$0xff]  ;;  %v71_v33 = vld [vmem:[%s927_s1 + $0x128] sm:$0xff]  ;;  %v538_v34 = vpack.c.bf16 %v39_v31, %v38_v29  ;;  %v88_v37 = vld [vmem:[%s927_s1 + $0x1b0] sm:$0xff]  ;;  %v540_v39 = vpack.c.bf16 %v57_v36, %v56_v35 }
   0xa   :  { %535 = vmatpush3.bf16.msra.mxu0 %v534_v21  ;;  %v570_v38 = vpack.c.bf16 %v71_v33, %v70_v32  ;;  %v89_v40 = vld [vmem:[%s927_s1 + $0x1b8] sm:$0xff]  ;;  %v40_v41 = vld [vmem:[%s927_s1 + $0x30] sm:$0xff]  ;;  %v58_v46 = vld [vmem:[%s927_s1 + $0xc0] sm:$0xff] }
   0xb   :  { %567 = vmatpush3.bf16.msra.mxu1 %v566_v25  ;;  %537 = vmatprep.subr.bf16.mxu0 %v536_v26  ;;  %v41_v42 = vld [vmem:[%s927_s1 + $0x38] sm:$0xff]  ;;  %v572_v43 = vpack.c.bf16 %v89_v40, %v88_v37  ;;  %v72_v44 = vld [vmem:[%s927_s1 + $0x130] sm:$0xff]  ;;  %v59_v47 = vld [vmem:[%s927_s1 + $0xc8] sm:$0xff] }
   0xc   :  { %569 = vmatprep.subr.bf16.mxu1 %v568_v30  ;;  %v73_v45 = vld [vmem:[%s927_s1 + $0x138] sm:$0xff]  ;;  %v90_v48 = vld [vmem:[%s927_s1 + $0x1c0] sm:$0xff]  ;;  %v91_v49 = vld [vmem:[%s927_s1 + $0x1c8] sm:$0xff]  ;;  %v542_v50 = vpack.c.bf16 %v41_v42, %v40_v41  ;;  %v544_v52 = vpack.c.bf16 %v59_v47, %v58_v46 }
   0xd   :  { %v574_v51 = vpack.c.bf16 %v73_v45, %v72_v44  ;;  %v42_v53 = vld [vmem:[%s927_s1 + $0x40] sm:$0xff]  ;;  %v43_v54 = vld [vmem:[%s927_s1 + $0x48] sm:$0xff]  ;;  %v576_v56 = vpack.c.bf16 %v91_v49, %v90_v48  ;;  %v60_v58 = vld [vmem:[%s927_s1 + $0xd0] sm:$0xff] }
   0xe   :  { %539 = vmatpush3.bf16.msra.mxu0 %v538_v34  ;;  %v74_v55 = vld [vmem:[%s927_s1 + $0x140] sm:$0xff]  ;;  %v75_v57 = vld [vmem:[%s927_s1 + $0x148] sm:$0xff]  ;;  %v61_v59 = vld [vmem:[%s927_s1 + $0xd8] sm:$0xff]  ;;  %v546_v62 = vpack.c.bf16 %v43_v54, %v42_v53 }
   0xf   :  { %571 = vmatpush3.bf16.msra.mxu1 %v570_v38  ;;  %541 = vmatprep.subr.bf16.mxu0 %v540_v39  ;;  %v92_v60 = vld [vmem:[%s927_s1 + $0x1d0] sm:$0xff]  ;;  %v93_v61 = vld [vmem:[%s927_s1 + $0x1d8] sm:$0xff]  ;;  %v578_v63 = vpack.c.bf16 %v75_v57, %v74_v55  ;;  %v548_v0 = vpack.c.bf16 %v61_v59, %v60_v58  ;;  %v62_v6 = vld [vmem:[%s927_s1 + $0xe0] sm:$0xff] }
  0x10   :  { %573 = vmatprep.subr.bf16.mxu1 %v572_v43  ;;  %v44_v1 = vld [vmem:[%s927_s1 + $0x50] sm:$0xff]  ;;  %v45_v2 = vld [vmem:[%s927_s1 + $0x58] sm:$0xff]  ;;  %v580_v4 = vpack.c.bf16 %v93_v61, %v92_v60  ;;  %v63_v7 = vld [vmem:[%s927_s1 + $0xe8] sm:$0xff] }
  0x11   :  { %v76_v3 = vld [vmem:[%s927_s1 + $0x150] sm:$0xff]  ;;  %v77_v5 = vld [vmem:[%s927_s1 + $0x158] sm:$0xff]  ;;  %v94_v8 = vld [vmem:[%s927_s1 + $0x1e0] sm:$0xff]  ;;  %v550_v10 = vpack.c.bf16 %v45_v2, %v44_v1  ;;  %v552_v14 = vpack.c.bf16 %v63_v7, %v62_v6 }
  0x12   :  { %543 = vmatpush3.bf16.msra.mxu0 %v542_v50  ;;  %v95_v9 = vld [vmem:[%s927_s1 + $0x1e8] sm:$0xff]  ;;  %v46_v11 = vld [vmem:[%s927_s1 + $0x60] sm:$0xff]  ;;  %v582_v13 = vpack.c.bf16 %v77_v5, %v76_v3  ;;  %v17_v17 = vld [vmem:[%s928_s0 + $0x18] sm:$0xff] }
  0x13   :  { %575 = vmatpush3.bf16.msra.mxu1 %v574_v51  ;;  %545 = vmatprep.subr.bf16.mxu0 %v544_v52  ;;  %v47_v12 = vld [vmem:[%s927_s1 + $0x68] sm:$0xff]  ;;  %v78_v15 = vld [vmem:[%s927_s1 + $0x160] sm:$0xff]  ;;  %v584_v18 = vpack.c.bf16 %v95_v9, %v94_v8  ;;  %v64_v20 = vld [vmem:[%s927_s1 + $0xf0] sm:$0xff] }
  0x14   :  { %577 = vmatprep.subr.bf16.mxu1 %v576_v56  ;;  %v15_v16 = vld [vmem:[%s928_s0 + $0x8] sm:$0xff]  ;;  %v65_v21 = vld [vmem:[%s927_s1 + $0xf8] sm:$0xff]  ;;  %v96_v22 = vld [vmem:[%s927_s1 + $0x1f0] sm:$0xff]  ;;  %275 = vmatprep.mubr.f32.mxu1 %v17_v17  ;;  %v554_v24 = vpack.c.bf16 %v47_v12, %v46_v11 }
  0x15   :  { %v79_v19 = vld [vmem:[%s927_s1 + $0x168] sm:$0xff]  ;;  %190 = vmatprep.mubr.f32.mxu0 %v15_v16  ;;  %v97_v23 = vld [vmem:[%s927_s1 + $0x1f8] sm:$0xff]  ;;  %v556_v26 = vpack.c.bf16 %v65_v21, %v64_v20  ;;  %v48_v27 = vld [vmem:[%s927_s1 + $0x70] sm:$0xff] }
  0x16   :  { %547 = vmatpush3.bf16.msra.mxu0 %v546_v62  ;;  %v586_v25 = vpack.c.bf16 %v79_v19, %v78_v15  ;;  %v49_v28 = vld [vmem:[%s927_s1 + $0x78] sm:$0xff]  ;;  %v80_v29 = vld [vmem:[%s927_s1 + $0x170] sm:$0xff]  ;;  %v588_v30 = vpack.c.bf16 %v97_v23, %v96_v22  ;;  %v98_v32 = vld [vmem:[%s927_s1 + $0x200] sm:$0xff] }
  0x17   :  { %579 = vmatpush3.bf16.msra.mxu1 %v578_v63  ;;  %549 = vmatprep.subr.bf16.mxu0 %v548_v0  ;;  %v81_v31 = vld [vmem:[%s927_s1 + $0x178] sm:$0xff]  ;;  %v99_v33 = vld [vmem:[%s927_s1 + $0x208] sm:$0xff]  ;;  %v558_v34 = vpack.c.bf16 %v49_v28, %v48_v27  ;;  %v100_v37 = vld [vmem:[%s927_s1 + $0x210] sm:$0xff] }
  0x18   :  { %581 = vmatprep.subr.bf16.mxu1 %v580_v4  ;;  %v590_v35 = vpack.c.bf16 %v81_v31, %v80_v29  ;;  %v592_v36 = vpack.c.bf16 %v99_v33, %v98_v32  ;;  %v101_v38 = vld [vmem:[%s927_s1 + $0x218] sm:$0xff]  ;;  %v14_v39 = vld [vmem:[%s928_s0] sm:$0xff]  ;;  %v16_v40 = vld [vmem:[%s928_s0 + $0x10] sm:$0xff] }
  0x19   :  { %v20_v41 = vld [vmem:[%s928_s0 + $0x30] sm:$0xff]  ;;  %v596_v42 = vpack.c.bf16 %v101_v38, %v100_v37  ;;  %v22_v43 = vld [vmem:[%s928_s0 + $0x40] sm:$0xff]  ;;  %v103_v45 = vld [vmem:[%s927_s1 + $0x228] sm:$0xff] }
  0x1a   :  { %551 = vmatpush3.bf16.msra.mxu0 %v550_v10  ;;  %v102_v44 = vld [vmem:[%s927_s1 + $0x220] sm:$0xff]  ;;  %v19_v46 = vld [vmem:[%s928_s0 + $0x28] sm:$0xff]  ;;  %v21_v47 = vld [vmem:[%s928_s0 + $0x38] sm:$0xff] }
  0x1b   :  { %583 = vmatpush3.bf16.msra.mxu1 %v582_v13  ;;  %553 = vmatprep.subr.bf16.mxu0 %v552_v14  ;;  %v25_v48 = vld [vmem:[%s928_s0 + $0x58] sm:$0xff]  ;;  %v600_v49 = vpack.c.bf16 %v103_v45, %v102_v44  ;;  %v27_v50 = vld [vmem:[%s928_s0 + $0x68] sm:$0xff]  ;;  %v104_v51 = vld [vmem:[%s927_s1 + $0x230] sm:$0xff] }
  0x1c   :  { %585 = vmatprep.subr.bf16.mxu1 %v584_v18  ;;  %v105_v52 = vld [vmem:[%s927_s1 + $0x238] sm:$0xff]  ;;  %v24_v53 = vld [vmem:[%s928_s0 + $0x50] sm:$0xff]  ;;  %v26_v54 = vld [vmem:[%s928_s0 + $0x60] sm:$0xff] }
  0x1d   :  { %v30_v55 = vld [vmem:[%s928_s0 + $0x80] sm:$0xff]  ;;  %v604_v56 = vpack.c.bf16 %v105_v52, %v104_v51  ;;  %v32_v57 = vld [vmem:[%s928_s0 + $0x90] sm:$0xff]  ;;  %v29_v58 = vld [vmem:[%s928_s0 + $0x78] sm:$0xff] }
  0x1e   :  { %555 = vmatpush3.bf16.msra.mxu0 %v554_v24  ;;  %v31_v59 = vld [vmem:[%s928_s0 + $0x88] sm:$0xff]  ;;  %v18_v60 = vld [vmem:[%s928_s0 + $0x20] sm:$0xff]  ;;  %v28_v61 = vld [vmem:[%s928_s0 + $0x70] sm:$0xff] }
  0x1f   :  { %587 = vmatpush3.bf16.msra.mxu1 %v586_v25  ;;  %557 = vmatprep.subr.bf16.mxu0 %v556_v26  ;;  %v23_v62 = vld [vmem:[%s928_s0 + $0x48] sm:$0xff]  ;;  %v33_v63 = vld [vmem:[%s928_s0 + $0x98] sm:$0xff]  ;;  %v401_v1 = vld [vmem:[%s929_s2] ss:$0 sm:$0xff] }
  0x20   :  { %589 = vmatprep.subr.bf16.mxu1 %v588_v30 }
  0x22   :  { %559 = vmatpush3.bf16.msra.mxu0 %v558_v34 }
  0x23   :  { %591 = vmatpush3.bf16.msra.mxu1 %v590_v35  ;;  %593 = vmatprep.subr.bf16.mxu0 %v592_v36 }
  0x24   :  { %608 = vmatprep.subr.bf16.mxu1 %v592_v36 }
  0x25   :  { %191 = vmatmul.mubr.f32.vlgmr.msra.gmra.mrb[0].mxu0 %v14_v39 }
  0x26   :  { %276 = vmatmul.mubr.f32.vlgmr.msra.gmra.mrb[0].mxu1 %v16_v40  ;;  %595 = vmatpush3.bf16.msra.mxu0 %v592_v36 }
  0x27   :  { %612 = vmatpush3.bf16.msra.mxu1 %v592_v36  ;;  %195 = vmatprep.mubr.f32.mxu0 %v20_v41 }
  0x28   :  { %280 = vmatprep.mubr.f32.mxu1 %v22_v43  ;;  %597 = vmatprep.subr.bf16.mxu0 %v596_v42 }
  0x29   :  { %196 = vmatmul.mubr.f32.gmra.mrb[2].mxu0 %v19_v46  ;;  %609 = vmatprep.subr.bf16.mxu1 %v596_v42 }
  0x2a   :  { %281 = vmatmul.mubr.f32.gmra.mrb[2].mxu1 %v21_v47  ;;  %599 = vmatpush3.bf16.msra.mxu0 %v596_v42 }
  0x2b   :  { %613 = vmatpush3.bf16.msra.mxu1 %v596_v42  ;;  %200 = vmatprep.mubr.f32.mxu0 %v25_v48 }
  0x2c   :  { %285 = vmatprep.mubr.f32.mxu1 %v27_v50  ;;  %601 = vmatprep.subr.bf16.mxu0 %v600_v49 }
  0x2d   :  { %201 = vmatmul.mubr.f32.gmra.mrb[4].mxu0 %v24_v53  ;;  %610 = vmatprep.subr.bf16.mxu1 %v600_v49 }
  0x2e   :  { %286 = vmatmul.mubr.f32.gmra.mrb[4].mxu1 %v26_v54  ;;  %603 = vmatpush3.bf16.msra.mxu0 %v600_v49 }
  0x2f   :  { %614 = vmatpush3.bf16.msra.mxu1 %v600_v49  ;;  %205 = vmatprep.mubr.f32.mxu0 %v30_v55 }
  0x30   :  { %290 = vmatprep.mubr.f32.mxu1 %v32_v57  ;;  %605 = vmatprep.subr.bf16.mxu0 %v604_v56 }
  0x31   :  { %206 = vmatmul.mubr.f32.gmra.mrb[6].mxu0 %v29_v58  ;;  %611 = vmatprep.subr.bf16.mxu1 %v604_v56 }
  0x32   :  { %291 = vmatmul.mubr.f32.gmra.mrb[6].mxu1 %v31_v59  ;;  %607 = vmatpush3.bf16.msra.mxu0 %v604_v56 }
  0x33   :  { %615 = vmatpush3.bf16.msra.mxu1 %v604_v56  ;;  %522 = vmatprep.mubr.msk.f32.mxu0 %vm113_vm0, %v18_v60 }
  0x34   :  { %525 = vmatprep.mubr.msk.f32.mxu1 %vm113_vm0, %v28_v61 }
  0x35   :  { %523 = vmatmul.mubr.msk.f32.vlgmr.msra.gmra.mrb[8].mxu0 %vm113_vm0, %v23_v62 }
  0x36   :  { %526 = vmatmul.mubr.msk.f32.vlgmr.msra.gmra.mrb[8].mxu1 %vm113_vm0, %v33_v63 }
  0xf8   :  { %v438_v0 = vpop.f32.mrb[0].mxu0 }
  0xf9   :  { %v439_v2 = vpop.f32.mrb[1].mxu0  ;;  %v482_v3 = vpop.f32.mrb[0].mxu1 }
  0xfa   :  { %v440_v4 = vadd.f32 %v439_v2, %v438_v0  ;;  %v483_v5 = vpop.f32.mrb[1].mxu1 }
  0xfb   :  { %v484_v6 = vadd.f32 %v483_v5, %v482_v3 }
  0xfc   :  { %v193_v7 = vadd.f32 %v440_v4, %v401_v1  ;;  %v441_v8 = vpop.f32.mrb[2].mxu0 }
  0xfd   :  { %v442_v9 = vpop.f32.mrb[3].mxu0  ;;  %v485_v10 = vpop.f32.mrb[2].mxu1 }
  0xfe   :  { %v443_v11 = vadd.f32 %v442_v9, %v441_v8  ;;  %v486_v12 = vpop.f32.mrb[3].mxu1  ;;  %v278_v13 = vadd.f32 %v484_v6, %v193_v7 }
  0xff   :  { %v487_v14 = vadd.f32 %v486_v12, %v485_v10 }
 0x100   :  { %v198_v15 = vadd.f32 %v443_v11, %v401_v1  ;;  %v444_v16 = vpop.f32.mrb[4].mxu0 }
 0x101   :  { %v445_v17 = vpop.f32.mrb[5].mxu0  ;;  %v488_v18 = vpop.f32.mrb[4].mxu1 }
 0x102   :  { %v446_v19 = vadd.f32 %v445_v17, %v444_v16  ;;  %v489_v20 = vpop.f32.mrb[5].mxu1  ;;  %v283_v21 = vadd.f32 %v487_v14, %v198_v15 }
 0x103   :  { %v490_v22 = vadd.f32 %v489_v20, %v488_v18 }
 0x104   :  { %v203_v23 = vadd.f32 %v446_v19, %v401_v1  ;;  %v447_v24 = vpop.f32.mrb[6].mxu0 }
 0x105   :  { %v448_v25 = vpop.f32.mrb[7].mxu0  ;;  %v491_v26 = vpop.f32.mrb[6].mxu1 }
 0x106   :  { %v449_v27 = vadd.f32 %v448_v25, %v447_v24  ;;  %v492_v28 = vpop.f32.mrb[7].mxu1  ;;  %v288_v29 = vadd.f32 %v490_v22, %v203_v23 }
 0x107   :  { %v493_v30 = vadd.f32 %v492_v28, %v491_v26 }
 0x108   :  { %v208_v31 = vadd.f32 %v449_v27, %v401_v1  ;;  %v524_v32 = vpop.f32.mrb[8].mxu0 }
 0x109   :  { %v368_v33 = vadd.f32 %v524_v32, %v283_v21  ;;  %v527_v34 = vpop.f32.mrb[8].mxu1  ;;  %v362_v35 = vpop.f32.mrb[9].mxu0 }
 0x10a   :  { %v293_v36 = vadd.f32 %v493_v30, %v208_v31  ;;  %v363_v37 = vadd.f32 %v362_v35, %v278_v13  ;;  %v372_v38 = vpop.f32.mrb[9].mxu1 }
 0x10b   :  { %vm382_vm1 = vcmp.gt.f32.partialorder %v368_v33, 0.0  ;;  %v386_v39 = vmul.f32 0.1, %v368_v33  ;;  %v373_v40 = vadd.f32 %v372_v38, %v288_v29 }
 0x10c   :  { %v378_v41 = vadd.f32 %v527_v34, %v293_v36  ;;  %vm381_vm2 = vcmp.gt.f32.partialorder %v363_v37, 0.0  ;;  %v385_v42 = vmul.f32 0.1, %v363_v37 }
 0x10d   :  { %v390_v43 = vsel %vm382_vm1, %v368_v33, %v386_v39  ;;  %vm383_vm3 = vcmp.gt.f32.partialorder %v373_v40, 0.0  ;;  %v387_v44 = vmul.f32 0.1, %v373_v40 }
 0x10e   :  { %394 = vst [vmem:[%s930_s3 + $0x8] sm:$0xff] %v390_v43  ;;  %vm384_vm4 = vcmp.gt.f32.partialorder %v378_v41, 0.0  ;;  %v388_v45 = vmul.f32 0.1, %v378_v41  ;;  %v389_v46 = vsel %vm381_vm2, %v363_v37, %v385_v42 }
 0x10f   :  { %393 = vst [vmem:[%s930_s3] sm:$0xff] %v389_v46  ;;  %v391_v47 = vsel %vm383_vm3, %v373_v40, %v387_v44 }
 0x110   :  { %v392_v48 = vsel %vm384_vm4, %v378_v41, %v388_v45  ;;  %395 = vst [vmem:[%s930_s3 + $0x10] sm:$0xff] %v391_v47 }
 0x111   :  { %396 = vst [vmem:[%s930_s3 + $0x18] sm:$0xff] %v392_v48 }

// kernel: encoder_forward.6
= control target key start
LH: loop header
LB: loop body
LE: loop exit
PB: predicated region body
PF: predicated region fallthrough
CT: control target
= control target key end

     0   :  { %s1910_s1 = inlined_call_operand.vmem [shape: f32[1152,256], index: 1, kind: input, shape index: {}]   ;;  %s1911_s0 = inlined_call_operand.vmem [shape: f32[8,1152], index: 0, kind: input, shape index: {}]   ;;  %s1912_s2 = inlined_call_operand.vmem [shape: f32[1,256], index: 2, kind: input, shape index: {}]   ;;  %s1913_s3 = inlined_call_operand.vmem [shape: f32[8,256], index: 3, kind: output, shape index: {}]  }
   0x1   :  { %v24_v0 = vld [vmem:[%s1910_s1 + $0x8] sm:$0xff]  ;;  %v26_v1 = vld [vmem:[%s1910_s1 + $0x18] sm:$0xff]  ;;  %v23_v5 = vld [vmem:[%s1910_s1] sm:$0xff] }
   0x2   :  { %v152_v2 = vld [vmem:[%s1910_s1 + $0x408] sm:$0xff]  ;;  %v690_v3 = vpack.c.bf16 %v26_v1, %v24_v0  ;;  %v154_v4 = vld [vmem:[%s1910_s1 + $0x418] sm:$0xff]  ;;  %v25_v6 = vld [vmem:[%s1910_s1 + $0x10] sm:$0xff] }
   0x3   :  { %v818_v7 = vpack.c.bf16 %v154_v4, %v152_v2  ;;  %v692_v8 = vpack.c.bf16 %v25_v6, %v23_v5  ;;  %v151_v9 = vld [vmem:[%s1910_s1 + $0x400] sm:$0xff]  ;;  %v153_v10 = vld [vmem:[%s1910_s1 + $0x410] sm:$0xff]  ;;  %v28_v11 = vld [vmem:[%s1910_s1 + $0x28] sm:$0xff] }
   0x4   :  { %691 = vmatprep.subr.bf16.mxu1 %v690_v3  ;;  %v820_v12 = vpack.c.bf16 %v153_v10, %v151_v9  ;;  %v30_v13 = vld [vmem:[%s1910_s1 + $0x38] sm:$0xff]  ;;  %v156_v14 = vld [vmem:[%s1910_s1 + $0x428] sm:$0xff]  ;;  %v27_v18 = vld [vmem:[%s1910_s1 + $0x20] sm:$0xff] }
   0x5   :  { %v158_v15 = vld [vmem:[%s1910_s1 + $0x438] sm:$0xff]  ;;  %819 = vmatprep.subr.bf16.mxu0 %v818_v7  ;;  %693 = vmatpush1.bf16.msra.mxu1 %v692_v8  ;;  %v694_v16 = vpack.c.bf16 %v30_v13, %v28_v11  ;;  %v29_v19 = vld [vmem:[%s1910_s1 + $0x30] sm:$0xff]  ;;  %v155_v20 = vld [vmem:[%s1910_s1 + $0x420] sm:$0xff] }
   0x6   :  { %v822_v17 = vpack.c.bf16 %v158_v15, %v156_v14  ;;  %821 = vmatpush1.bf16.msra.mxu0 %v820_v12  ;;  %v696_v21 = vpack.c.bf16 %v29_v19, %v27_v18  ;;  %v157_v22 = vld [vmem:[%s1910_s1 + $0x430] sm:$0xff]  ;;  %v32_v23 = vld [vmem:[%s1910_s1 + $0x48] sm:$0xff]  ;;  %v34_v24 = vld [vmem:[%s1910_s1 + $0x58] sm:$0xff] }
   0x7   :  { %695 = vmatprep.subr.bf16.mxu1 %v694_v16  ;;  %v824_v25 = vpack.c.bf16 %v157_v22, %v155_v20  ;;  %v698_v26 = vpack.c.bf16 %v34_v24, %v32_v23  ;;  %v160_v27 = vld [vmem:[%s1910_s1 + $0x448] sm:$0xff]  ;;  %v162_v28 = vld [vmem:[%s1910_s1 + $0x458] sm:$0xff]  ;;  %v31_v29 = vld [vmem:[%s1910_s1 + $0x40] sm:$0xff] }
   0x8   :  { %823 = vmatprep.subr.bf16.mxu0 %v822_v17  ;;  %v826_v30 = vpack.c.bf16 %v162_v28, %v160_v27  ;;  %v33_v31 = vld [vmem:[%s1910_s1 + $0x50] sm:$0xff]  ;;  %v159_v32 = vld [vmem:[%s1910_s1 + $0x440] sm:$0xff]  ;;  %v36_v35 = vld [vmem:[%s1910_s1 + $0x68] sm:$0xff] }
   0x9   :  { %v161_v33 = vld [vmem:[%s1910_s1 + $0x450] sm:$0xff]  ;;  %697 = vmatpush1.bf16.msra.mxu1 %v696_v21  ;;  %v700_v34 = vpack.c.bf16 %v33_v31, %v31_v29  ;;  %v38_v36 = vld [vmem:[%s1910_s1 + $0x78] sm:$0xff]  ;;  %v164_v37 = vld [vmem:[%s1910_s1 + $0x468] sm:$0xff] }
   0xa   :  { %825 = vmatpush1.bf16.msra.mxu0 %v824_v25  ;;  %699 = vmatprep.subr.bf16.mxu1 %v698_v26  ;;  %v828_v38 = vpack.c.bf16 %v161_v33, %v159_v32  ;;  %v702_v39 = vpack.c.bf16 %v38_v36, %v36_v35  ;;  %v166_v40 = vld [vmem:[%s1910_s1 + $0x478] sm:$0xff]  ;;  %v35_v41 = vld [vmem:[%s1910_s1 + $0x60] sm:$0xff]  ;;  %v37_v42 = vld [vmem:[%s1910_s1 + $0x70] sm:$0xff] }
   0xb   :  { %827 = vmatprep.subr.bf16.mxu0 %v826_v30  ;;  %v830_v43 = vpack.c.bf16 %v166_v40, %v164_v37  ;;  %v163_v44 = vld [vmem:[%s1910_s1 + $0x460] sm:$0xff]  ;;  %v165_v45 = vld [vmem:[%s1910_s1 + $0x470] sm:$0xff]  ;;  %v40_v46 = vld [vmem:[%s1910_s1 + $0x88] sm:$0xff]  ;;  %v704_v50 = vpack.c.bf16 %v37_v42, %v35_v41 }
   0xc   :  { %v42_v47 = vld [vmem:[%s1910_s1 + $0x98] sm:$0xff]  ;;  %v168_v48 = vld [vmem:[%s1910_s1 + $0x488] sm:$0xff]  ;;  %v832_v51 = vpack.c.bf16 %v165_v45, %v163_v44  ;;  %v39_v53 = vld [vmem:[%s1910_s1 + $0x80] sm:$0xff] }
   0xd   :  { %v170_v49 = vld [vmem:[%s1910_s1 + $0x498] sm:$0xff]  ;;  %701 = vmatpush1.bf16.msra.mxu1 %v700_v34  ;;  %v706_v52 = vpack.c.bf16 %v42_v47, %v40_v46  ;;  %v41_v54 = vld [vmem:[%s1910_s1 + $0x90] sm:$0xff]  ;;  %v167_v55 = vld [vmem:[%s1910_s1 + $0x480] sm:$0xff] }
   0xe   :  { %829 = vmatpush1.bf16.msra.mxu0 %v828_v38  ;;  %703 = vmatprep.subr.bf16.mxu1 %v702_v39  ;;  %v834_v56 = vpack.c.bf16 %v170_v49, %v168_v48  ;;  %v169_v57 = vld [vmem:[%s1910_s1 + $0x490] sm:$0xff]  ;;  %v44_v58 = vld [vmem:[%s1910_s1 + $0xa8] sm:$0xff]  ;;  %v46_v59 = vld [vmem:[%s1910_s1 + $0xb8] sm:$0xff]  ;;  %v708_v62 = vpack.c.bf16 %v41_v54, %v39_v53 }
   0xf   :  { %831 = vmatprep.subr.bf16.mxu0 %v830_v43  ;;  %v172_v60 = vld [vmem:[%s1910_s1 + $0x4a8] sm:$0xff]  ;;  %v174_v61 = vld [vmem:[%s1910_s1 + $0x4b8] sm:$0xff]  ;;  %v836_v63 = vpack.c.bf16 %v169_v57, %v167_v55  ;;  %v710_v0 = vpack.c.bf16 %v46_v59, %v44_v58  ;;  %v43_v1 = vld [vmem:[%s1910_s1 + $0xa0] sm:$0xff] }
  0x10   :  { %v45_v2 = vld [vmem:[%s1910_s1 + $0xb0] sm:$0xff]  ;;  %v171_v3 = vld [vmem:[%s1910_s1 + $0x4a0] sm:$0xff]  ;;  %v838_v4 = vpack.c.bf16 %v174_v61, %v172_v60  ;;  %v48_v6 = vld [vmem:[%s1910_s1 + $0xc8] sm:$0xff] }
  0x11   :  { %705 = vmatpush1.bf16.msra.mxu1 %v704_v50  ;;  %v173_v5 = vld [vmem:[%s1910_s1 + $0x4b0] sm:$0xff]  ;;  %v50_v7 = vld [vmem:[%s1910_s1 + $0xd8] sm:$0xff]  ;;  %v176_v8 = vld [vmem:[%s1910_s1 + $0x4c8] sm:$0xff]  ;;  %v712_v10 = vpack.c.bf16 %v45_v2, %v43_v1 }
  0x12   :  { %833 = vmatpush1.bf16.msra.mxu0 %v832_v51  ;;  %707 = vmatprep.subr.bf16.mxu1 %v706_v52  ;;  %v178_v9 = vld [vmem:[%s1910_s1 + $0x4d8] sm:$0xff]  ;;  %v840_v11 = vpack.c.bf16 %v173_v5, %v171_v3  ;;  %v714_v12 = vpack.c.bf16 %v50_v7, %v48_v6  ;;  %v47_v13 = vld [vmem:[%s1910_s1 + $0xc0] sm:$0xff]  ;;  %v49_v14 = vld [vmem:[%s1910_s1 + $0xd0] sm:$0xff] }
  0x13   :  { %835 = vmatprep.subr.bf16.mxu0 %v834_v56  ;;  %v175_v15 = vld [vmem:[%s1910_s1 + $0x4c0] sm:$0xff]  ;;  %v842_v16 = vpack.c.bf16 %v178_v9, %v176_v8  ;;  %v177_v17 = vld [vmem:[%s1910_s1 + $0x4d0] sm:$0xff]  ;;  %v52_v18 = vld [vmem:[%s1910_s1 + $0xe8] sm:$0xff]  ;;  %v716_v22 = vpack.c.bf16 %v49_v14, %v47_v13 }
  0x14   :  { %v54_v19 = vld [vmem:[%s1910_s1 + $0xf8] sm:$0xff]  ;;  %v180_v20 = vld [vmem:[%s1910_s1 + $0x4e8] sm:$0xff]  ;;  %v844_v23 = vpack.c.bf16 %v177_v17, %v175_v15  ;;  %v51_v25 = vld [vmem:[%s1910_s1 + $0xe0] sm:$0xff] }
  0x15   :  { %709 = vmatpush1.bf16.msra.mxu1 %v708_v62  ;;  %v182_v21 = vld [vmem:[%s1910_s1 + $0x4f8] sm:$0xff]  ;;  %v718_v24 = vpack.c.bf16 %v54_v19, %v52_v18  ;;  %v53_v26 = vld [vmem:[%s1910_s1 + $0xf0] sm:$0xff]  ;;  %v179_v27 = vld [vmem:[%s1910_s1 + $0x4e0] sm:$0xff] }
  0x16   :  { %837 = vmatpush1.bf16.msra.mxu0 %v836_v63  ;;  %711 = vmatprep.subr.bf16.mxu1 %v710_v0  ;;  %v846_v28 = vpack.c.bf16 %v182_v21, %v180_v20  ;;  %v181_v29 = vld [vmem:[%s1910_s1 + $0x4f0] sm:$0xff]  ;;  %v56_v30 = vld [vmem:[%s1910_s1 + $0x108] sm:$0xff]  ;;  %v58_v31 = vld [vmem:[%s1910_s1 + $0x118] sm:$0xff]  ;;  %v720_v34 = vpack.c.bf16 %v53_v26, %v51_v25 }
  0x17   :  { %839 = vmatprep.subr.bf16.mxu0 %v838_v4  ;;  %v184_v32 = vld [vmem:[%s1910_s1 + $0x508] sm:$0xff]  ;;  %v186_v33 = vld [vmem:[%s1910_s1 + $0x518] sm:$0xff]  ;;  %v848_v35 = vpack.c.bf16 %v181_v29, %v179_v27  ;;  %v722_v36 = vpack.c.bf16 %v58_v31, %v56_v30  ;;  %v55_v37 = vld [vmem:[%s1910_s1 + $0x100] sm:$0xff] }
  0x18   :  { %v57_v38 = vld [vmem:[%s1910_s1 + $0x110] sm:$0xff]  ;;  %v183_v39 = vld [vmem:[%s1910_s1 + $0x500] sm:$0xff]  ;;  %v850_v40 = vpack.c.bf16 %v186_v33, %v184_v32  ;;  %v60_v42 = vld [vmem:[%s1910_s1 + $0x128] sm:$0xff] }
  0x19   :  { %713 = vmatpush1.bf16.msra.mxu1 %v712_v10  ;;  %v185_v41 = vld [vmem:[%s1910_s1 + $0x510] sm:$0xff]  ;;  %v62_v43 = vld [vmem:[%s1910_s1 + $0x138] sm:$0xff]  ;;  %v188_v44 = vld [vmem:[%s1910_s1 + $0x528] sm:$0xff]  ;;  %v724_v46 = vpack.c.bf16 %v57_v38, %v55_v37 }
  0x1a   :  { %841 = vmatpush1.bf16.msra.mxu0 %v840_v11  ;;  %715 = vmatprep.subr.bf16.mxu1 %v714_v12  ;;  %v190_v45 = vld [vmem:[%s1910_s1 + $0x538] sm:$0xff]  ;;  %v852_v47 = vpack.c.bf16 %v185_v41, %v183_v39  ;;  %v726_v48 = vpack.c.bf16 %v62_v43, %v60_v42  ;;  %v59_v49 = vld [vmem:[%s1910_s1 + $0x120] sm:$0xff]  ;;  %v61_v50 = vld [vmem:[%s1910_s1 + $0x130] sm:$0xff] }
  0x1b   :  { %843 = vmatprep.subr.bf16.mxu0 %v842_v16  ;;  %v187_v51 = vld [vmem:[%s1910_s1 + $0x520] sm:$0xff]  ;;  %v854_v52 = vpack.c.bf16 %v190_v45, %v188_v44  ;;  %v189_v53 = vld [vmem:[%s1910_s1 + $0x530] sm:$0xff]  ;;  %v64_v54 = vld [vmem:[%s1910_s1 + $0x148] sm:$0xff]  ;;  %v728_v58 = vpack.c.bf16 %v61_v50, %v59_v49 }
  0x1c   :  { %v66_v55 = vld [vmem:[%s1910_s1 + $0x158] sm:$0xff]  ;;  %v192_v56 = vld [vmem:[%s1910_s1 + $0x548] sm:$0xff]  ;;  %v856_v59 = vpack.c.bf16 %v189_v53, %v187_v51  ;;  %v63_v61 = vld [vmem:[%s1910_s1 + $0x140] sm:$0xff] }
  0x1d   :  { %717 = vmatpush1.bf16.msra.mxu1 %v716_v22  ;;  %v194_v57 = vld [vmem:[%s1910_s1 + $0x558] sm:$0xff]  ;;  %v730_v60 = vpack.c.bf16 %v66_v55, %v64_v54  ;;  %v65_v62 = vld [vmem:[%s1910_s1 + $0x150] sm:$0xff]  ;;  %v191_v63 = vld [vmem:[%s1910_s1 + $0x540] sm:$0xff] }
  0x1e   :  { %845 = vmatpush1.bf16.msra.mxu0 %v844_v23  ;;  %719 = vmatprep.subr.bf16.mxu1 %v718_v24  ;;  %v858_v0 = vpack.c.bf16 %v194_v57, %v192_v56  ;;  %v193_v1 = vld [vmem:[%s1910_s1 + $0x550] sm:$0xff]  ;;  %v68_v2 = vld [vmem:[%s1910_s1 + $0x168] sm:$0xff]  ;;  %v70_v3 = vld [vmem:[%s1910_s1 + $0x178] sm:$0xff]  ;;  %v732_v6 = vpack.c.bf16 %v65_v62, %v63_v61 }
  0x1f   :  { %847 = vmatprep.subr.bf16.mxu0 %v846_v28  ;;  %v196_v4 = vld [vmem:[%s1910_s1 + $0x568] sm:$0xff]  ;;  %v198_v5 = vld [vmem:[%s1910_s1 + $0x578] sm:$0xff]  ;;  %v67_v7 = vld [vmem:[%s1910_s1 + $0x160] sm:$0xff]  ;;  %v860_v8 = vpack.c.bf16 %v193_v1, %v191_v63  ;;  %v734_v9 = vpack.c.bf16 %v70_v3, %v68_v2 }
  0x20   :  { %v69_v10 = vld [vmem:[%s1910_s1 + $0x170] sm:$0xff]  ;;  %v195_v11 = vld [vmem:[%s1910_s1 + $0x560] sm:$0xff]  ;;  %v862_v13 = vpack.c.bf16 %v198_v5, %v196_v4  ;;  %v72_v14 = vld [vmem:[%s1910_s1 + $0x188] sm:$0xff] }
  0x21   :  { %721 = vmatpush1.bf16.msra.mxu1 %v720_v34  ;;  %v197_v12 = vld [vmem:[%s1910_s1 + $0x570] sm:$0xff]  ;;  %v74_v15 = vld [vmem:[%s1910_s1 + $0x198] sm:$0xff]  ;;  %v15_v16 = vld [vmem:[%s1911_s0 + $0x8] sm:$0xff]  ;;  %v736_v20 = vpack.c.bf16 %v69_v10, %v67_v7 }
  0x22   :  { %849 = vmatpush1.bf16.msra.mxu0 %v848_v35  ;;  %723 = vmatprep.subr.bf16.mxu1 %v722_v36  ;;  %v200_v17 = vld [vmem:[%s1910_s1 + $0x588] sm:$0xff]  ;;  %v202_v18 = vld [vmem:[%s1910_s1 + $0x598] sm:$0xff]  ;;  %v864_v21 = vpack.c.bf16 %v197_v12, %v195_v11  ;;  %v738_v22 = vpack.c.bf16 %v74_v15, %v72_v14  ;;  %v71_v23 = vld [vmem:[%s1910_s1 + $0x180] sm:$0xff] }
  0x23   :  { %851 = vmatprep.subr.bf16.mxu0 %v850_v40  ;;  %387 = vmatprep.mubr.f32.mxu1 %v15_v16  ;;  %v19_v19 = vld [vmem:[%s1911_s0 + $0x28] sm:$0xff]  ;;  %v73_v24 = vld [vmem:[%s1910_s1 + $0x190] sm:$0xff]  ;;  %v199_v25 = vld [vmem:[%s1910_s1 + $0x580] sm:$0xff]  ;;  %v866_v26 = vpack.c.bf16 %v202_v18, %v200_v17 }
  0x24   :  { %529 = vmatprep.mubr.f32.mxu0 %v19_v19  ;;  %v201_v27 = vld [vmem:[%s1910_s1 + $0x590] sm:$0xff]  ;;  %v76_v28 = vld [vmem:[%s1910_s1 + $0x1a8] sm:$0xff]  ;;  %v78_v29 = vld [vmem:[%s1910_s1 + $0x1b8] sm:$0xff]  ;;  %v740_v32 = vpack.c.bf16 %v73_v24, %v71_v23 }
  0x25   :  { %725 = vmatpush1.bf16.msra.mxu1 %v724_v46  ;;  %v204_v30 = vld [vmem:[%s1910_s1 + $0x5a8] sm:$0xff]  ;;  %v206_v31 = vld [vmem:[%s1910_s1 + $0x5b8] sm:$0xff]  ;;  %v868_v33 = vpack.c.bf16 %v201_v27, %v199_v25  ;;  %v742_v34 = vpack.c.bf16 %v78_v29, %v76_v28  ;;  %v75_v35 = vld [vmem:[%s1910_s1 + $0x1a0] sm:$0xff] }
  0x26   :  { %853 = vmatpush1.bf16.msra.mxu0 %v852_v47  ;;  %727 = vmatprep.subr.bf16.mxu1 %v726_v48  ;;  %v77_v36 = vld [vmem:[%s1910_s1 + $0x1b0] sm:$0xff]  ;;  %v203_v37 = vld [vmem:[%s1910_s1 + $0x5a0] sm:$0xff]  ;;  %v870_v38 = vpack.c.bf16 %v206_v31, %v204_v30  ;;  %v80_v40 = vld [vmem:[%s1910_s1 + $0x1c8] sm:$0xff] }
  0x27   :  { %855 = vmatprep.subr.bf16.mxu0 %v854_v52  ;;  %v205_v39 = vld [vmem:[%s1910_s1 + $0x5b0] sm:$0xff]  ;;  %v82_v41 = vld [vmem:[%s1910_s1 + $0x1d8] sm:$0xff]  ;;  %v208_v42 = vld [vmem:[%s1910_s1 + $0x5c8] sm:$0xff]  ;;  %v744_v44 = vpack.c.bf16 %v77_v36, %v75_v35 }
  0x28   :  { %v210_v43 = vld [vmem:[%s1910_s1 + $0x5d8] sm:$0xff]  ;;  %v872_v45 = vpack.c.bf16 %v205_v39, %v203_v37  ;;  %v746_v46 = vpack.c.bf16 %v82_v41, %v80_v40  ;;  %v79_v47 = vld [vmem:[%s1910_s1 + $0x1c0] sm:$0xff]  ;;  %v81_v48 = vld [vmem:[%s1910_s1 + $0x1d0] sm:$0xff] }
  0x29   :  { %729 = vmatpush1.bf16.msra.mxu1 %v728_v58  ;;  %v207_v49 = vld [vmem:[%s1910_s1 + $0x5c0] sm:$0xff]  ;;  %v874_v50 = vpack.c.bf16 %v210_v43, %v208_v42  ;;  %v209_v51 = vld [vmem:[%s1910_s1 + $0x5d0] sm:$0xff]  ;;  %v84_v52 = vld [vmem:[%s1910_s1 + $0x1e8] sm:$0xff]  ;;  %v748_v56 = vpack.c.bf16 %v81_v48, %v79_v47 }
  0x2a   :  { %857 = vmatpush1.bf16.msra.mxu0 %v856_v59  ;;  %731 = vmatprep.subr.bf16.mxu1 %v730_v60  ;;  %v86_v53 = vld [vmem:[%s1910_s1 + $0x1f8] sm:$0xff]  ;;  %v212_v54 = vld [vmem:[%s1910_s1 + $0x5e8] sm:$0xff]  ;;  %v876_v57 = vpack.c.bf16 %v209_v51, %v207_v49  ;;  %v83_v59 = vld [vmem:[%s1910_s1 + $0x1e0] sm:$0xff] }
  0x2b   :  { %859 = vmatprep.subr.bf16.mxu0 %v858_v0  ;;  %v214_v55 = vld [vmem:[%s1910_s1 + $0x5f8] sm:$0xff]  ;;  %v750_v58 = vpack.c.bf16 %v86_v53, %v84_v52  ;;  %v85_v60 = vld [vmem:[%s1910_s1 + $0x1f0] sm:$0xff]  ;;  %v211_v61 = vld [vmem:[%s1910_s1 + $0x5e0] sm:$0xff] }
  0x2c   :  { %v878_v62 = vpack.c.bf16 %v214_v55, %v212_v54  ;;  %v213_v63 = vld [vmem:[%s1910_s1 + $0x5f0] sm:$0xff]  ;;  %v88_v0 = vld [vmem:[%s1910_s1 + $0x208] sm:$0xff]  ;;  %v90_v1 = vld [vmem:[%s1910_s1 + $0x218] sm:$0xff]  ;;  %v752_v4 = vpack.c.bf16 %v85_v60, %v83_v59 }
  0x2d   :  { %733 = vmatpush1.bf16.msra.mxu1 %v732_v6  ;;  %v216_v2 = vld [vmem:[%s1910_s1 + $0x608] sm:$0xff]  ;;  %v218_v3 = vld [vmem:[%s1910_s1 + $0x618] sm:$0xff]  ;;  %v880_v5 = vpack.c.bf16 %v213_v63, %v211_v61  ;;  %v754_v6 = vpack.c.bf16 %v90_v1, %v88_v0  ;;  %v87_v7 = vld [vmem:[%s1910_s1 + $0x200] sm:$0xff] }
  0x2e   :  { %861 = vmatpush1.bf16.msra.mxu0 %v860_v8  ;;  %735 = vmatprep.subr.bf16.mxu1 %v734_v9  ;;  %v89_v8 = vld [vmem:[%s1910_s1 + $0x210] sm:$0xff]  ;;  %v215_v9 = vld [vmem:[%s1910_s1 + $0x600] sm:$0xff]  ;;  %v882_v10 = vpack.c.bf16 %v218_v3, %v216_v2  ;;  %v92_v12 = vld [vmem:[%s1910_s1 + $0x228] sm:$0xff] }
  0x2f   :  { %863 = vmatprep.subr.bf16.mxu0 %v862_v13  ;;  %v217_v11 = vld [vmem:[%s1910_s1 + $0x610] sm:$0xff]  ;;  %v94_v13 = vld [vmem:[%s1910_s1 + $0x238] sm:$0xff]  ;;  %v220_v14 = vld [vmem:[%s1910_s1 + $0x628] sm:$0xff]  ;;  %v756_v17 = vpack.c.bf16 %v89_v8, %v87_v7 }
  0x30   :  { %v222_v15 = vld [vmem:[%s1910_s1 + $0x638] sm:$0xff]  ;;  %v14_v16 = vld [vmem:[%s1911_s0] sm:$0xff]  ;;  %v884_v19 = vpack.c.bf16 %v217_v11, %v215_v9  ;;  %v221_v25 = vld [vmem:[%s1910_s1 + $0x630] sm:$0xff] }
  0x31   :  { %737 = vmatpush1.bf16.msra.mxu1 %v736_v20  ;;  %v18_v18 = vld [vmem:[%s1911_s0 + $0x20] sm:$0xff]  ;;  %v758_v20 = vpack.c.bf16 %v94_v13, %v92_v12  ;;  %v886_v24 = vpack.c.bf16 %v222_v15, %v220_v14  ;;  %v98_v27 = vld [vmem:[%s1910_s1 + $0x258] sm:$0xff]  ;;  %v224_v28 = vld [vmem:[%s1910_s1 + $0x648] sm:$0xff] }
  0x32   :  { %865 = vmatpush1.bf16.msra.mxu0 %v864_v21  ;;  %739 = vmatprep.subr.bf16.mxu1 %v738_v22  ;;  %v91_v21 = vld [vmem:[%s1910_s1 + $0x220] sm:$0xff]  ;;  %v93_v22 = vld [vmem:[%s1910_s1 + $0x230] sm:$0xff]  ;;  %v226_v29 = vld [vmem:[%s1910_s1 + $0x658] sm:$0xff] }
  0x33   :  { %867 = vmatprep.subr.bf16.mxu0 %v866_v26  ;;  %v219_v23 = vld [vmem:[%s1910_s1 + $0x620] sm:$0xff]  ;;  %v96_v26 = vld [vmem:[%s1910_s1 + $0x248] sm:$0xff]  ;;  %v760_v30 = vpack.c.bf16 %v93_v22, %v91_v21  ;;  %v890_v36 = vpack.c.bf16 %v226_v29, %v224_v28  ;;  %v225_v37 = vld [vmem:[%s1910_s1 + $0x650] sm:$0xff] }
  0x34   :  { %v888_v31 = vpack.c.bf16 %v221_v25, %v219_v23  ;;  %v223_v35 = vld [vmem:[%s1910_s1 + $0x640] sm:$0xff]  ;;  %v102_v39 = vld [vmem:[%s1910_s1 + $0x278] sm:$0xff]  ;;  %v228_v40 = vld [vmem:[%s1910_s1 + $0x668] sm:$0xff] }
  0x35   :  { %741 = vmatpush1.bf16.msra.mxu1 %v740_v32  ;;  %v762_v32 = vpack.c.bf16 %v98_v27, %v96_v26  ;;  %v230_v41 = vld [vmem:[%s1910_s1 + $0x678] sm:$0xff]  ;;  %v892_v43 = vpack.c.bf16 %v225_v37, %v223_v35  ;;  %v227_v47 = vld [vmem:[%s1910_s1 + $0x660] sm:$0xff]  ;;  %v229_v49 = vld [vmem:[%s1910_s1 + $0x670] sm:$0xff] }
  0x36   :  { %869 = vmatpush1.bf16.msra.mxu0 %v868_v33  ;;  %743 = vmatprep.subr.bf16.mxu1 %v742_v34  ;;  %v95_v33 = vld [vmem:[%s1910_s1 + $0x240] sm:$0xff]  ;;  %v97_v34 = vld [vmem:[%s1910_s1 + $0x250] sm:$0xff]  ;;  %v894_v48 = vpack.c.bf16 %v230_v41, %v228_v40  ;;  %v106_v51 = vld [vmem:[%s1910_s1 + $0x298] sm:$0xff]  ;;  %v896_v55 = vpack.c.bf16 %v229_v49, %v227_v47 }
  0x37   :  { %871 = vmatprep.subr.bf16.mxu0 %v870_v38  ;;  %v100_v38 = vld [vmem:[%s1910_s1 + $0x268] sm:$0xff]  ;;  %v764_v42 = vpack.c.bf16 %v97_v34, %v95_v33  ;;  %v234_v53 = vld [vmem:[%s1910_s1 + $0x698] sm:$0xff]  ;;  %v231_v59 = vld [vmem:[%s1910_s1 + $0x680] sm:$0xff] }
  0x38   :  { %v232_v52 = vld [vmem:[%s1910_s1 + $0x688] sm:$0xff]  ;;  %v233_v61 = vld [vmem:[%s1910_s1 + $0x690] sm:$0xff]  ;;  %v110_v63 = vld [vmem:[%s1910_s1 + $0x2b8] sm:$0xff] }
  0x39   :  { %745 = vmatpush1.bf16.msra.mxu1 %v744_v44  ;;  %v766_v44 = vpack.c.bf16 %v102_v39, %v100_v38  ;;  %v898_v60 = vpack.c.bf16 %v234_v53, %v232_v52  ;;  %v236_v0 = vld [vmem:[%s1910_s1 + $0x6a8] sm:$0xff]  ;;  %v238_v1 = vld [vmem:[%s1910_s1 + $0x6b8] sm:$0xff]  ;;  %v900_v3 = vpack.c.bf16 %v233_v61, %v231_v59  ;;  %v235_v7 = vld [vmem:[%s1910_s1 + $0x6a0] sm:$0xff] }
  0x3a   :  { %873 = vmatpush1.bf16.msra.mxu0 %v872_v45  ;;  %747 = vmatprep.subr.bf16.mxu1 %v746_v46  ;;  %v99_v45 = vld [vmem:[%s1910_s1 + $0x260] sm:$0xff]  ;;  %v101_v46 = vld [vmem:[%s1910_s1 + $0x270] sm:$0xff]  ;;  %v902_v8 = vpack.c.bf16 %v238_v1, %v236_v0  ;;  %v114_v11 = vld [vmem:[%s1910_s1 + $0x2d8] sm:$0xff] }
  0x3b   :  { %875 = vmatprep.subr.bf16.mxu0 %v874_v50  ;;  %v104_v50 = vld [vmem:[%s1910_s1 + $0x288] sm:$0xff]  ;;  %v768_v54 = vpack.c.bf16 %v101_v46, %v99_v45  ;;  %v237_v9 = vld [vmem:[%s1910_s1 + $0x6b0] sm:$0xff]  ;;  %v242_v13 = vld [vmem:[%s1910_s1 + $0x6d8] sm:$0xff] }
  0x3c   :  { %v240_v12 = vld [vmem:[%s1910_s1 + $0x6c8] sm:$0xff]  ;;  %v111_v15 = vld [vmem:[%s1910_s1 + $0x2c0] sm:$0xff]  ;;  %v118_v23 = vld [vmem:[%s1910_s1 + $0x2f8] sm:$0xff] }
  0x3d   :  { %749 = vmatpush1.bf16.msra.mxu1 %v748_v56  ;;  %v770_v56 = vpack.c.bf16 %v106_v51, %v104_v50  ;;  %v906_v21 = vpack.c.bf16 %v242_v13, %v240_v12  ;;  %v116_v22 = vld [vmem:[%s1910_s1 + $0x2e8] sm:$0xff]  ;;  %v246_v26 = vld [vmem:[%s1910_s1 + $0x6f8] sm:$0xff]  ;;  %v243_v33 = vld [vmem:[%s1910_s1 + $0x6e0] sm:$0xff] }
  0x3e   :  { %877 = vmatpush1.bf16.msra.mxu0 %v876_v57  ;;  %751 = vmatprep.subr.bf16.mxu1 %v750_v58  ;;  %v103_v57 = vld [vmem:[%s1910_s1 + $0x280] sm:$0xff]  ;;  %v105_v58 = vld [vmem:[%s1910_s1 + $0x290] sm:$0xff]  ;;  %v244_v25 = vld [vmem:[%s1910_s1 + $0x6e8] sm:$0xff] }
  0x3f   :  { %879 = vmatprep.subr.bf16.mxu0 %v878_v62  ;;  %v108_v62 = vld [vmem:[%s1910_s1 + $0x2a8] sm:$0xff]  ;;  %v772_v2 = vpack.c.bf16 %v105_v58, %v103_v57  ;;  %v21_v27 = vld [vmem:[%s1911_s0 + $0x38] sm:$0xff]  ;;  %v910_v34 = vpack.c.bf16 %v246_v26, %v244_v25  ;;  %v245_v35 = vld [vmem:[%s1910_s1 + $0x6f0] sm:$0xff] }
  0x40   :  { %v122_v37 = vld [vmem:[%s1910_s1 + $0x318] sm:$0xff]  ;;  %v248_v38 = vld [vmem:[%s1910_s1 + $0x708] sm:$0xff]  ;;  %v912_v41 = vpack.c.bf16 %v245_v35, %v243_v33  ;;  %v247_v45 = vld [vmem:[%s1910_s1 + $0x700] sm:$0xff] }
  0x41   :  { %753 = vmatpush1.bf16.msra.mxu1 %v752_v4  ;;  %v774_v4 = vpack.c.bf16 %v110_v63, %v108_v62  ;;  %v250_v39 = vld [vmem:[%s1910_s1 + $0x718] sm:$0xff]  ;;  %v249_v47 = vld [vmem:[%s1910_s1 + $0x710] sm:$0xff]  ;;  %v252_v50 = vld [vmem:[%s1910_s1 + $0x728] sm:$0xff] }
  0x42   :  { %881 = vmatpush1.bf16.msra.mxu0 %v880_v5  ;;  %755 = vmatprep.subr.bf16.mxu1 %v754_v6  ;;  %v107_v5 = vld [vmem:[%s1910_s1 + $0x2a0] sm:$0xff]  ;;  %v109_v6 = vld [vmem:[%s1910_s1 + $0x2b0] sm:$0xff]  ;;  %v914_v46 = vpack.c.bf16 %v250_v39, %v248_v38  ;;  %v126_v49 = vld [vmem:[%s1910_s1 + $0x338] sm:$0xff]  ;;  %v916_v53 = vpack.c.bf16 %v249_v47, %v247_v45 }
  0x43   :  { %883 = vmatprep.subr.bf16.mxu0 %v882_v10  ;;  %v112_v10 = vld [vmem:[%s1910_s1 + $0x2c8] sm:$0xff]  ;;  %v776_v14 = vpack.c.bf16 %v109_v6, %v107_v5  ;;  %v254_v51 = vld [vmem:[%s1910_s1 + $0x738] sm:$0xff]  ;;  %v251_v57 = vld [vmem:[%s1910_s1 + $0x720] sm:$0xff] }
  0x44   :  { %388 = vmatmul.mubr.f32.vlgmr.msra.gmra.mrb[0].mxu1 %v14_v16  ;;  %v904_v16 = vpack.c.bf16 %v237_v9, %v235_v7  ;;  %v918_v58 = vpack.c.bf16 %v254_v51, %v252_v50  ;;  %v253_v59 = vld [vmem:[%s1910_s1 + $0x730] sm:$0xff]  ;;  %v130_v61 = vld [vmem:[%s1910_s1 + $0x358] sm:$0xff]  ;;  %v256_v62 = vld [vmem:[%s1910_s1 + $0x748] sm:$0xff] }
  0x45   :  { %757 = vmatpush1.bf16.msra.mxu1 %v756_v17  ;;  %530 = vmatmul.mubr.f32.vlgmr.msra.gmra.mrb[0].mxu0 %v18_v18  ;;  %v778_v17 = vpack.c.bf16 %v114_v11, %v112_v10  ;;  %v113_v18 = vld [vmem:[%s1910_s1 + $0x2d0] sm:$0xff]  ;;  %v258_v63 = vld [vmem:[%s1910_s1 + $0x758] sm:$0xff]  ;;  %v920_v1 = vpack.c.bf16 %v253_v59, %v251_v57  ;;  %v255_v5 = vld [vmem:[%s1910_s1 + $0x740] sm:$0xff] }
  0x46   :  { %885 = vmatpush1.bf16.msra.mxu0 %v884_v19  ;;  %759 = vmatprep.subr.bf16.mxu1 %v758_v20  ;;  %v239_v19 = vld [vmem:[%s1910_s1 + $0x6c0] sm:$0xff]  ;;  %v241_v20 = vld [vmem:[%s1910_s1 + $0x6d0] sm:$0xff]  ;;  %v780_v28 = vpack.c.bf16 %v113_v18, %v111_v15  ;;  %v922_v6 = vpack.c.bf16 %v258_v63, %v256_v62  ;;  %v134_v9 = vld [vmem:[%s1910_s1 + $0x378] sm:$0xff] }
  0x47   :  { %887 = vmatprep.subr.bf16.mxu0 %v886_v24  ;;  %v17_v24 = vld [vmem:[%s1911_s0 + $0x18] sm:$0xff]  ;;  %600 = vmatprep.mubr.f32.mxu0 %v21_v27  ;;  %v908_v29 = vpack.c.bf16 %v241_v20, %v239_v19  ;;  %v257_v7 = vld [vmem:[%s1910_s1 + $0x750] sm:$0xff]  ;;  %v260_v10 = vld [vmem:[%s1910_s1 + $0x768] sm:$0xff] }
  0x48   :  { %458 = vmatprep.mubr.f32.mxu1 %v17_v24  ;;  %v262_v11 = vld [vmem:[%s1910_s1 + $0x778] sm:$0xff]  ;;  %v924_v13 = vpack.c.bf16 %v257_v7, %v255_v5  ;;  %v131_v15 = vld [vmem:[%s1910_s1 + $0x360] sm:$0xff]  ;;  %v261_v19 = vld [vmem:[%s1910_s1 + $0x770] sm:$0xff] }
  0x49   :  { %761 = vmatpush1.bf16.msra.mxu1 %v760_v30  ;;  %v782_v30 = vpack.c.bf16 %v118_v23, %v116_v22  ;;  %v926_v18 = vpack.c.bf16 %v262_v11, %v260_v10  ;;  %v136_v20 = vld [vmem:[%s1910_s1 + $0x388] sm:$0xff]  ;;  %v266_v23 = vld [vmem:[%s1910_s1 + $0x798] sm:$0xff]  ;;  %v135_v27 = vld [vmem:[%s1910_s1 + $0x380] sm:$0xff] }
  0x4a   :  { %889 = vmatpush1.bf16.msra.mxu0 %v888_v31  ;;  %763 = vmatprep.subr.bf16.mxu1 %v762_v32  ;;  %v115_v31 = vld [vmem:[%s1910_s1 + $0x2e0] sm:$0xff]  ;;  %v117_v32 = vld [vmem:[%s1910_s1 + $0x2f0] sm:$0xff]  ;;  %v264_v22 = vld [vmem:[%s1910_s1 + $0x788] sm:$0xff] }
  0x4b   :  { %891 = vmatprep.subr.bf16.mxu0 %v890_v36  ;;  %v120_v36 = vld [vmem:[%s1910_s1 + $0x308] sm:$0xff]  ;;  %v784_v40 = vpack.c.bf16 %v117_v32, %v115_v31  ;;  %v265_v31 = vld [vmem:[%s1910_s1 + $0x790] sm:$0xff]  ;;  %v142_v33 = vld [vmem:[%s1910_s1 + $0x3b8] sm:$0xff] }
  0x4c   :  { %v140_v32 = vld [vmem:[%s1910_s1 + $0x3a8] sm:$0xff]  ;;  %v270_v35 = vld [vmem:[%s1910_s1 + $0x7b8] sm:$0xff]  ;;  %v139_v39 = vld [vmem:[%s1910_s1 + $0x3a0] sm:$0xff] }
  0x4d   :  { %765 = vmatpush1.bf16.msra.mxu1 %v764_v42  ;;  %v786_v42 = vpack.c.bf16 %v122_v37, %v120_v36  ;;  %v806_v38 = vpack.c.bf16 %v142_v33, %v140_v32  ;;  %v146_v45 = vld [vmem:[%s1910_s1 + $0x3d8] sm:$0xff]  ;;  %v143_v51 = vld [vmem:[%s1910_s1 + $0x3c0] sm:$0xff]  ;;  %v281_v10 = vld [vmem:[%s1910_s1 + $0x810] sm:$0xff] }
  0x4e   :  { %893 = vmatpush1.bf16.msra.mxu0 %v892_v43  ;;  %767 = vmatprep.subr.bf16.mxu1 %v766_v44  ;;  %v119_v43 = vld [vmem:[%s1910_s1 + $0x300] sm:$0xff]  ;;  %v121_v44 = vld [vmem:[%s1910_s1 + $0x310] sm:$0xff]  ;;  %v274_v47 = vld [vmem:[%s1910_s1 + $0x7d8] sm:$0xff] }
  0x4f   :  { %895 = vmatprep.subr.bf16.mxu0 %v894_v48  ;;  %v124_v48 = vld [vmem:[%s1910_s1 + $0x328] sm:$0xff]  ;;  %v788_v52 = vpack.c.bf16 %v121_v44, %v119_v43  ;;  %v269_v43 = vld [vmem:[%s1910_s1 + $0x7b0] sm:$0xff]  ;;  %v150_v57 = vld [vmem:[%s1910_s1 + $0x3f8] sm:$0xff] }
  0x50   :  { %v144_v44 = vld [vmem:[%s1910_s1 + $0x3c8] sm:$0xff]  ;;  %v278_v59 = vld [vmem:[%s1910_s1 + $0x7f8] sm:$0xff]  ;;  %v147_v63 = vld [vmem:[%s1910_s1 + $0x3e0] sm:$0xff] }
  0x51   :  { %769 = vmatpush1.bf16.msra.mxu1 %v768_v54  ;;  %v790_v54 = vpack.c.bf16 %v126_v49, %v124_v48  ;;  %v810_v50 = vpack.c.bf16 %v146_v45, %v144_v44  ;;  %v282_v5 = vld [vmem:[%s1910_s1 + $0x818] sm:$0xff]  ;;  %v284_v11 = vld [vmem:[%s1910_s1 + $0x828] sm:$0xff] }
  0x52   :  { %897 = vmatpush1.bf16.msra.mxu0 %v896_v55  ;;  %771 = vmatprep.subr.bf16.mxu1 %v770_v56  ;;  %v123_v55 = vld [vmem:[%s1910_s1 + $0x320] sm:$0xff]  ;;  %v125_v56 = vld [vmem:[%s1910_s1 + $0x330] sm:$0xff]  ;;  %v296_v32 = vld [vmem:[%s1910_s1 + $0x888] sm:$0xff] }
  0x53   :  { %899 = vmatprep.subr.bf16.mxu0 %v898_v60  ;;  %v128_v60 = vld [vmem:[%s1910_s1 + $0x348] sm:$0xff]  ;;  %v792_v0 = vpack.c.bf16 %v125_v56, %v123_v55  ;;  %v273_v55 = vld [vmem:[%s1910_s1 + $0x7d0] sm:$0xff]  ;;  %v298_v33 = vld [vmem:[%s1910_s1 + $0x898] sm:$0xff] }
  0x54   :  { %v148_v56 = vld [vmem:[%s1910_s1 + $0x3e8] sm:$0xff]  ;;  %v306_v45 = vld [vmem:[%s1910_s1 + $0x8d8] sm:$0xff] }
  0x55   :  { %773 = vmatpush1.bf16.msra.mxu1 %v772_v2  ;;  %v794_v2 = vpack.c.bf16 %v130_v61, %v128_v60  ;;  %v814_v62 = vpack.c.bf16 %v150_v57, %v148_v56  ;;  %v304_v44 = vld [vmem:[%s1910_s1 + $0x8c8] sm:$0xff]  ;;  %v22_v57 = vld [vmem:[%s1911_s0 + $0x40] sm:$0xff] }
  0x56   :  { %901 = vmatpush1.bf16.msra.mxu0 %v900_v3  ;;  %775 = vmatprep.subr.bf16.mxu1 %v774_v4  ;;  %v127_v3 = vld [vmem:[%s1910_s1 + $0x340] sm:$0xff]  ;;  %v129_v4 = vld [vmem:[%s1910_s1 + $0x350] sm:$0xff] }
  0x57   :  { %903 = vmatprep.subr.bf16.mxu0 %v902_v8  ;;  %v132_v8 = vld [vmem:[%s1910_s1 + $0x368] sm:$0xff]  ;;  %v796_v12 = vpack.c.bf16 %v129_v4, %v127_v3  ;;  %v277_v3 = vld [vmem:[%s1910_s1 + $0x7f0] sm:$0xff] }
  0x58   :  { %v280_v4 = vld [vmem:[%s1910_s1 + $0x808] sm:$0xff] }
  0x59   :  { %777 = vmatpush1.bf16.msra.mxu1 %v776_v14  ;;  %v798_v14 = vpack.c.bf16 %v134_v9, %v132_v8  ;;  %v946_v8 = vpack.c.bf16 %v282_v5, %v280_v4  ;;  %v279_v9 = vld [vmem:[%s1910_s1 + $0x800] sm:$0xff] }
  0x5a   :  { %905 = vmatpush1.bf16.msra.mxu0 %v904_v16  ;;  %779 = vmatprep.subr.bf16.mxu1 %v778_v17  ;;  %v133_v16 = vld [vmem:[%s1910_s1 + $0x370] sm:$0xff]  ;;  %v259_v17 = vld [vmem:[%s1910_s1 + $0x760] sm:$0xff] }
  0x5b   :  { %907 = vmatprep.subr.bf16.mxu0 %v906_v21  ;;  %v138_v21 = vld [vmem:[%s1910_s1 + $0x398] sm:$0xff]  ;;  %v800_v24 = vpack.c.bf16 %v133_v16, %v131_v15  ;;  %v928_v25 = vpack.c.bf16 %v261_v19, %v259_v17  ;;  %v948_v15 = vpack.c.bf16 %v281_v10, %v279_v9  ;;  %v283_v17 = vld [vmem:[%s1910_s1 + $0x820] sm:$0xff]  ;;  %v288_v19 = vld [vmem:[%s1910_s1 + $0x848] sm:$0xff] }
  0x5c   :  { %v802_v26 = vpack.c.bf16 %v138_v21, %v136_v20  ;;  %v290_v20 = vld [vmem:[%s1910_s1 + $0x858] sm:$0xff] }
  0x5d   :  { %781 = vmatpush1.bf16.msra.mxu1 %v780_v28  ;;  %v137_v28 = vld [vmem:[%s1910_s1 + $0x390] sm:$0xff] }
  0x5e   :  { %909 = vmatpush1.bf16.msra.mxu0 %v908_v29  ;;  %783 = vmatprep.subr.bf16.mxu1 %v782_v30  ;;  %v263_v29 = vld [vmem:[%s1910_s1 + $0x780] sm:$0xff]  ;;  %v930_v30 = vpack.c.bf16 %v266_v23, %v264_v22  ;;  %v804_v36 = vpack.c.bf16 %v137_v28, %v135_v27  ;;  %v989_v22 = vmov 0.0   ;;  %v954_v23 = vpack.c.bf16 %v290_v20, %v288_v19  ;;  %v294_v27 = vld [vmem:[%s1910_s1 + $0x878] sm:$0xff] }
  0x5f   :  { %911 = vmatprep.subr.bf16.mxu0 %v910_v34  ;;  %v268_v34 = vld [vmem:[%s1910_s1 + $0x7a8] sm:$0xff]  ;;  %v932_v37 = vpack.c.bf16 %v265_v31, %v263_v29  ;;  %v293_v31 = vld [vmem:[%s1910_s1 + $0x870] sm:$0xff] }
  0x61   :  { %785 = vmatpush1.bf16.msra.mxu1 %v784_v40  ;;  %v141_v40 = vld [vmem:[%s1910_s1 + $0x3b0] sm:$0xff] }
  0x62   :  { %913 = vmatpush1.bf16.msra.mxu0 %v912_v41  ;;  %787 = vmatprep.subr.bf16.mxu1 %v786_v42  ;;  %v267_v41 = vld [vmem:[%s1910_s1 + $0x7a0] sm:$0xff]  ;;  %v934_v42 = vpack.c.bf16 %v270_v35, %v268_v34  ;;  %v808_v48 = vpack.c.bf16 %v141_v40, %v139_v39  ;;  %v962_v35 = vpack.c.bf16 %v298_v33, %v296_v32  ;;  %v302_v39 = vld [vmem:[%s1910_s1 + $0x8b8] sm:$0xff] }
  0x63   :  { %915 = vmatprep.subr.bf16.mxu0 %v914_v46  ;;  %v272_v46 = vld [vmem:[%s1910_s1 + $0x7c8] sm:$0xff]  ;;  %v936_v49 = vpack.c.bf16 %v269_v43, %v267_v41  ;;  %v301_v43 = vld [vmem:[%s1910_s1 + $0x8b0] sm:$0xff] }
  0x65   :  { %789 = vmatpush1.bf16.msra.mxu1 %v788_v52  ;;  %v145_v52 = vld [vmem:[%s1910_s1 + $0x3d0] sm:$0xff] }
  0x66   :  { %917 = vmatpush1.bf16.msra.mxu0 %v916_v53  ;;  %791 = vmatprep.subr.bf16.mxu1 %v790_v54  ;;  %v271_v53 = vld [vmem:[%s1910_s1 + $0x7c0] sm:$0xff]  ;;  %v938_v54 = vpack.c.bf16 %v274_v47, %v272_v46  ;;  %v812_v60 = vpack.c.bf16 %v145_v52, %v143_v51  ;;  %v970_v47 = vpack.c.bf16 %v306_v45, %v304_v44  ;;  %v310_v51 = vld [vmem:[%s1910_s1 + $0x8f8] sm:$0xff] }
  0x67   :  { %919 = vmatprep.subr.bf16.mxu0 %v918_v58  ;;  %v276_v58 = vld [vmem:[%s1910_s1 + $0x7e8] sm:$0xff]  ;;  %v940_v61 = vpack.c.bf16 %v273_v55, %v271_v53  ;;  %v309_v55 = vld [vmem:[%s1910_s1 + $0x8f0] sm:$0xff] }
  0x69   :  { %793 = vmatpush1.bf16.msra.mxu1 %v792_v0  ;;  %v149_v0 = vld [vmem:[%s1910_s1 + $0x3f0] sm:$0xff] }
  0x6a   :  { %921 = vmatpush1.bf16.msra.mxu0 %v920_v1  ;;  %795 = vmatprep.subr.bf16.mxu1 %v794_v2  ;;  %v942_v1 = vpack.c.bf16 %v278_v59, %v276_v58  ;;  %v275_v2 = vld [vmem:[%s1910_s1 + $0x7e0] sm:$0xff] }
  0x6b   :  { %923 = vmatprep.subr.bf16.mxu0 %v922_v6  ;;  %v816_v6 = vpack.c.bf16 %v149_v0, %v147_v63  ;;  %v944_v7 = vpack.c.bf16 %v277_v3, %v275_v2  ;;  %v311_v63 = vld [vmem:[%s1912_s2] sm:$0x3] }
  0x6d   :  { %797 = vmatpush1.bf16.msra.mxu1 %v796_v12  ;;  %v286_v12 = vld [vmem:[%s1910_s1 + $0x838] sm:$0xff] }
  0x6e   :  { %925 = vmatpush1.bf16.msra.mxu0 %v924_v13  ;;  %799 = vmatprep.subr.bf16.mxu1 %v798_v14  ;;  %v16_v13 = vld [vmem:[%s1911_s0 + $0x10] sm:$0xff]  ;;  %v950_v16 = vpack.c.bf16 %v286_v12, %v284_v11 }
  0x6f   :  { %927 = vmatprep.subr.bf16.mxu0 %v926_v18  ;;  %v20_v14 = vld [vmem:[%s1911_s0 + $0x30] sm:$0xff] }
  0x70   :  { %v285_v18 = vld [vmem:[%s1910_s1 + $0x830] sm:$0xff] }
  0x71   :  { %801 = vmatpush1.bf16.msra.mxu1 %v800_v24  ;;  %v952_v21 = vpack.c.bf16 %v285_v18, %v283_v17  ;;  %v287_v24 = vld [vmem:[%s1910_s1 + $0x840] sm:$0xff] }
  0x72   :  { %929 = vmatpush1.bf16.msra.mxu0 %v928_v25  ;;  %803 = vmatprep.subr.bf16.mxu1 %v802_v26  ;;  %v289_v25 = vld [vmem:[%s1910_s1 + $0x850] sm:$0xff]  ;;  %v292_v26 = vld [vmem:[%s1910_s1 + $0x868] sm:$0xff] }
  0x73   :  { %931 = vmatprep.subr.bf16.mxu0 %v930_v30  ;;  %v956_v28 = vpack.c.bf16 %v289_v25, %v287_v24  ;;  %v958_v29 = vpack.c.bf16 %v294_v27, %v292_v26  ;;  %v291_v30 = vld [vmem:[%s1910_s1 + $0x860] sm:$0xff] }
  0x74   :  { %v960_v34 = vpack.c.bf16 %v293_v31, %v291_v30 }
  0x75   :  { %805 = vmatpush1.bf16.msra.mxu1 %v804_v36  ;;  %v295_v36 = vld [vmem:[%s1910_s1 + $0x880] sm:$0xff] }
  0x76   :  { %933 = vmatpush1.bf16.msra.mxu0 %v932_v37  ;;  %807 = vmatprep.subr.bf16.mxu1 %v806_v38  ;;  %v297_v37 = vld [vmem:[%s1910_s1 + $0x890] sm:$0xff]  ;;  %v300_v38 = vld [vmem:[%s1910_s1 + $0x8a8] sm:$0xff] }
  0x77   :  { %935 = vmatprep.subr.bf16.mxu0 %v934_v42  ;;  %v964_v40 = vpack.c.bf16 %v297_v37, %v295_v36  ;;  %v966_v41 = vpack.c.bf16 %v302_v39, %v300_v38  ;;  %v299_v42 = vld [vmem:[%s1910_s1 + $0x8a0] sm:$0xff] }
  0x78   :  { %v968_v46 = vpack.c.bf16 %v301_v43, %v299_v42 }
  0x79   :  { %809 = vmatpush1.bf16.msra.mxu1 %v808_v48  ;;  %v303_v48 = vld [vmem:[%s1910_s1 + $0x8c0] sm:$0xff] }
  0x7a   :  { %937 = vmatpush1.bf16.msra.mxu0 %v936_v49  ;;  %811 = vmatprep.subr.bf16.mxu1 %v810_v50  ;;  %v305_v49 = vld [vmem:[%s1910_s1 + $0x8d0] sm:$0xff]  ;;  %v308_v50 = vld [vmem:[%s1910_s1 + $0x8e8] sm:$0xff] }
  0x7b   :  { %939 = vmatprep.subr.bf16.mxu0 %v938_v54  ;;  %v972_v52 = vpack.c.bf16 %v305_v49, %v303_v48  ;;  %v974_v53 = vpack.c.bf16 %v310_v51, %v308_v50  ;;  %v307_v54 = vld [vmem:[%s1910_s1 + $0x8e0] sm:$0xff] }
  0x7c   :  { %v976_v56 = vpack.c.bf16 %v309_v55, %v307_v54 }
  0x7d   :  { %813 = vmatpush1.bf16.msra.mxu1 %v812_v60  ;;  %v313_v60 = vlaneseq }
  0x7e   :  { %941 = vmatpush1.bf16.msra.mxu0 %v940_v61  ;;  %815 = vmatprep.subr.bf16.mxu1 %v814_v62 }
  0x7f   :  { %943 = vmatprep.subr.bf16.mxu0 %v942_v1  ;;  %v314_v61 = vshrl.u32 %v313_v60, 7 }
  0x81   :  { %817 = vmatpush1.bf16.msra.mxu1 %v816_v6  ;;  %v315_v62 = vsub.s32 0, %v314_v61  ;;  %v319_v0 = vsub.s32 1, %v314_v61 }
  0x82   :  { %945 = vmatpush1.bf16.msra.mxu0 %v944_v7 }
  0x83   :  { %947 = vmatprep.subr.bf16.mxu0 %v946_v8  ;;  %v316_v1 = vrot.slane %v311_v63, %v315_v62  ;;  %v320_v2 = vrot.slane %v311_v63, %v319_v0 }
  0x84   :  { %459 = vmatmul.mubr.f32.vlgmr.msra.gmra.mrb[0].mxu1 %v16_v13 }
  0x85   :  { %601 = vmatmul.mubr.f32.vlgmr.msra.gmra.mrb[0].mxu0 %v20_v14 }
  0x86   :  { %949 = vmatpush1.bf16.msra.mxu0 %v948_v15  ;;  %671 = vmatprep.mubr.f32.mxu0 %v989_v22 }
  0x87   :  { %951 = vmatprep.subr.bf16.mxu0 %v950_v16 }
  0x8a   :  { %953 = vmatpush1.bf16.msra.mxu0 %v952_v21 }
  0x8b   :  { %955 = vmatprep.subr.bf16.mxu0 %v954_v23 }
  0x8e   :  { %957 = vmatpush1.bf16.msra.mxu0 %v956_v28 }
  0x8f   :  { %959 = vmatprep.subr.bf16.mxu0 %v958_v29 }
  0x92   :  { %961 = vmatpush1.bf16.msra.mxu0 %v960_v34 }
  0x93   :  { %963 = vmatprep.subr.bf16.mxu0 %v962_v35 }
  0x96   :  { %965 = vmatpush1.bf16.msra.mxu0 %v964_v40 }
  0x97   :  { %967 = vmatprep.subr.bf16.mxu0 %v966_v41 }
  0x9a   :  { %969 = vmatpush1.bf16.msra.mxu0 %v968_v46 }
  0x9b   :  { %971 = vmatprep.subr.bf16.mxu0 %v970_v47 }
  0x9e   :  { %973 = vmatpush1.bf16.msra.mxu0 %v972_v52 }
  0x9f   :  { %975 = vmatprep.subr.bf16.mxu0 %v974_v53 }
  0xa2   :  { %977 = vmatpush1.bf16.msra.mxu0 %v976_v56 }
  0xa5   :  { %672 = vmatmul.mubr.f32.vlgmr.msra.gmra.mrb[0].mxu0 %v22_v57 }
 0x157   :  { %v460_v58 = vpop.f32.mrb[0].mxu1 }
 0x158   :  { %v462_v59 = vpop.f32.mrb[1].mxu1  ;;  %v978_v3 = vadd.f32 %v460_v58, %v316_v1 }
 0x159   :  { %v980_v4 = vadd.f32 %v462_v59, %v320_v2 }
 0x178   :  { %v673_v5 = vpop.f32.mrb[0].mxu0 }
 0x179   :  { %v979_v6 = vadd.f32 %v978_v3, %v673_v5  ;;  %v675_v7 = vpop.f32.mrb[1].mxu0 }
 0x17a   :  { %v981_v8 = vadd.f32 %v980_v4, %v675_v7 }
 0x17b   :  { %vm678_vm0 = vcmp.gt.f32.partialorder %v979_v6, 0.0  ;;  %v680_v9 = vmul.f32 0.1, %v979_v6 }
 0x17c   :  { %vm679_vm1 = vcmp.gt.f32.partialorder %v981_v8, 0.0  ;;  %v681_v10 = vmul.f32 0.1, %v981_v8 }
 0x17d   :  { %v682_v11 = vsel %vm678_vm0, %v979_v6, %v680_v9 }
 0x17e   :  { %684 = vst [vmem:[%s1913_s3] sm:$0xff] %v682_v11  ;;  %v683_v12 = vsel %vm679_vm1, %v981_v8, %v681_v10 }
 0x17f   :  { %685 = vst [vmem:[%s1913_s3 + $0x8] sm:$0xff] %v683_v12 }

// kernel: encoder_forward.7
= control target key start
LH: loop header
LB: loop body
LE: loop exit
PB: predicated region body
PF: predicated region fallthrough
CT: control target
= control target key end

     0   :  { %s7394_s1 = inlined_call_operand.vmem [shape: f32[2304,512], index: 1, kind: input, shape index: {}]   ;;  %s7395_s0 = inlined_call_operand.vmem [shape: f32[2,2304], index: 0, kind: input, shape index: {}]   ;;  %s7396_s2 = inlined_call_operand.vmem [shape: f32[1,512], index: 2, kind: input, shape index: {}]   ;;  %s7397_s3 = inlined_call_operand.vmem [shape: f32[2,512], index: 3, kind: output, shape index: {}]  }
   0x1   :  { %v20_v0 = vld [vmem:[%s7394_s1 + $0x8] sm:$0xff]  ;;  %v22_v2 = vld [vmem:[%s7394_s1 + $0x18] sm:$0xff]  ;;  %v19_v5 = vld [vmem:[%s7394_s1] sm:$0xff] }
   0x2   :  { %v24_v1 = vld [vmem:[%s7394_s1 + $0x28] sm:$0xff]  ;;  %v26_v4 = vld [vmem:[%s7394_s1 + $0x38] sm:$0xff]  ;;  %v23_v6 = vld [vmem:[%s7394_s1 + $0x20] sm:$0xff] }
   0x3   :  { %v2610_v3 = vpack.c.bf16 %v24_v1, %v20_v0  ;;  %v3186_v7 = vpack.c.bf16 %v26_v4, %v22_v2  ;;  %v2612_v8 = vpack.c.bf16 %v23_v6, %v19_v5  ;;  %v21_v9 = vld [vmem:[%s7394_s1 + $0x10] sm:$0xff]  ;;  %v28_v11 = vld [vmem:[%s7394_s1 + $0x48] sm:$0xff]  ;;  %v30_v14 = vld [vmem:[%s7394_s1 + $0x58] sm:$0xff] }
   0x4   :  { %v25_v10 = vld [vmem:[%s7394_s1 + $0x30] sm:$0xff]  ;;  %v32_v13 = vld [vmem:[%s7394_s1 + $0x68] sm:$0xff]  ;;  %v34_v15 = vld [vmem:[%s7394_s1 + $0x78] sm:$0xff] }
   0x5   :  { %2611 = vmatprep.subr.bf16.mxu0 %v2610_v3  ;;  %v3188_v12 = vpack.c.bf16 %v25_v10, %v21_v9  ;;  %3187 = vmatprep.subr.bf16.mxu1 %v3186_v7  ;;  %v2614_v16 = vpack.c.bf16 %v32_v13, %v28_v11  ;;  %v3190_v17 = vpack.c.bf16 %v34_v15, %v30_v14  ;;  %v27_v18 = vld [vmem:[%s7394_s1 + $0x40] sm:$0xff]  ;;  %v29_v20 = vld [vmem:[%s7394_s1 + $0x50] sm:$0xff]  ;;  %v36_v23 = vld [vmem:[%s7394_s1 + $0x88] sm:$0xff] }
   0x6   :  { %2613 = vmatpush1.bf16.msra.mxu0 %v2612_v8  ;;  %v31_v19 = vld [vmem:[%s7394_s1 + $0x60] sm:$0xff]  ;;  %v33_v22 = vld [vmem:[%s7394_s1 + $0x70] sm:$0xff]  ;;  %v40_v24 = vld [vmem:[%s7394_s1 + $0xa8] sm:$0xff] }
   0x7   :  { %3189 = vmatpush1.bf16.msra.mxu1 %v3188_v12  ;;  %v2616_v21 = vpack.c.bf16 %v31_v19, %v27_v18  ;;  %2615 = vmatprep.subr.bf16.mxu0 %v2614_v16  ;;  %v3192_v25 = vpack.c.bf16 %v33_v22, %v29_v20  ;;  %v2618_v26 = vpack.c.bf16 %v40_v24, %v36_v23  ;;  %v38_v27 = vld [vmem:[%s7394_s1 + $0x98] sm:$0xff]  ;;  %v35_v29 = vld [vmem:[%s7394_s1 + $0x80] sm:$0xff]  ;;  %v37_v32 = vld [vmem:[%s7394_s1 + $0x90] sm:$0xff] }
   0x8   :  { %3191 = vmatprep.subr.bf16.mxu1 %v3190_v17  ;;  %v42_v28 = vld [vmem:[%s7394_s1 + $0xb8] sm:$0xff]  ;;  %v39_v31 = vld [vmem:[%s7394_s1 + $0xa0] sm:$0xff]  ;;  %v41_v33 = vld [vmem:[%s7394_s1 + $0xb0] sm:$0xff] }
   0x9   :  { %v3194_v30 = vpack.c.bf16 %v42_v28, %v38_v27  ;;  %v2620_v34 = vpack.c.bf16 %v39_v31, %v35_v29  ;;  %v44_v35 = vld [vmem:[%s7394_s1 + $0xc8] sm:$0xff]  ;;  %v46_v37 = vld [vmem:[%s7394_s1 + $0xd8] sm:$0xff]  ;;  %v3196_v38 = vpack.c.bf16 %v41_v33, %v37_v32  ;;  %v43_v41 = vld [vmem:[%s7394_s1 + $0xc0] sm:$0xff] }
   0xa   :  { %2617 = vmatpush1.bf16.msra.mxu0 %v2616_v21  ;;  %v48_v36 = vld [vmem:[%s7394_s1 + $0xe8] sm:$0xff]  ;;  %v50_v40 = vld [vmem:[%s7394_s1 + $0xf8] sm:$0xff]  ;;  %v47_v42 = vld [vmem:[%s7394_s1 + $0xe0] sm:$0xff] }
   0xb   :  { %3193 = vmatpush1.bf16.msra.mxu1 %v3192_v25  ;;  %2619 = vmatprep.subr.bf16.mxu0 %v2618_v26  ;;  %v2622_v39 = vpack.c.bf16 %v48_v36, %v44_v35  ;;  %v3198_v43 = vpack.c.bf16 %v50_v40, %v46_v37  ;;  %v45_v44 = vld [vmem:[%s7394_s1 + $0xd0] sm:$0xff]  ;;  %v52_v46 = vld [vmem:[%s7394_s1 + $0x108] sm:$0xff]  ;;  %v54_v48 = vld [vmem:[%s7394_s1 + $0x118] sm:$0xff]  ;;  %v2624_v50 = vpack.c.bf16 %v47_v42, %v43_v41 }
   0xc   :  { %3195 = vmatprep.subr.bf16.mxu1 %v3194_v30  ;;  %v49_v45 = vld [vmem:[%s7394_s1 + $0xf0] sm:$0xff]  ;;  %v56_v47 = vld [vmem:[%s7394_s1 + $0x128] sm:$0xff]  ;;  %v58_v49 = vld [vmem:[%s7394_s1 + $0x138] sm:$0xff] }
   0xd   :  { %v3200_v51 = vpack.c.bf16 %v49_v45, %v45_v44  ;;  %v2626_v52 = vpack.c.bf16 %v56_v47, %v52_v46  ;;  %v51_v53 = vld [vmem:[%s7394_s1 + $0x100] sm:$0xff]  ;;  %v53_v55 = vld [vmem:[%s7394_s1 + $0x110] sm:$0xff]  ;;  %v3202_v56 = vpack.c.bf16 %v58_v49, %v54_v48  ;;  %v60_v58 = vld [vmem:[%s7394_s1 + $0x148] sm:$0xff]  ;;  %v1173_v46 = vlaneseq }
   0xe   :  { %2621 = vmatpush1.bf16.msra.mxu0 %v2620_v34  ;;  %v55_v54 = vld [vmem:[%s7394_s1 + $0x120] sm:$0xff]  ;;  %v57_v57 = vld [vmem:[%s7394_s1 + $0x130] sm:$0xff]  ;;  %v64_v59 = vld [vmem:[%s7394_s1 + $0x168] sm:$0xff]  ;;  %v3803_v47 = vmov 1983009808  }
   0xf   :  { %3197 = vmatpush1.bf16.msra.mxu1 %v3196_v38  ;;  %2623 = vmatprep.subr.bf16.mxu0 %v2622_v39  ;;  %v62_v60 = vld [vmem:[%s7394_s1 + $0x158] sm:$0xff]  ;;  %v2628_v62 = vpack.c.bf16 %v55_v54, %v51_v53  ;;  %v3204_v63 = vpack.c.bf16 %v57_v57, %v53_v55  ;;  %v2630_v0 = vpack.c.bf16 %v64_v59, %v60_v58  ;;  %v59_v1 = vld [vmem:[%s7394_s1 + $0x140] sm:$0xff]  ;;  %v61_v3 = vld [vmem:[%s7394_s1 + $0x150] sm:$0xff]  ;;  %v1200_v48 = vunpack.c.l.s4 %v3803_v47 }
  0x10   :  { %3199 = vmatprep.subr.bf16.mxu1 %v3198_v43  ;;  %v66_v61 = vld [vmem:[%s7394_s1 + $0x178] sm:$0xff]  ;;  %v63_v2 = vld [vmem:[%s7394_s1 + $0x160] sm:$0xff]  ;;  %v65_v5 = vld [vmem:[%s7394_s1 + $0x170] sm:$0xff] }
  0x11   :  { %v3206_v4 = vpack.c.bf16 %v66_v61, %v62_v60  ;;  %v68_v6 = vld [vmem:[%s7394_s1 + $0x188] sm:$0xff]  ;;  %v70_v8 = vld [vmem:[%s7394_s1 + $0x198] sm:$0xff]  ;;  %v2632_v10 = vpack.c.bf16 %v63_v2, %v59_v1  ;;  %v3208_v11 = vpack.c.bf16 %v65_v5, %v61_v3  ;;  %v67_v13 = vld [vmem:[%s7394_s1 + $0x180] sm:$0xff]  ;;  %v4076_v61 = vshrl.u32 %v1173_v46, 7 }
  0x12   :  { %2625 = vmatpush1.bf16.msra.mxu0 %v2624_v50  ;;  %v72_v7 = vld [vmem:[%s7394_s1 + $0x1a8] sm:$0xff]  ;;  %v74_v9 = vld [vmem:[%s7394_s1 + $0x1b8] sm:$0xff]  ;;  %v71_v14 = vld [vmem:[%s7394_s1 + $0x1a0] sm:$0xff] }
  0x13   :  { %3201 = vmatpush1.bf16.msra.mxu1 %v3200_v51  ;;  %2627 = vmatprep.subr.bf16.mxu0 %v2626_v52  ;;  %v2634_v12 = vpack.c.bf16 %v72_v7, %v68_v6  ;;  %v69_v15 = vld [vmem:[%s7394_s1 + $0x190] sm:$0xff]  ;;  %v3210_v16 = vpack.c.bf16 %v74_v9, %v70_v8  ;;  %v76_v18 = vld [vmem:[%s7394_s1 + $0x1c8] sm:$0xff]  ;;  %v78_v20 = vld [vmem:[%s7394_s1 + $0x1d8] sm:$0xff]  ;;  %v2636_v22 = vpack.c.bf16 %v71_v14, %v67_v13 }
  0x14   :  { %3203 = vmatprep.subr.bf16.mxu1 %v3202_v56  ;;  %v73_v17 = vld [vmem:[%s7394_s1 + $0x1b0] sm:$0xff]  ;;  %v80_v19 = vld [vmem:[%s7394_s1 + $0x1e8] sm:$0xff]  ;;  %v82_v21 = vld [vmem:[%s7394_s1 + $0x1f8] sm:$0xff] }
  0x15   :  { %v3212_v23 = vpack.c.bf16 %v73_v17, %v69_v15  ;;  %v2638_v24 = vpack.c.bf16 %v80_v19, %v76_v18  ;;  %v75_v25 = vld [vmem:[%s7394_s1 + $0x1c0] sm:$0xff]  ;;  %v77_v27 = vld [vmem:[%s7394_s1 + $0x1d0] sm:$0xff]  ;;  %v3214_v28 = vpack.c.bf16 %v82_v21, %v78_v20  ;;  %v84_v30 = vld [vmem:[%s7394_s1 + $0x208] sm:$0xff] }
  0x16   :  { %2629 = vmatpush1.bf16.msra.mxu0 %v2628_v62  ;;  %v79_v26 = vld [vmem:[%s7394_s1 + $0x1e0] sm:$0xff]  ;;  %v81_v29 = vld [vmem:[%s7394_s1 + $0x1f0] sm:$0xff]  ;;  %v88_v31 = vld [vmem:[%s7394_s1 + $0x228] sm:$0xff]  ;;  %v1201_v62 = vunpack.c.0.s8 %v1200_v48 }
  0x17   :  { %3205 = vmatpush1.bf16.msra.mxu1 %v3204_v63  ;;  %2631 = vmatprep.subr.bf16.mxu0 %v2630_v0  ;;  %v86_v32 = vld [vmem:[%s7394_s1 + $0x218] sm:$0xff]  ;;  %v2640_v34 = vpack.c.bf16 %v79_v26, %v75_v25  ;;  %v3216_v35 = vpack.c.bf16 %v81_v29, %v77_v27  ;;  %v2642_v36 = vpack.c.bf16 %v88_v31, %v84_v30  ;;  %v83_v37 = vld [vmem:[%s7394_s1 + $0x200] sm:$0xff]  ;;  %v85_v39 = vld [vmem:[%s7394_s1 + $0x210] sm:$0xff] }
  0x18   :  { %3207 = vmatprep.subr.bf16.mxu1 %v3206_v4  ;;  %v90_v33 = vld [vmem:[%s7394_s1 + $0x238] sm:$0xff]  ;;  %v87_v38 = vld [vmem:[%s7394_s1 + $0x220] sm:$0xff]  ;;  %v89_v41 = vld [vmem:[%s7394_s1 + $0x230] sm:$0xff] }
  0x19   :  { %v3218_v40 = vpack.c.bf16 %v90_v33, %v86_v32  ;;  %v92_v42 = vld [vmem:[%s7394_s1 + $0x248] sm:$0xff]  ;;  %v94_v44 = vld [vmem:[%s7394_s1 + $0x258] sm:$0xff]  ;;  %v2644_v49 = vpack.c.bf16 %v87_v38, %v83_v37  ;;  %v3220_v50 = vpack.c.bf16 %v89_v41, %v85_v39  ;;  %v91_v52 = vld [vmem:[%s7394_s1 + $0x240] sm:$0xff] }
  0x1a   :  { %2633 = vmatpush1.bf16.msra.mxu0 %v2632_v10  ;;  %v96_v43 = vld [vmem:[%s7394_s1 + $0x268] sm:$0xff]  ;;  %v98_v45 = vld [vmem:[%s7394_s1 + $0x278] sm:$0xff]  ;;  %v95_v53 = vld [vmem:[%s7394_s1 + $0x260] sm:$0xff] }
  0x1b   :  { %3209 = vmatpush1.bf16.msra.mxu1 %v3208_v11  ;;  %2635 = vmatprep.subr.bf16.mxu0 %v2634_v12  ;;  %v2646_v51 = vpack.c.bf16 %v96_v43, %v92_v42  ;;  %v93_v54 = vld [vmem:[%s7394_s1 + $0x250] sm:$0xff]  ;;  %v3222_v55 = vpack.c.bf16 %v98_v45, %v94_v44  ;;  %v100_v57 = vld [vmem:[%s7394_s1 + $0x288] sm:$0xff]  ;;  %v102_v59 = vld [vmem:[%s7394_s1 + $0x298] sm:$0xff]  ;;  %v2648_v63 = vpack.c.bf16 %v95_v53, %v91_v52 }
  0x1c   :  { %3211 = vmatprep.subr.bf16.mxu1 %v3210_v16  ;;  %v97_v56 = vld [vmem:[%s7394_s1 + $0x270] sm:$0xff]  ;;  %v104_v58 = vld [vmem:[%s7394_s1 + $0x2a8] sm:$0xff]  ;;  %v106_v60 = vld [vmem:[%s7394_s1 + $0x2b8] sm:$0xff]  ;;  %v4103_v11 = vsub.s32 %v1201_v62, %v4076_v61 }
  0x1d   :  { %v3224_v0 = vpack.c.bf16 %v97_v56, %v93_v54  ;;  %v2650_v1 = vpack.c.bf16 %v104_v58, %v100_v57  ;;  %v99_v2 = vld [vmem:[%s7394_s1 + $0x280] sm:$0xff]  ;;  %v101_v4 = vld [vmem:[%s7394_s1 + $0x290] sm:$0xff]  ;;  %v3226_v5 = vpack.c.bf16 %v106_v60, %v102_v59  ;;  %v108_v7 = vld [vmem:[%s7394_s1 + $0x2c8] sm:$0xff] }
  0x1e   :  { %2637 = vmatpush1.bf16.msra.mxu0 %v2636_v22  ;;  %v103_v3 = vld [vmem:[%s7394_s1 + $0x2a0] sm:$0xff]  ;;  %v105_v6 = vld [vmem:[%s7394_s1 + $0x2b0] sm:$0xff]  ;;  %v112_v8 = vld [vmem:[%s7394_s1 + $0x2e8] sm:$0xff] }
  0x1f   :  { %3213 = vmatpush1.bf16.msra.mxu1 %v3212_v23  ;;  %2639 = vmatprep.subr.bf16.mxu0 %v2638_v24  ;;  %v110_v9 = vld [vmem:[%s7394_s1 + $0x2d8] sm:$0xff]  ;;  %v2652_v12 = vpack.c.bf16 %v103_v3, %v99_v2  ;;  %v107_v13 = vld [vmem:[%s7394_s1 + $0x2c0] sm:$0xff]  ;;  %v3228_v14 = vpack.c.bf16 %v105_v6, %v101_v4  ;;  %v2654_v15 = vpack.c.bf16 %v112_v8, %v108_v7  ;;  %v109_v17 = vld [vmem:[%s7394_s1 + $0x2d0] sm:$0xff] }
  0x20   :  { %3215 = vmatprep.subr.bf16.mxu1 %v3214_v28  ;;  %v114_v10 = vld [vmem:[%s7394_s1 + $0x2f8] sm:$0xff]  ;;  %v111_v16 = vld [vmem:[%s7394_s1 + $0x2e0] sm:$0xff]  ;;  %v113_v18 = vld [vmem:[%s7394_s1 + $0x2f0] sm:$0xff] }
  0x21   :  { %v3230_v19 = vpack.c.bf16 %v114_v10, %v110_v9  ;;  %v116_v20 = vld [vmem:[%s7394_s1 + $0x308] sm:$0xff]  ;;  %v4126_v22 = vld [vmem:[%s7395_s0] sm:$0xff]  ;;  %v118_v23 = vld [vmem:[%s7394_s1 + $0x318] sm:$0xff]  ;;  %v2656_v26 = vpack.c.bf16 %v111_v16, %v107_v13  ;;  %v3232_v27 = vpack.c.bf16 %v113_v18, %v109_v17 }
  0x22   :  { %2641 = vmatpush1.bf16.msra.mxu0 %v2640_v34  ;;  %v120_v21 = vld [vmem:[%s7394_s1 + $0x328] sm:$0xff]  ;;  %v122_v24 = vld [vmem:[%s7394_s1 + $0x338] sm:$0xff]  ;;  %v4136_v25 = vrot.slane %v4126_v22, %v4103_v11  ;;  %v115_v29 = vld [vmem:[%s7394_s1 + $0x300] sm:$0xff]  ;;  %v1198_v8 = vcombine.high %v4126_v22, %v4126_v22 }
  0x23   :  { %3217 = vmatpush1.bf16.msra.mxu1 %v3216_v35  ;;  %2643 = vmatprep.subr.bf16.mxu0 %v2642_v36  ;;  %v2658_v28 = vpack.c.bf16 %v120_v21, %v116_v20  ;;  %v119_v30 = vld [vmem:[%s7394_s1 + $0x320] sm:$0xff]  ;;  %v117_v31 = vld [vmem:[%s7394_s1 + $0x310] sm:$0xff]  ;;  %v3234_v33 = vpack.c.bf16 %v122_v24, %v118_v23  ;;  %v124_v35 = vld [vmem:[%s7394_s1 + $0x348] sm:$0xff] }
  0x24   :  { %3219 = vmatprep.subr.bf16.mxu1 %v3218_v40  ;;  %v1213_v32 = vcombine.high %v4136_v25, %v4136_v25  ;;  %v121_v34 = vld [vmem:[%s7394_s1 + $0x330] sm:$0xff]  ;;  %v128_v36 = vld [vmem:[%s7394_s1 + $0x368] sm:$0xff]  ;;  %v126_v37 = vld [vmem:[%s7394_s1 + $0x358] sm:$0xff]  ;;  %v2660_v39 = vpack.c.bf16 %v119_v30, %v115_v29  ;;  %v4257_v24 = vrot.slane %v1198_v8, %v4103_v11 }
  0x25   :  { %v130_v38 = vld [vmem:[%s7394_s1 + $0x378] sm:$0xff]  ;;  %v3236_v40 = vpack.c.bf16 %v121_v34, %v117_v31  ;;  %v2662_v41 = vpack.c.bf16 %v128_v36, %v124_v35  ;;  %v123_v42 = vld [vmem:[%s7394_s1 + $0x340] sm:$0xff]  ;;  %v125_v44 = vld [vmem:[%s7394_s1 + $0x350] sm:$0xff] }
  0x26   :  { %2645 = vmatpush1.bf16.msra.mxu0 %v2644_v49  ;;  %1356 = vmatprep.mubr.f32.mxu0 %v1213_v32  ;;  %v127_v43 = vld [vmem:[%s7394_s1 + $0x360] sm:$0xff]  ;;  %v3238_v45 = vpack.c.bf16 %v130_v38, %v126_v37  ;;  %v129_v46 = vld [vmem:[%s7394_s1 + $0x370] sm:$0xff]  ;;  %v132_v47 = vld [vmem:[%s7394_s1 + $0x388] sm:$0xff]  ;;  %v1214_v38 = vcombine.high %v4257_v24, %v4257_v24 }
  0x27   :  { %3221 = vmatpush1.bf16.msra.mxu1 %v3220_v50  ;;  %2647 = vmatprep.subr.bf16.mxu0 %v2646_v51  ;;  %v136_v48 = vld [vmem:[%s7394_s1 + $0x3a8] sm:$0xff]  ;;  %v134_v49 = vld [vmem:[%s7394_s1 + $0x398] sm:$0xff]  ;;  %v2664_v51 = vpack.c.bf16 %v127_v43, %v123_v42  ;;  %v3240_v52 = vpack.c.bf16 %v129_v46, %v125_v44  ;;  %v131_v54 = vld [vmem:[%s7394_s1 + $0x380] sm:$0xff] }
  0x28   :  { %3223 = vmatprep.subr.bf16.mxu1 %v3222_v55  ;;  %1995 = vmatprep.mubr.f32.mxu1 %v1213_v32  ;;  %v138_v50 = vld [vmem:[%s7394_s1 + $0x3b8] sm:$0xff]  ;;  %v2666_v53 = vpack.c.bf16 %v136_v48, %v132_v47  ;;  %v135_v55 = vld [vmem:[%s7394_s1 + $0x3a0] sm:$0xff]  ;;  %v133_v56 = vld [vmem:[%s7394_s1 + $0x390] sm:$0xff] }
  0x29   :  { %v3242_v57 = vpack.c.bf16 %v138_v50, %v134_v49  ;;  %v137_v58 = vld [vmem:[%s7394_s1 + $0x3b0] sm:$0xff]  ;;  %v140_v59 = vld [vmem:[%s7394_s1 + $0x3c8] sm:$0xff]  ;;  %v142_v62 = vld [vmem:[%s7394_s1 + $0x3d8] sm:$0xff] }
  0x2a   :  { %2649 = vmatpush1.bf16.msra.mxu0 %v2648_v63  ;;  %v144_v60 = vld [vmem:[%s7394_s1 + $0x3e8] sm:$0xff]  ;;  %v146_v63 = vld [vmem:[%s7394_s1 + $0x3f8] sm:$0xff]  ;;  %v139_v3 = vld [vmem:[%s7394_s1 + $0x3c0] sm:$0xff] }
  0x2b   :  { %3225 = vmatpush1.bf16.msra.mxu1 %v3224_v0  ;;  %2651 = vmatprep.subr.bf16.mxu0 %v2650_v1  ;;  %v2668_v0 = vpack.c.bf16 %v135_v55, %v131_v54  ;;  %v3244_v1 = vpack.c.bf16 %v137_v58, %v133_v56  ;;  %v2670_v2 = vpack.c.bf16 %v144_v60, %v140_v59  ;;  %v143_v4 = vld [vmem:[%s7394_s1 + $0x3e0] sm:$0xff]  ;;  %v145_v7 = vld [vmem:[%s7394_s1 + $0x3f0] sm:$0xff]  ;;  %v148_v9 = vld [vmem:[%s7394_s1 + $0x408] sm:$0xff] }
  0x2c   :  { %3227 = vmatprep.subr.bf16.mxu1 %v3226_v5  ;;  %v141_v5 = vld [vmem:[%s7394_s1 + $0x3d0] sm:$0xff]  ;;  %v3246_v6 = vpack.c.bf16 %v146_v63, %v142_v62  ;;  %v152_v10 = vld [vmem:[%s7394_s1 + $0x428] sm:$0xff]  ;;  %v154_v13 = vld [vmem:[%s7394_s1 + $0x438] sm:$0xff] }
  0x2d   :  { %v2674_v16 = vpack.c.bf16 %v152_v10, %v148_v9  ;;  %v147_v17 = vld [vmem:[%s7394_s1 + $0x400] sm:$0xff]  ;;  %v153_v21 = vld [vmem:[%s7394_s1 + $0x430] sm:$0xff]  ;;  %v156_v22 = vld [vmem:[%s7394_s1 + $0x448] sm:$0xff] }
  0x2e   :  { %2653 = vmatpush1.bf16.msra.mxu0 %v2652_v12  ;;  %v150_v12 = vld [vmem:[%s7394_s1 + $0x418] sm:$0xff]  ;;  %v151_v18 = vld [vmem:[%s7394_s1 + $0x420] sm:$0xff]  ;;  %v160_v23 = vld [vmem:[%s7394_s1 + $0x468] sm:$0xff] }
  0x2f   :  { %3229 = vmatpush1.bf16.msra.mxu1 %v3228_v14  ;;  %2655 = vmatprep.subr.bf16.mxu0 %v2654_v15  ;;  %v2672_v14 = vpack.c.bf16 %v143_v4, %v139_v3  ;;  %v3248_v15 = vpack.c.bf16 %v145_v7, %v141_v5  ;;  %v3250_v20 = vpack.c.bf16 %v154_v13, %v150_v12  ;;  %v155_v31 = vld [vmem:[%s7394_s1 + $0x440] sm:$0xff]  ;;  %v161_v35 = vld [vmem:[%s7394_s1 + $0x470] sm:$0xff]  ;;  %v164_v36 = vld [vmem:[%s7394_s1 + $0x488] sm:$0xff] }
  0x30   :  { %3231 = vmatprep.subr.bf16.mxu1 %v3230_v19  ;;  %v149_v19 = vld [vmem:[%s7394_s1 + $0x410] sm:$0xff]  ;;  %v2678_v30 = vpack.c.bf16 %v160_v23, %v156_v22  ;;  %v159_v32 = vld [vmem:[%s7394_s1 + $0x460] sm:$0xff]  ;;  %v168_v37 = vld [vmem:[%s7394_s1 + $0x4a8] sm:$0xff] }
  0x31   :  { %v3252_v29 = vpack.c.bf16 %v153_v21, %v149_v19  ;;  %v2682_v43 = vpack.c.bf16 %v168_v37, %v164_v36  ;;  %v163_v44 = vld [vmem:[%s7394_s1 + $0x480] sm:$0xff]  ;;  %v165_v46 = vld [vmem:[%s7394_s1 + $0x490] sm:$0xff]  ;;  %v172_v48 = vld [vmem:[%s7394_s1 + $0x4c8] sm:$0xff] }
  0x32   :  { %2657 = vmatpush1.bf16.msra.mxu0 %v2656_v26  ;;  %v158_v26 = vld [vmem:[%s7394_s1 + $0x458] sm:$0xff]  ;;  %v176_v49 = vld [vmem:[%s7394_s1 + $0x4e8] sm:$0xff]  ;;  %v171_v55 = vld [vmem:[%s7394_s1 + $0x4c0] sm:$0xff] }
  0x33   :  { %3233 = vmatpush1.bf16.msra.mxu1 %v3232_v27  ;;  %2659 = vmatprep.subr.bf16.mxu0 %v2658_v28  ;;  %v162_v27 = vld [vmem:[%s7394_s1 + $0x478] sm:$0xff]  ;;  %v2676_v28 = vpack.c.bf16 %v151_v18, %v147_v17  ;;  %v2686_v54 = vpack.c.bf16 %v176_v49, %v172_v48  ;;  %v175_v56 = vld [vmem:[%s7394_s1 + $0x4e0] sm:$0xff]  ;;  %v177_v59 = vld [vmem:[%s7394_s1 + $0x4f0] sm:$0xff] }
  0x34   :  { %3235 = vmatprep.subr.bf16.mxu1 %v3234_v33  ;;  %v157_v33 = vld [vmem:[%s7394_s1 + $0x450] sm:$0xff]  ;;  %v3254_v34 = vpack.c.bf16 %v162_v27, %v158_v26  ;;  %v174_v50 = vld [vmem:[%s7394_s1 + $0x4d8] sm:$0xff]  ;;  %v180_v60 = vld [vmem:[%s7394_s1 + $0x508] sm:$0xff] }
  0x35   :  { %v3256_v42 = vpack.c.bf16 %v161_v35, %v157_v33  ;;  %v184_v62 = vld [vmem:[%s7394_s1 + $0x528] sm:$0xff]  ;;  %v182_v63 = vld [vmem:[%s7394_s1 + $0x518] sm:$0xff]  ;;  %v179_v4 = vld [vmem:[%s7394_s1 + $0x500] sm:$0xff] }
  0x36   :  { %2661 = vmatpush1.bf16.msra.mxu0 %v2660_v39  ;;  %v166_v39 = vld [vmem:[%s7394_s1 + $0x498] sm:$0xff]  ;;  %v2690_v3 = vpack.c.bf16 %v184_v62, %v180_v60  ;;  %v183_v5 = vld [vmem:[%s7394_s1 + $0x520] sm:$0xff]  ;;  %v185_v8 = vld [vmem:[%s7394_s1 + $0x530] sm:$0xff] }
  0x37   :  { %3237 = vmatpush1.bf16.msra.mxu1 %v3236_v40  ;;  %2663 = vmatprep.subr.bf16.mxu0 %v2662_v41  ;;  %v170_v40 = vld [vmem:[%s7394_s1 + $0x4b8] sm:$0xff]  ;;  %v2680_v41 = vpack.c.bf16 %v159_v32, %v155_v31  ;;  %v188_v9 = vld [vmem:[%s7394_s1 + $0x548] sm:$0xff]  ;;  %v187_v17 = vld [vmem:[%s7394_s1 + $0x540] sm:$0xff] }
  0x38   :  { %3239 = vmatprep.subr.bf16.mxu1 %v3238_v45  ;;  %v167_v45 = vld [vmem:[%s7394_s1 + $0x4a0] sm:$0xff]  ;;  %v3258_v47 = vpack.c.bf16 %v170_v40, %v166_v39  ;;  %v192_v10 = vld [vmem:[%s7394_s1 + $0x568] sm:$0xff]  ;;  %v190_v12 = vld [vmem:[%s7394_s1 + $0x558] sm:$0xff] }
  0x39   :  { %v194_v13 = vld [vmem:[%s7394_s1 + $0x578] sm:$0xff]  ;;  %v191_v18 = vld [vmem:[%s7394_s1 + $0x560] sm:$0xff]  ;;  %v189_v19 = vld [vmem:[%s7394_s1 + $0x550] sm:$0xff] }
  0x3a   :  { %2665 = vmatpush1.bf16.msra.mxu0 %v2664_v51  ;;  %v178_v51 = vld [vmem:[%s7394_s1 + $0x4f8] sm:$0xff]  ;;  %v193_v21 = vld [vmem:[%s7394_s1 + $0x570] sm:$0xff]  ;;  %v196_v22 = vld [vmem:[%s7394_s1 + $0x588] sm:$0xff] }
  0x3b   :  { %3241 = vmatpush1.bf16.msra.mxu1 %v3240_v52  ;;  %2667 = vmatprep.subr.bf16.mxu0 %v2666_v53  ;;  %v2684_v52 = vpack.c.bf16 %v167_v45, %v163_v44  ;;  %v3262_v58 = vpack.c.bf16 %v178_v51, %v174_v50  ;;  %v200_v23 = vld [vmem:[%s7394_s1 + $0x5a8] sm:$0xff]  ;;  %v198_v26 = vld [vmem:[%s7394_s1 + $0x598] sm:$0xff]  ;;  %v195_v31 = vld [vmem:[%s7394_s1 + $0x580] sm:$0xff] }
  0x3c   :  { %3243 = vmatprep.subr.bf16.mxu1 %v3242_v57  ;;  %v173_v57 = vld [vmem:[%s7394_s1 + $0x4d0] sm:$0xff]  ;;  %v202_v27 = vld [vmem:[%s7394_s1 + $0x5b8] sm:$0xff]  ;;  %v199_v32 = vld [vmem:[%s7394_s1 + $0x5a0] sm:$0xff] }
  0x3d   :  { %v197_v33 = vld [vmem:[%s7394_s1 + $0x590] sm:$0xff]  ;;  %v204_v36 = vld [vmem:[%s7394_s1 + $0x5c8] sm:$0xff]  ;;  %v210_v39 = vld [vmem:[%s7394_s1 + $0x5f8] sm:$0xff]  ;;  %v2700_v40 = vpack.c.bf16 %v199_v32, %v195_v31 }
  0x3e   :  { %2669 = vmatpush1.bf16.msra.mxu0 %v2668_v0  ;;  %v186_v0 = vld [vmem:[%s7394_s1 + $0x538] sm:$0xff]  ;;  %v201_v35 = vld [vmem:[%s7394_s1 + $0x5b0] sm:$0xff]  ;;  %v208_v37 = vld [vmem:[%s7394_s1 + $0x5e8] sm:$0xff] }
  0x3f   :  { %3245 = vmatpush1.bf16.msra.mxu1 %v3244_v1  ;;  %2671 = vmatprep.subr.bf16.mxu0 %v2670_v2  ;;  %v2688_v1 = vpack.c.bf16 %v175_v56, %v171_v55  ;;  %v3264_v2 = vpack.c.bf16 %v177_v59, %v173_v57  ;;  %v3266_v7 = vpack.c.bf16 %v186_v0, %v182_v63  ;;  %v207_v44 = vld [vmem:[%s7394_s1 + $0x5e0] sm:$0xff]  ;;  %v205_v45 = vld [vmem:[%s7394_s1 + $0x5d0] sm:$0xff]  ;;  %v216_v48 = vld [vmem:[%s7394_s1 + $0x628] sm:$0xff] }
  0x40   :  { %3247 = vmatprep.subr.bf16.mxu1 %v3246_v6  ;;  %v181_v6 = vld [vmem:[%s7394_s1 + $0x510] sm:$0xff]  ;;  %v214_v49 = vld [vmem:[%s7394_s1 + $0x618] sm:$0xff]  ;;  %v215_v55 = vld [vmem:[%s7394_s1 + $0x620] sm:$0xff] }
  0x41   :  { %v218_v50 = vld [vmem:[%s7394_s1 + $0x638] sm:$0xff]  ;;  %v213_v56 = vld [vmem:[%s7394_s1 + $0x610] sm:$0xff]  ;;  %v220_v59 = vld [vmem:[%s7394_s1 + $0x648] sm:$0xff] }
  0x42   :  { %2673 = vmatpush1.bf16.msra.mxu0 %v2672_v14  ;;  %v2692_v14 = vpack.c.bf16 %v183_v5, %v179_v4  ;;  %v3282_v57 = vpack.c.bf16 %v218_v50, %v214_v49  ;;  %v224_v60 = vld [vmem:[%s7394_s1 + $0x668] sm:$0xff]  ;;  %v222_v62 = vld [vmem:[%s7394_s1 + $0x658] sm:$0xff]  ;;  %v223_v4 = vld [vmem:[%s7394_s1 + $0x660] sm:$0xff] }
  0x43   :  { %3249 = vmatpush1.bf16.msra.mxu1 %v3248_v15  ;;  %2675 = vmatprep.subr.bf16.mxu0 %v2674_v16  ;;  %v3268_v15 = vpack.c.bf16 %v185_v8, %v181_v6  ;;  %v2694_v16 = vpack.c.bf16 %v192_v10, %v188_v9  ;;  %v226_v63 = vld [vmem:[%s7394_s1 + $0x678] sm:$0xff]  ;;  %v221_v5 = vld [vmem:[%s7394_s1 + $0x650] sm:$0xff]  ;;  %v228_v8 = vld [vmem:[%s7394_s1 + $0x688] sm:$0xff] }
  0x44   :  { %3251 = vmatprep.subr.bf16.mxu1 %v3250_v20  ;;  %v3270_v20 = vpack.c.bf16 %v194_v13, %v190_v12  ;;  %v3286_v6 = vpack.c.bf16 %v226_v63, %v222_v62  ;;  %v232_v9 = vld [vmem:[%s7394_s1 + $0x6a8] sm:$0xff]  ;;  %v230_v10 = vld [vmem:[%s7394_s1 + $0x698] sm:$0xff]  ;;  %v239_v31 = vld [vmem:[%s7394_s1 + $0x6e0] sm:$0xff] }
  0x45   :  { %1357 = vmatmul.mubr.f32.vlgmr.msra.gmra.mrb[0].mxu0 %v4136_v25  ;;  %v234_v12 = vld [vmem:[%s7394_s1 + $0x6b8] sm:$0xff]  ;;  %v237_v32 = vld [vmem:[%s7394_s1 + $0x6d0] sm:$0xff] }
  0x46   :  { %2677 = vmatpush1.bf16.msra.mxu0 %v2676_v28  ;;  %1996 = vmatmul.mubr.f32.vlgmr.msra.gmra.mrb[0].mxu1 %v4136_v25  ;;  %v169_v25 = vld [vmem:[%s7394_s1 + $0x4b0] sm:$0xff]  ;;  %v2696_v28 = vpack.c.bf16 %v191_v18, %v187_v17  ;;  %v231_v17 = vld [vmem:[%s7394_s1 + $0x6a0] sm:$0xff]  ;;  %v258_v49 = vld [vmem:[%s7394_s1 + $0x778] sm:$0xff] }
  0x47   :  { %3253 = vmatpush1.bf16.msra.mxu1 %v3252_v29  ;;  %2679 = vmatprep.subr.bf16.mxu0 %v2678_v30  ;;  %v3260_v53 = vpack.c.bf16 %v169_v25, %v165_v46  ;;  %v3272_v29 = vpack.c.bf16 %v193_v21, %v189_v19  ;;  %v2698_v30 = vpack.c.bf16 %v200_v23, %v196_v22  ;;  %v212_v25 = vld [vmem:[%s7394_s1 + $0x608] sm:$0xff]  ;;  %v229_v18 = vld [vmem:[%s7394_s1 + $0x690] sm:$0xff]  ;;  %v238_v23 = vld [vmem:[%s7394_s1 + $0x6d8] sm:$0xff] }
  0x48   :  { %3255 = vmatprep.subr.bf16.mxu1 %v3254_v34  ;;  %1427 = vmatprep.mubr.f32.mxu0 %v1214_v38  ;;  %v3274_v34 = vpack.c.bf16 %v202_v27, %v198_v26  ;;  %v3290_v19 = vpack.c.bf16 %v234_v12, %v230_v10  ;;  %v236_v21 = vld [vmem:[%s7394_s1 + $0x6c8] sm:$0xff]  ;;  %v242_v26 = vld [vmem:[%s7394_s1 + $0x6f8] sm:$0xff] }
  0x49   :  { %2066 = vmatprep.mubr.f32.mxu1 %v1214_v38  ;;  %v206_v38 = vld [vmem:[%s7394_s1 + $0x5d8] sm:$0xff]  ;;  %v240_v22 = vld [vmem:[%s7394_s1 + $0x6e8] sm:$0xff] }
  0x4a   :  { %2681 = vmatpush1.bf16.msra.mxu0 %v2680_v41  ;;  %v3276_v41 = vpack.c.bf16 %v201_v35, %v197_v33  ;;  %v3278_v46 = vpack.c.bf16 %v210_v39, %v206_v38  ;;  %v3294_v33 = vpack.c.bf16 %v242_v26, %v238_v23  ;;  %v244_v35 = vld [vmem:[%s7394_s1 + $0x708] sm:$0xff]  ;;  %v250_v38 = vld [vmem:[%s7394_s1 + $0x738] sm:$0xff] }
  0x4b   :  { %3257 = vmatpush1.bf16.msra.mxu1 %v3256_v42  ;;  %2683 = vmatprep.subr.bf16.mxu0 %v2682_v43  ;;  %v2702_v42 = vpack.c.bf16 %v208_v37, %v204_v36  ;;  %v203_v43 = vld [vmem:[%s7394_s1 + $0x5c0] sm:$0xff]  ;;  %v248_v36 = vld [vmem:[%s7394_s1 + $0x728] sm:$0xff]  ;;  %v246_v37 = vld [vmem:[%s7394_s1 + $0x718] sm:$0xff] }
  0x4c   :  { %3259 = vmatprep.subr.bf16.mxu1 %v3258_v47  ;;  %v209_v47 = vld [vmem:[%s7394_s1 + $0x5f0] sm:$0xff]  ;;  %v2704_v51 = vpack.c.bf16 %v207_v44, %v203_v43  ;;  %v247_v43 = vld [vmem:[%s7394_s1 + $0x720] sm:$0xff]  ;;  %v266_v62 = vld [vmem:[%s7394_s1 + $0x7b8] sm:$0xff] }
  0x4d   :  { %v245_v44 = vld [vmem:[%s7394_s1 + $0x710] sm:$0xff]  ;;  %v274_v10 = vld [vmem:[%s7394_s1 + $0x7f8] sm:$0xff] }
  0x4e   :  { %2685 = vmatpush1.bf16.msra.mxu0 %v2684_v52  ;;  %v3280_v52 = vpack.c.bf16 %v209_v47, %v205_v45  ;;  %v3298_v45 = vpack.c.bf16 %v250_v38, %v246_v37  ;;  %v252_v47 = vld [vmem:[%s7394_s1 + $0x748] sm:$0xff]  ;;  %v282_v23 = vld [vmem:[%s7394_s1 + $0x838] sm:$0xff] }
  0x4f   :  { %3261 = vmatpush1.bf16.msra.mxu1 %v3260_v53  ;;  %2687 = vmatprep.subr.bf16.mxu0 %v2686_v54  ;;  %v2706_v53 = vpack.c.bf16 %v216_v48, %v212_v25  ;;  %v211_v54 = vld [vmem:[%s7394_s1 + $0x600] sm:$0xff]  ;;  %v256_v25 = vld [vmem:[%s7394_s1 + $0x768] sm:$0xff]  ;;  %v254_v48 = vld [vmem:[%s7394_s1 + $0x758] sm:$0xff] }
  0x50   :  { %3263 = vmatprep.subr.bf16.mxu1 %v3262_v58  ;;  %v217_v58 = vld [vmem:[%s7394_s1 + $0x630] sm:$0xff]  ;;  %v2708_v0 = vpack.c.bf16 %v215_v55, %v211_v54  ;;  %v255_v54 = vld [vmem:[%s7394_s1 + $0x760] sm:$0xff]  ;;  %v290_v37 = vld [vmem:[%s7394_s1 + $0x878] sm:$0xff] }
  0x51   :  { %v253_v55 = vld [vmem:[%s7394_s1 + $0x750] sm:$0xff] }
  0x52   :  { %2689 = vmatpush1.bf16.msra.mxu0 %v2688_v1  ;;  %v3284_v1 = vpack.c.bf16 %v217_v58, %v213_v56  ;;  %v3302_v56 = vpack.c.bf16 %v258_v49, %v254_v48  ;;  %v260_v58 = vld [vmem:[%s7394_s1 + $0x788] sm:$0xff]  ;;  %v294_v49 = vld [vmem:[%s7394_s1 + $0x898] sm:$0xff] }
  0x53   :  { %3265 = vmatpush1.bf16.msra.mxu1 %v3264_v2  ;;  %2691 = vmatprep.subr.bf16.mxu0 %v2690_v3  ;;  %v2710_v2 = vpack.c.bf16 %v224_v60, %v220_v59  ;;  %v219_v3 = vld [vmem:[%s7394_s1 + $0x640] sm:$0xff]  ;;  %v264_v59 = vld [vmem:[%s7394_s1 + $0x7a8] sm:$0xff]  ;;  %v262_v60 = vld [vmem:[%s7394_s1 + $0x798] sm:$0xff] }
  0x54   :  { %3267 = vmatprep.subr.bf16.mxu1 %v3266_v7  ;;  %v225_v7 = vld [vmem:[%s7394_s1 + $0x670] sm:$0xff]  ;;  %v2712_v13 = vpack.c.bf16 %v223_v4, %v219_v3  ;;  %v263_v3 = vld [vmem:[%s7394_s1 + $0x7a0] sm:$0xff]  ;;  %v296_v48 = vld [vmem:[%s7394_s1 + $0x8a8] sm:$0xff] }
  0x55   :  { %v261_v4 = vld [vmem:[%s7394_s1 + $0x790] sm:$0xff] }
  0x56   :  { %2693 = vmatpush1.bf16.msra.mxu0 %v2692_v14  ;;  %v3288_v14 = vpack.c.bf16 %v225_v7, %v221_v5  ;;  %v3306_v5 = vpack.c.bf16 %v266_v62, %v262_v60  ;;  %v268_v7 = vld [vmem:[%s7394_s1 + $0x7c8] sm:$0xff]  ;;  %v302_v62 = vld [vmem:[%s7394_s1 + $0x8d8] sm:$0xff] }
  0x57   :  { %3269 = vmatpush1.bf16.msra.mxu1 %v3268_v15  ;;  %2695 = vmatprep.subr.bf16.mxu0 %v2694_v16  ;;  %v2714_v15 = vpack.c.bf16 %v232_v9, %v228_v8  ;;  %v227_v16 = vld [vmem:[%s7394_s1 + $0x680] sm:$0xff]  ;;  %v272_v8 = vld [vmem:[%s7394_s1 + $0x7e8] sm:$0xff]  ;;  %v270_v9 = vld [vmem:[%s7394_s1 + $0x7d8] sm:$0xff] }
  0x58   :  { %3271 = vmatprep.subr.bf16.mxu1 %v3270_v20  ;;  %v233_v20 = vld [vmem:[%s7394_s1 + $0x6b0] sm:$0xff]  ;;  %v2716_v27 = vpack.c.bf16 %v231_v17, %v227_v16  ;;  %v271_v16 = vld [vmem:[%s7394_s1 + $0x7e0] sm:$0xff]  ;;  %v304_v60 = vld [vmem:[%s7394_s1 + $0x8e8] sm:$0xff] }
  0x59   :  { %v269_v17 = vld [vmem:[%s7394_s1 + $0x7d0] sm:$0xff] }
  0x5a   :  { %2697 = vmatpush1.bf16.msra.mxu0 %v2696_v28  ;;  %v3292_v28 = vpack.c.bf16 %v233_v20, %v229_v18  ;;  %v3310_v18 = vpack.c.bf16 %v274_v10, %v270_v9  ;;  %v276_v20 = vld [vmem:[%s7394_s1 + $0x808] sm:$0xff]  ;;  %v310_v10 = vld [vmem:[%s7394_s1 + $0x918] sm:$0xff] }
  0x5b   :  { %3273 = vmatpush1.bf16.msra.mxu1 %v3272_v29  ;;  %2699 = vmatprep.subr.bf16.mxu0 %v2698_v30  ;;  %v2718_v29 = vpack.c.bf16 %v240_v22, %v236_v21  ;;  %v235_v30 = vld [vmem:[%s7394_s1 + $0x6c0] sm:$0xff]  ;;  %v280_v21 = vld [vmem:[%s7394_s1 + $0x828] sm:$0xff]  ;;  %v278_v22 = vld [vmem:[%s7394_s1 + $0x818] sm:$0xff] }
  0x5c   :  { %3275 = vmatprep.subr.bf16.mxu1 %v3274_v34  ;;  %v241_v34 = vld [vmem:[%s7394_s1 + $0x6f0] sm:$0xff]  ;;  %v2720_v39 = vpack.c.bf16 %v239_v31, %v235_v30  ;;  %v279_v30 = vld [vmem:[%s7394_s1 + $0x820] sm:$0xff]  ;;  %v312_v9 = vld [vmem:[%s7394_s1 + $0x928] sm:$0xff] }
  0x5d   :  { %v277_v31 = vld [vmem:[%s7394_s1 + $0x810] sm:$0xff] }
  0x5e   :  { %2701 = vmatpush1.bf16.msra.mxu0 %v2700_v40  ;;  %v3296_v40 = vpack.c.bf16 %v241_v34, %v237_v32  ;;  %v3314_v32 = vpack.c.bf16 %v282_v23, %v278_v22  ;;  %v284_v34 = vld [vmem:[%s7394_s1 + $0x848] sm:$0xff]  ;;  %v318_v23 = vld [vmem:[%s7394_s1 + $0x958] sm:$0xff] }
  0x5f   :  { %3277 = vmatpush1.bf16.msra.mxu1 %v3276_v41  ;;  %2703 = vmatprep.subr.bf16.mxu0 %v2702_v42  ;;  %v2722_v41 = vpack.c.bf16 %v248_v36, %v244_v35  ;;  %v243_v42 = vld [vmem:[%s7394_s1 + $0x700] sm:$0xff]  ;;  %v288_v35 = vld [vmem:[%s7394_s1 + $0x868] sm:$0xff]  ;;  %v286_v36 = vld [vmem:[%s7394_s1 + $0x858] sm:$0xff] }
  0x60   :  { %3279 = vmatprep.subr.bf16.mxu1 %v3278_v46  ;;  %v249_v46 = vld [vmem:[%s7394_s1 + $0x730] sm:$0xff]  ;;  %v2724_v50 = vpack.c.bf16 %v247_v43, %v243_v42  ;;  %v283_v42 = vld [vmem:[%s7394_s1 + $0x840] sm:$0xff]  ;;  %v320_v22 = vld [vmem:[%s7394_s1 + $0x968] sm:$0xff] }
  0x61   :  { %v287_v43 = vld [vmem:[%s7394_s1 + $0x860] sm:$0xff] }
  0x62   :  { %2705 = vmatpush1.bf16.msra.mxu0 %v2704_v51  ;;  %v3300_v51 = vpack.c.bf16 %v249_v46, %v245_v44  ;;  %v285_v44 = vld [vmem:[%s7394_s1 + $0x850] sm:$0xff]  ;;  %v3318_v46 = vpack.c.bf16 %v290_v37, %v286_v36  ;;  %v328_v36 = vld [vmem:[%s7394_s1 + $0x9a8] sm:$0xff]  ;;  %v326_v37 = vld [vmem:[%s7394_s1 + $0x998] sm:$0xff] }
  0x63   :  { %3281 = vmatpush1.bf16.msra.mxu1 %v3280_v52  ;;  %2707 = vmatprep.subr.bf16.mxu0 %v2706_v53  ;;  %v2726_v52 = vpack.c.bf16 %v256_v25, %v252_v47  ;;  %v251_v53 = vld [vmem:[%s7394_s1 + $0x740] sm:$0xff]  ;;  %v289_v47 = vld [vmem:[%s7394_s1 + $0x870] sm:$0xff]  ;;  %v292_v25 = vld [vmem:[%s7394_s1 + $0x888] sm:$0xff] }
  0x64   :  { %3283 = vmatprep.subr.bf16.mxu1 %v3282_v57  ;;  %v257_v57 = vld [vmem:[%s7394_s1 + $0x770] sm:$0xff]  ;;  %v2728_v63 = vpack.c.bf16 %v255_v54, %v251_v53  ;;  %v3320_v53 = vpack.c.bf16 %v289_v47, %v285_v44  ;;  %v2746_v54 = vpack.c.bf16 %v296_v48, %v292_v25  ;;  %v327_v44 = vld [vmem:[%s7394_s1 + $0x9a0] sm:$0xff]  ;;  %v332_v48 = vld [vmem:[%s7394_s1 + $0x9c8] sm:$0xff] }
  0x65   :  { %v329_v25 = vld [vmem:[%s7394_s1 + $0x9b0] sm:$0xff] }
  0x66   :  { %2709 = vmatpush1.bf16.msra.mxu0 %v2708_v0  ;;  %v3304_v0 = vpack.c.bf16 %v257_v57, %v253_v55  ;;  %v291_v55 = vld [vmem:[%s7394_s1 + $0x880] sm:$0xff]  ;;  %v293_v57 = vld [vmem:[%s7394_s1 + $0x890] sm:$0xff] }
  0x67   :  { %3285 = vmatpush1.bf16.msra.mxu1 %v3284_v1  ;;  %2711 = vmatprep.subr.bf16.mxu0 %v2710_v2  ;;  %v2730_v1 = vpack.c.bf16 %v264_v59, %v260_v58  ;;  %v259_v2 = vld [vmem:[%s7394_s1 + $0x780] sm:$0xff]  ;;  %v300_v59 = vld [vmem:[%s7394_s1 + $0x8c8] sm:$0xff] }
  0x68   :  { %3287 = vmatprep.subr.bf16.mxu1 %v3286_v6  ;;  %v265_v6 = vld [vmem:[%s7394_s1 + $0x7b0] sm:$0xff]  ;;  %v2732_v12 = vpack.c.bf16 %v263_v3, %v259_v2  ;;  %v2750_v2 = vpack.c.bf16 %v304_v60, %v300_v59  ;;  %v299_v3 = vld [vmem:[%s7394_s1 + $0x8c0] sm:$0xff]  ;;  %v340_v59 = vld [vmem:[%s7394_s1 + $0xa08] sm:$0xff] }
  0x69   :  { %v344_v60 = vld [vmem:[%s7394_s1 + $0xa28] sm:$0xff] }
  0x6a   :  { %2713 = vmatpush1.bf16.msra.mxu0 %v2712_v13  ;;  %v3308_v13 = vpack.c.bf16 %v265_v6, %v261_v4  ;;  %v303_v4 = vld [vmem:[%s7394_s1 + $0x8e0] sm:$0xff] }
  0x6b   :  { %3289 = vmatpush1.bf16.msra.mxu1 %v3288_v14  ;;  %2715 = vmatprep.subr.bf16.mxu0 %v2714_v15  ;;  %v2734_v14 = vpack.c.bf16 %v272_v8, %v268_v7  ;;  %v267_v15 = vld [vmem:[%s7394_s1 + $0x7c0] sm:$0xff]  ;;  %v305_v7 = vld [vmem:[%s7394_s1 + $0x8f0] sm:$0xff]  ;;  %v308_v8 = vld [vmem:[%s7394_s1 + $0x908] sm:$0xff] }
  0x6c   :  { %3291 = vmatprep.subr.bf16.mxu1 %v3290_v19  ;;  %v273_v19 = vld [vmem:[%s7394_s1 + $0x7f0] sm:$0xff]  ;;  %v2736_v26 = vpack.c.bf16 %v271_v16, %v267_v15  ;;  %v2754_v15 = vpack.c.bf16 %v312_v9, %v308_v8  ;;  %v307_v16 = vld [vmem:[%s7394_s1 + $0x900] sm:$0xff]  ;;  %v348_v8 = vld [vmem:[%s7394_s1 + $0xa48] sm:$0xff] }
  0x6d   :  { %v352_v9 = vld [vmem:[%s7394_s1 + $0xa68] sm:$0xff] }
  0x6e   :  { %2717 = vmatpush1.bf16.msra.mxu0 %v2716_v27  ;;  %v3312_v27 = vpack.c.bf16 %v273_v19, %v269_v17  ;;  %v311_v17 = vld [vmem:[%s7394_s1 + $0x920] sm:$0xff] }
  0x6f   :  { %3293 = vmatpush1.bf16.msra.mxu1 %v3292_v28  ;;  %2719 = vmatprep.subr.bf16.mxu0 %v2718_v29  ;;  %v2738_v28 = vpack.c.bf16 %v280_v21, %v276_v20  ;;  %v275_v29 = vld [vmem:[%s7394_s1 + $0x800] sm:$0xff]  ;;  %v313_v20 = vld [vmem:[%s7394_s1 + $0x930] sm:$0xff]  ;;  %v316_v21 = vld [vmem:[%s7394_s1 + $0x948] sm:$0xff] }
  0x70   :  { %3295 = vmatprep.subr.bf16.mxu1 %v3294_v33  ;;  %v281_v33 = vld [vmem:[%s7394_s1 + $0x830] sm:$0xff]  ;;  %v2740_v38 = vpack.c.bf16 %v279_v30, %v275_v29  ;;  %v2758_v29 = vpack.c.bf16 %v320_v22, %v316_v21  ;;  %v315_v30 = vld [vmem:[%s7394_s1 + $0x940] sm:$0xff]  ;;  %v356_v21 = vld [vmem:[%s7394_s1 + $0xa88] sm:$0xff] }
  0x71   :  { %v360_v22 = vld [vmem:[%s7394_s1 + $0xaa8] sm:$0xff] }
  0x72   :  { %2721 = vmatpush1.bf16.msra.mxu0 %v2720_v39  ;;  %v4656_v39 = vld [vmem:[%s7395_s0 + $0x8] sm:$0xff] }
  0x73   :  { %3297 = vmatpush1.bf16.msra.mxu1 %v3296_v40  ;;  %2723 = vmatprep.subr.bf16.mxu0 %v2722_v41  ;;  %v3316_v40 = vpack.c.bf16 %v281_v33, %v277_v31  ;;  %v2742_v41 = vpack.c.bf16 %v288_v35, %v284_v34  ;;  %v319_v31 = vld [vmem:[%s7394_s1 + $0x960] sm:$0xff]  ;;  %v321_v34 = vld [vmem:[%s7394_s1 + $0x970] sm:$0xff]  ;;  %v324_v35 = vld [vmem:[%s7394_s1 + $0x988] sm:$0xff] }
  0x74   :  { %3299 = vmatprep.subr.bf16.mxu1 %v3298_v45  ;;  %v4669_v45 = vrot.slane %v4656_v39, %v4103_v11 }
  0x76   :  { %2725 = vmatpush1.bf16.msra.mxu0 %v2724_v50  ;;  %v298_v50 = vld [vmem:[%s7394_s1 + $0x8b8] sm:$0xff] }
  0x77   :  { %3301 = vmatpush1.bf16.msra.mxu1 %v3300_v51  ;;  %2727 = vmatprep.subr.bf16.mxu0 %v2726_v52  ;;  %v1230_v51 = vcombine.high %v4669_v45, %v4669_v45  ;;  %v2744_v52 = vpack.c.bf16 %v287_v43, %v283_v42  ;;  %v3322_v58 = vpack.c.bf16 %v298_v50, %v294_v49  ;;  %v323_v43 = vld [vmem:[%s7394_s1 + $0x980] sm:$0xff]  ;;  %v336_v49 = vld [vmem:[%s7394_s1 + $0x9e8] sm:$0xff]  ;;  %v334_v50 = vld [vmem:[%s7394_s1 + $0x9d8] sm:$0xff] }
  0x78   :  { %3303 = vmatprep.subr.bf16.mxu1 %v3302_v56  ;;  %v295_v56 = vld [vmem:[%s7394_s1 + $0x8a0] sm:$0xff]  ;;  %v2762_v42 = vpack.c.bf16 %v328_v36, %v324_v35  ;;  %v364_v35 = vld [vmem:[%s7394_s1 + $0xac8] sm:$0xff] }
  0x79   :  { %v368_v36 = vld [vmem:[%s7394_s1 + $0xae8] sm:$0xff] }
  0x7a   :  { %2729 = vmatpush1.bf16.msra.mxu0 %v2728_v63  ;;  %v306_v63 = vld [vmem:[%s7394_s1 + $0x8f8] sm:$0xff] }
  0x7b   :  { %3305 = vmatpush1.bf16.msra.mxu1 %v3304_v0  ;;  %2731 = vmatprep.subr.bf16.mxu0 %v2730_v1  ;;  %v2748_v0 = vpack.c.bf16 %v295_v56, %v291_v55  ;;  %v3326_v6 = vpack.c.bf16 %v306_v63, %v302_v62  ;;  %v331_v55 = vld [vmem:[%s7394_s1 + $0x9c0] sm:$0xff]  ;;  %v342_v62 = vld [vmem:[%s7394_s1 + $0xa18] sm:$0xff] }
  0x7c   :  { %3307 = vmatprep.subr.bf16.mxu1 %v3306_v5  ;;  %v301_v5 = vld [vmem:[%s7394_s1 + $0x8d0] sm:$0xff]  ;;  %v335_v56 = vld [vmem:[%s7394_s1 + $0x9e0] sm:$0xff]  ;;  %v346_v63 = vld [vmem:[%s7394_s1 + $0xa38] sm:$0xff] }
  0x7e   :  { %2733 = vmatpush1.bf16.msra.mxu0 %v2732_v12  ;;  %v314_v12 = vld [vmem:[%s7394_s1 + $0x938] sm:$0xff] }
  0x7f   :  { %3309 = vmatpush1.bf16.msra.mxu1 %v3308_v13  ;;  %2735 = vmatprep.subr.bf16.mxu0 %v2734_v14  ;;  %v2752_v13 = vpack.c.bf16 %v303_v4, %v299_v3  ;;  %v3328_v14 = vpack.c.bf16 %v305_v7, %v301_v5  ;;  %v3330_v19 = vpack.c.bf16 %v314_v12, %v310_v10  ;;  %v339_v3 = vld [vmem:[%s7394_s1 + $0xa00] sm:$0xff]  ;;  %v341_v5 = vld [vmem:[%s7394_s1 + $0xa10] sm:$0xff]  ;;  %v350_v10 = vld [vmem:[%s7394_s1 + $0xa58] sm:$0xff] }
  0x80   :  { %3311 = vmatprep.subr.bf16.mxu1 %v3310_v18  ;;  %v309_v18 = vld [vmem:[%s7394_s1 + $0x910] sm:$0xff]  ;;  %v343_v4 = vld [vmem:[%s7394_s1 + $0xa20] sm:$0xff]  ;;  %v354_v12 = vld [vmem:[%s7394_s1 + $0xa78] sm:$0xff] }
  0x81   :  { %v345_v7 = vld [vmem:[%s7394_s1 + $0xa30] sm:$0xff] }
  0x82   :  { %2737 = vmatpush1.bf16.msra.mxu0 %v2736_v26  ;;  %v322_v26 = vld [vmem:[%s7394_s1 + $0x978] sm:$0xff] }
  0x83   :  { %3313 = vmatpush1.bf16.msra.mxu1 %v3312_v27  ;;  %2739 = vmatprep.subr.bf16.mxu0 %v2738_v28  ;;  %v2756_v27 = vpack.c.bf16 %v311_v17, %v307_v16  ;;  %v3332_v28 = vpack.c.bf16 %v313_v20, %v309_v18  ;;  %v3334_v33 = vpack.c.bf16 %v322_v26, %v318_v23  ;;  %v347_v16 = vld [vmem:[%s7394_s1 + $0xa40] sm:$0xff]  ;;  %v349_v18 = vld [vmem:[%s7394_s1 + $0xa50] sm:$0xff]  ;;  %v358_v23 = vld [vmem:[%s7394_s1 + $0xa98] sm:$0xff] }
  0x84   :  { %3315 = vmatprep.subr.bf16.mxu1 %v3314_v32  ;;  %v317_v32 = vld [vmem:[%s7394_s1 + $0x950] sm:$0xff]  ;;  %v351_v17 = vld [vmem:[%s7394_s1 + $0xa60] sm:$0xff]  ;;  %v362_v26 = vld [vmem:[%s7394_s1 + $0xab8] sm:$0xff] }
  0x85   :  { %1428 = vmatmul.mubr.f32.vlgmr.msra.gmra.mrb[0].mxu0 %v4257_v24  ;;  %v353_v20 = vld [vmem:[%s7394_s1 + $0xa70] sm:$0xff] }
  0x86   :  { %2741 = vmatpush1.bf16.msra.mxu0 %v2740_v38  ;;  %2067 = vmatmul.mubr.f32.vlgmr.msra.gmra.mrb[0].mxu1 %v4257_v24  ;;  %v297_v24 = vld [vmem:[%s7394_s1 + $0x8b0] sm:$0xff]  ;;  %v330_v38 = vld [vmem:[%s7394_s1 + $0x9b8] sm:$0xff] }
  0x87   :  { %3317 = vmatpush1.bf16.msra.mxu1 %v3316_v40  ;;  %2743 = vmatprep.subr.bf16.mxu0 %v2742_v41  ;;  %v3324_v1 = vpack.c.bf16 %v297_v24, %v293_v57  ;;  %v2760_v40 = vpack.c.bf16 %v319_v31, %v315_v30  ;;  %v3336_v41 = vpack.c.bf16 %v321_v34, %v317_v32  ;;  %v333_v57 = vld [vmem:[%s7394_s1 + $0x9d0] sm:$0xff]  ;;  %v355_v30 = vld [vmem:[%s7394_s1 + $0xa80] sm:$0xff] }
  0x88   :  { %3319 = vmatprep.subr.bf16.mxu1 %v3318_v46  ;;  %1498 = vmatprep.mubr.f32.mxu0 %v1230_v51  ;;  %v325_v46 = vld [vmem:[%s7394_s1 + $0x990] sm:$0xff]  ;;  %v3338_v47 = vpack.c.bf16 %v330_v38, %v326_v37  ;;  %v359_v31 = vld [vmem:[%s7394_s1 + $0xaa0] sm:$0xff]  ;;  %v366_v37 = vld [vmem:[%s7394_s1 + $0xad8] sm:$0xff] }
  0x89   :  { %2137 = vmatprep.mubr.f32.mxu1 %v1230_v51  ;;  %v338_v51 = vld [vmem:[%s7394_s1 + $0x9f8] sm:$0xff]  ;;  %v337_v24 = vld [vmem:[%s7394_s1 + $0x9f0] sm:$0xff] }
  0x8a   :  { %2745 = vmatpush1.bf16.msra.mxu0 %v2744_v52  ;;  %v2764_v52 = vpack.c.bf16 %v327_v44, %v323_v43  ;;  %v357_v32 = vld [vmem:[%s7394_s1 + $0xa90] sm:$0xff]  ;;  %v370_v38 = vld [vmem:[%s7394_s1 + $0xaf8] sm:$0xff]  ;;  %v363_v43 = vld [vmem:[%s7394_s1 + $0xac0] sm:$0xff] }
  0x8b   :  { %3321 = vmatpush1.bf16.msra.mxu1 %v3320_v53  ;;  %2747 = vmatprep.subr.bf16.mxu0 %v2746_v54  ;;  %v3340_v53 = vpack.c.bf16 %v329_v25, %v325_v46  ;;  %v2766_v54 = vpack.c.bf16 %v336_v49, %v332_v48  ;;  %v361_v34 = vld [vmem:[%s7394_s1 + $0xab0] sm:$0xff]  ;;  %v367_v44 = vld [vmem:[%s7394_s1 + $0xae0] sm:$0xff]  ;;  %v372_v48 = vld [vmem:[%s7394_s1 + $0xb08] sm:$0xff] }
  0x8c   :  { %3323 = vmatprep.subr.bf16.mxu1 %v3322_v58  ;;  %v3342_v58 = vpack.c.bf16 %v338_v51, %v334_v50  ;;  %v365_v46 = vld [vmem:[%s7394_s1 + $0xad0] sm:$0xff]  ;;  %v376_v49 = vld [vmem:[%s7394_s1 + $0xb28] sm:$0xff]  ;;  %v374_v50 = vld [vmem:[%s7394_s1 + $0xb18] sm:$0xff] }
  0x8d   :  { %v369_v25 = vld [vmem:[%s7394_s1 + $0xaf0] sm:$0xff]  ;;  %v378_v51 = vld [vmem:[%s7394_s1 + $0xb38] sm:$0xff] }
  0x8e   :  { %2749 = vmatpush1.bf16.msra.mxu0 %v2748_v0  ;;  %v2768_v0 = vpack.c.bf16 %v335_v56, %v331_v55  ;;  %v371_v55 = vld [vmem:[%s7394_s1 + $0xb00] sm:$0xff] }
  0x8f   :  { %3325 = vmatpush1.bf16.msra.mxu1 %v3324_v1  ;;  %2751 = vmatprep.subr.bf16.mxu0 %v2750_v2  ;;  %v3344_v1 = vpack.c.bf16 %v337_v24, %v333_v57  ;;  %v2770_v2 = vpack.c.bf16 %v344_v60, %v340_v59  ;;  %v375_v56 = vld [vmem:[%s7394_s1 + $0xb20] sm:$0xff]  ;;  %v373_v57 = vld [vmem:[%s7394_s1 + $0xb10] sm:$0xff]  ;;  %v380_v59 = vld [vmem:[%s7394_s1 + $0xb48] sm:$0xff] }
  0x90   :  { %3327 = vmatprep.subr.bf16.mxu1 %v3326_v6  ;;  %v3346_v6 = vpack.c.bf16 %v346_v63, %v342_v62  ;;  %v377_v24 = vld [vmem:[%s7394_s1 + $0xb30] sm:$0xff]  ;;  %v384_v60 = vld [vmem:[%s7394_s1 + $0xb68] sm:$0xff]  ;;  %v382_v62 = vld [vmem:[%s7394_s1 + $0xb58] sm:$0xff] }
  0x91   :  { %v386_v63 = vld [vmem:[%s7394_s1 + $0xb78] sm:$0xff] }
  0x92   :  { %2753 = vmatpush1.bf16.msra.mxu0 %v2752_v13  ;;  %v2772_v13 = vpack.c.bf16 %v343_v4, %v339_v3  ;;  %v379_v3 = vld [vmem:[%s7394_s1 + $0xb40] sm:$0xff] }
  0x93   :  { %3329 = vmatpush1.bf16.msra.mxu1 %v3328_v14  ;;  %2755 = vmatprep.subr.bf16.mxu0 %v2754_v15  ;;  %v3348_v14 = vpack.c.bf16 %v345_v7, %v341_v5  ;;  %v2774_v15 = vpack.c.bf16 %v352_v9, %v348_v8  ;;  %v383_v4 = vld [vmem:[%s7394_s1 + $0xb60] sm:$0xff]  ;;  %v381_v5 = vld [vmem:[%s7394_s1 + $0xb50] sm:$0xff]  ;;  %v388_v8 = vld [vmem:[%s7394_s1 + $0xb88] sm:$0xff] }
  0x94   :  { %3331 = vmatprep.subr.bf16.mxu1 %v3330_v19  ;;  %v3350_v19 = vpack.c.bf16 %v354_v12, %v350_v10  ;;  %v385_v7 = vld [vmem:[%s7394_s1 + $0xb70] sm:$0xff]  ;;  %v392_v9 = vld [vmem:[%s7394_s1 + $0xba8] sm:$0xff]  ;;  %v390_v10 = vld [vmem:[%s7394_s1 + $0xb98] sm:$0xff] }
  0x95   :  { %v394_v12 = vld [vmem:[%s7394_s1 + $0xbb8] sm:$0xff] }
  0x96   :  { %2757 = vmatpush1.bf16.msra.mxu0 %v2756_v27  ;;  %v2776_v27 = vpack.c.bf16 %v351_v17, %v347_v16  ;;  %v387_v16 = vld [vmem:[%s7394_s1 + $0xb80] sm:$0xff] }
  0x97   :  { %3333 = vmatpush1.bf16.msra.mxu1 %v3332_v28  ;;  %2759 = vmatprep.subr.bf16.mxu0 %v2758_v29  ;;  %v3352_v28 = vpack.c.bf16 %v353_v20, %v349_v18  ;;  %v2778_v29 = vpack.c.bf16 %v360_v22, %v356_v21  ;;  %v391_v17 = vld [vmem:[%s7394_s1 + $0xba0] sm:$0xff]  ;;  %v389_v18 = vld [vmem:[%s7394_s1 + $0xb90] sm:$0xff]  ;;  %v396_v21 = vld [vmem:[%s7394_s1 + $0xbc8] sm:$0xff] }
  0x98   :  { %3335 = vmatprep.subr.bf16.mxu1 %v3334_v33  ;;  %v3354_v33 = vpack.c.bf16 %v362_v26, %v358_v23  ;;  %v393_v20 = vld [vmem:[%s7394_s1 + $0xbb0] sm:$0xff]  ;;  %v400_v22 = vld [vmem:[%s7394_s1 + $0xbe8] sm:$0xff]  ;;  %v398_v23 = vld [vmem:[%s7394_s1 + $0xbd8] sm:$0xff] }
  0x99   :  { %v402_v26 = vld [vmem:[%s7394_s1 + $0xbf8] sm:$0xff] }
  0x9a   :  { %2761 = vmatpush1.bf16.msra.mxu0 %v2760_v40  ;;  %v2780_v40 = vpack.c.bf16 %v359_v31, %v355_v30  ;;  %v395_v30 = vld [vmem:[%s7394_s1 + $0xbc0] sm:$0xff] }
  0x9b   :  { %3337 = vmatpush1.bf16.msra.mxu1 %v3336_v41  ;;  %2763 = vmatprep.subr.bf16.mxu0 %v2762_v42  ;;  %v3356_v41 = vpack.c.bf16 %v361_v34, %v357_v32  ;;  %v2782_v42 = vpack.c.bf16 %v368_v36, %v364_v35  ;;  %v399_v31 = vld [vmem:[%s7394_s1 + $0xbe0] sm:$0xff]  ;;  %v397_v32 = vld [vmem:[%s7394_s1 + $0xbd0] sm:$0xff]  ;;  %v404_v35 = vld [vmem:[%s7394_s1 + $0xc08] sm:$0xff] }
  0x9c   :  { %3339 = vmatprep.subr.bf16.mxu1 %v3338_v47  ;;  %v3358_v47 = vpack.c.bf16 %v370_v38, %v366_v37  ;;  %v401_v34 = vld [vmem:[%s7394_s1 + $0xbf0] sm:$0xff]  ;;  %v408_v36 = vld [vmem:[%s7394_s1 + $0xc28] sm:$0xff]  ;;  %v1215_v37 = vcombine.high %v4656_v39, %v4656_v39  ;;  %v406_v38 = vld [vmem:[%s7394_s1 + $0xc18] sm:$0xff] }
  0x9d   :  { %v407_v39 = vld [vmem:[%s7394_s1 + $0xc20] sm:$0xff] }
  0x9e   :  { %2765 = vmatpush1.bf16.msra.mxu0 %v2764_v52  ;;  %v2784_v52 = vpack.c.bf16 %v367_v44, %v363_v43  ;;  %v2802_v43 = vpack.c.bf16 %v408_v36, %v404_v35  ;;  %v403_v44 = vld [vmem:[%s7394_s1 + $0xc00] sm:$0xff]  ;;  %v441_v35 = vld [vmem:[%s7394_s1 + $0xd30] sm:$0xff]  ;;  %v444_v36 = vld [vmem:[%s7394_s1 + $0xd48] sm:$0xff] }
  0x9f   :  { %3341 = vmatpush1.bf16.msra.mxu1 %v3340_v53  ;;  %2767 = vmatprep.subr.bf16.mxu0 %v2766_v54  ;;  %v3360_v53 = vpack.c.bf16 %v369_v25, %v365_v46  ;;  %v2786_v54 = vpack.c.bf16 %v376_v49, %v372_v48  ;;  %v405_v46 = vld [vmem:[%s7394_s1 + $0xc10] sm:$0xff]  ;;  %v412_v48 = vld [vmem:[%s7394_s1 + $0xc48] sm:$0xff] }
  0xa0   :  { %3343 = vmatprep.subr.bf16.mxu1 %v3342_v58  ;;  %v3362_v58 = vpack.c.bf16 %v378_v51, %v374_v50  ;;  %v409_v25 = vld [vmem:[%s7394_s1 + $0xc30] sm:$0xff]  ;;  %v416_v49 = vld [vmem:[%s7394_s1 + $0xc68] sm:$0xff]  ;;  %v5047_v50 = vrot.slane %v1215_v37, %v4103_v11  ;;  %v414_v51 = vld [vmem:[%s7394_s1 + $0xc58] sm:$0xff] }
  0xa1   :  { %v448_v37 = vld [vmem:[%s7394_s1 + $0xd68] sm:$0xff] }
  0xa2   :  { %2769 = vmatpush1.bf16.msra.mxu0 %v2768_v0  ;;  %v2788_v0 = vpack.c.bf16 %v375_v56, %v371_v55  ;;  %v2806_v55 = vpack.c.bf16 %v416_v49, %v412_v48  ;;  %v411_v56 = vld [vmem:[%s7394_s1 + $0xc40] sm:$0xff]  ;;  %v452_v48 = vld [vmem:[%s7394_s1 + $0xd88] sm:$0xff] }
  0xa3   :  { %3345 = vmatpush1.bf16.msra.mxu1 %v3344_v1  ;;  %2771 = vmatprep.subr.bf16.mxu0 %v2770_v2  ;;  %v3364_v1 = vpack.c.bf16 %v377_v24, %v373_v57  ;;  %v2790_v2 = vpack.c.bf16 %v384_v60, %v380_v59  ;;  %v415_v57 = vld [vmem:[%s7394_s1 + $0xc60] sm:$0xff]  ;;  %v417_v59 = vld [vmem:[%s7394_s1 + $0xc70] sm:$0xff]  ;;  %v420_v60 = vld [vmem:[%s7394_s1 + $0xc88] sm:$0xff] }
  0xa4   :  { %3347 = vmatprep.subr.bf16.mxu1 %v3346_v6  ;;  %v3366_v6 = vpack.c.bf16 %v386_v63, %v382_v62  ;;  %v424_v62 = vld [vmem:[%s7394_s1 + $0xca8] sm:$0xff]  ;;  %v1231_v63 = vcombine.high %v5047_v50, %v5047_v50 }
  0xa5   :  { %v456_v49 = vld [vmem:[%s7394_s1 + $0xda8] sm:$0xff] }
  0xa6   :  { %2773 = vmatpush1.bf16.msra.mxu0 %v2772_v13  ;;  %v2792_v13 = vpack.c.bf16 %v383_v4, %v379_v3  ;;  %v2810_v4 = vpack.c.bf16 %v424_v62, %v420_v60  ;;  %v460_v60 = vld [vmem:[%s7394_s1 + $0xdc8] sm:$0xff] }
  0xa7   :  { %3349 = vmatpush1.bf16.msra.mxu1 %v3348_v14  ;;  %2775 = vmatprep.subr.bf16.mxu0 %v2774_v15  ;;  %v3368_v14 = vpack.c.bf16 %v385_v7, %v381_v5  ;;  %v2794_v15 = vpack.c.bf16 %v392_v9, %v388_v8  ;;  %v419_v5 = vld [vmem:[%s7394_s1 + $0xc80] sm:$0xff]  ;;  %v421_v7 = vld [vmem:[%s7394_s1 + $0xc90] sm:$0xff]  ;;  %v428_v9 = vld [vmem:[%s7394_s1 + $0xcc8] sm:$0xff] }
  0xa8   :  { %3351 = vmatprep.subr.bf16.mxu1 %v3350_v19  ;;  %v3370_v19 = vpack.c.bf16 %v394_v12, %v390_v10  ;;  %v432_v10 = vld [vmem:[%s7394_s1 + $0xce8] sm:$0xff]  ;;  %v430_v12 = vld [vmem:[%s7394_s1 + $0xcd8] sm:$0xff] }
  0xa9   :  { %v464_v62 = vld [vmem:[%s7394_s1 + $0xde8] sm:$0xff] }
  0xaa   :  { %2777 = vmatpush1.bf16.msra.mxu0 %v2776_v27  ;;  %v2796_v27 = vpack.c.bf16 %v391_v17, %v387_v16  ;;  %v2814_v16 = vpack.c.bf16 %v432_v10, %v428_v9  ;;  %v427_v17 = vld [vmem:[%s7394_s1 + $0xcc0] sm:$0xff]  ;;  %v472_v9 = vld [vmem:[%s7394_s1 + $0xe28] sm:$0xff]  ;;  %v470_v10 = vld [vmem:[%s7394_s1 + $0xe18] sm:$0xff] }
  0xab   :  { %3353 = vmatpush1.bf16.msra.mxu1 %v3352_v28  ;;  %2779 = vmatprep.subr.bf16.mxu0 %v2778_v29  ;;  %v3372_v28 = vpack.c.bf16 %v393_v20, %v389_v18  ;;  %v2798_v29 = vpack.c.bf16 %v400_v22, %v396_v21  ;;  %v431_v18 = vld [vmem:[%s7394_s1 + $0xce0] sm:$0xff]  ;;  %v433_v21 = vld [vmem:[%s7394_s1 + $0xcf0] sm:$0xff]  ;;  %v436_v22 = vld [vmem:[%s7394_s1 + $0xd08] sm:$0xff] }
  0xac   :  { %3355 = vmatprep.subr.bf16.mxu1 %v3354_v33  ;;  %v3374_v33 = vpack.c.bf16 %v402_v26, %v398_v23  ;;  %v440_v23 = vld [vmem:[%s7394_s1 + $0xd28] sm:$0xff]  ;;  %v438_v26 = vld [vmem:[%s7394_s1 + $0xd18] sm:$0xff] }
  0xae   :  { %2781 = vmatpush1.bf16.msra.mxu0 %v2780_v40  ;;  %v410_v40 = vld [vmem:[%s7394_s1 + $0xc38] sm:$0xff] }
  0xaf   :  { %3357 = vmatpush1.bf16.msra.mxu1 %v3356_v41  ;;  %2783 = vmatprep.subr.bf16.mxu0 %v2782_v42  ;;  %v2800_v41 = vpack.c.bf16 %v399_v31, %v395_v30  ;;  %v3376_v42 = vpack.c.bf16 %v401_v34, %v397_v32  ;;  %v2818_v30 = vpack.c.bf16 %v440_v23, %v436_v22  ;;  %v435_v31 = vld [vmem:[%s7394_s1 + $0xd00] sm:$0xff]  ;;  %v480_v22 = vld [vmem:[%s7394_s1 + $0xe68] sm:$0xff]  ;;  %v478_v23 = vld [vmem:[%s7394_s1 + $0xe58] sm:$0xff] }
  0xb0   :  { %3359 = vmatprep.subr.bf16.mxu1 %v3358_v47  ;;  %v3378_v47 = vpack.c.bf16 %v410_v40, %v406_v38  ;;  %v439_v32 = vld [vmem:[%s7394_s1 + $0xd20] sm:$0xff]  ;;  %v446_v38 = vld [vmem:[%s7394_s1 + $0xd58] sm:$0xff] }
  0xb1   :  { %v450_v40 = vld [vmem:[%s7394_s1 + $0xd78] sm:$0xff] }
  0xb2   :  { %2785 = vmatpush1.bf16.msra.mxu0 %v2784_v52  ;;  %v418_v52 = vld [vmem:[%s7394_s1 + $0xc78] sm:$0xff] }
  0xb3   :  { %3361 = vmatpush1.bf16.msra.mxu1 %v3360_v53  ;;  %2787 = vmatprep.subr.bf16.mxu0 %v2786_v54  ;;  %v2804_v53 = vpack.c.bf16 %v407_v39, %v403_v44  ;;  %v3380_v54 = vpack.c.bf16 %v409_v25, %v405_v46  ;;  %v3382_v24 = vpack.c.bf16 %v418_v52, %v414_v51  ;;  %v443_v44 = vld [vmem:[%s7394_s1 + $0xd40] sm:$0xff]  ;;  %v445_v46 = vld [vmem:[%s7394_s1 + $0xd50] sm:$0xff]  ;;  %v454_v51 = vld [vmem:[%s7394_s1 + $0xd98] sm:$0xff] }
  0xb4   :  { %3363 = vmatprep.subr.bf16.mxu1 %v3362_v58  ;;  %v413_v58 = vld [vmem:[%s7394_s1 + $0xc50] sm:$0xff]  ;;  %v447_v39 = vld [vmem:[%s7394_s1 + $0xd60] sm:$0xff]  ;;  %v458_v52 = vld [vmem:[%s7394_s1 + $0xdb8] sm:$0xff] }
  0xb5   :  { %v3384_v3 = vpack.c.bf16 %v417_v59, %v413_v58  ;;  %v449_v25 = vld [vmem:[%s7394_s1 + $0xd70] sm:$0xff] }
  0xb6   :  { %2789 = vmatpush1.bf16.msra.mxu0 %v2788_v0  ;;  %v422_v0 = vld [vmem:[%s7394_s1 + $0xc98] sm:$0xff]  ;;  %v453_v58 = vld [vmem:[%s7394_s1 + $0xd90] sm:$0xff] }
  0xb7   :  { %3365 = vmatpush1.bf16.msra.mxu1 %v3364_v1  ;;  %2791 = vmatprep.subr.bf16.mxu0 %v2790_v2  ;;  %v426_v1 = vld [vmem:[%s7394_s1 + $0xcb8] sm:$0xff]  ;;  %v2808_v2 = vpack.c.bf16 %v415_v57, %v411_v56  ;;  %v451_v56 = vld [vmem:[%s7394_s1 + $0xd80] sm:$0xff]  ;;  %v457_v59 = vld [vmem:[%s7394_s1 + $0xdb0] sm:$0xff] }
  0xb8   :  { %3367 = vmatprep.subr.bf16.mxu1 %v3366_v6  ;;  %v423_v6 = vld [vmem:[%s7394_s1 + $0xca0] sm:$0xff]  ;;  %v3386_v8 = vpack.c.bf16 %v426_v1, %v422_v0  ;;  %v466_v0 = vld [vmem:[%s7394_s1 + $0xdf8] sm:$0xff] }
  0xb9   :  { %v455_v57 = vld [vmem:[%s7394_s1 + $0xda0] sm:$0xff] }
  0xba   :  { %2793 = vmatpush1.bf16.msra.mxu0 %v2792_v13  ;;  %v434_v13 = vld [vmem:[%s7394_s1 + $0xcf8] sm:$0xff]  ;;  %v2828_v1 = vpack.c.bf16 %v455_v57, %v451_v56  ;;  %v495_v56 = vld [vmem:[%s7394_s1 + $0xee0] sm:$0xff]  ;;  %v493_v57 = vld [vmem:[%s7394_s1 + $0xed0] sm:$0xff] }
  0xbb   :  { %3369 = vmatpush1.bf16.msra.mxu1 %v3368_v14  ;;  %2795 = vmatprep.subr.bf16.mxu0 %v2794_v15  ;;  %v2812_v14 = vpack.c.bf16 %v423_v6, %v419_v5  ;;  %v3390_v20 = vpack.c.bf16 %v434_v13, %v430_v12  ;;  %v463_v5 = vld [vmem:[%s7394_s1 + $0xde0] sm:$0xff]  ;;  %v461_v6 = vld [vmem:[%s7394_s1 + $0xdd0] sm:$0xff]  ;;  %v474_v12 = vld [vmem:[%s7394_s1 + $0xe38] sm:$0xff] }
  0xbc   :  { %3371 = vmatprep.subr.bf16.mxu1 %v3370_v19  ;;  %v429_v19 = vld [vmem:[%s7394_s1 + $0xcd0] sm:$0xff] }
  0xbe   :  { %2797 = vmatpush1.bf16.msra.mxu0 %v2796_v27  ;;  %v442_v27 = vld [vmem:[%s7394_s1 + $0xd38] sm:$0xff] }
  0xbf   :  { %3373 = vmatpush1.bf16.msra.mxu1 %v3372_v28  ;;  %2799 = vmatprep.subr.bf16.mxu0 %v2798_v29  ;;  %v2816_v28 = vpack.c.bf16 %v431_v18, %v427_v17  ;;  %v3392_v29 = vpack.c.bf16 %v433_v21, %v429_v19  ;;  %v3394_v34 = vpack.c.bf16 %v442_v27, %v438_v26  ;;  %v471_v17 = vld [vmem:[%s7394_s1 + $0xe20] sm:$0xff]  ;;  %v469_v18 = vld [vmem:[%s7394_s1 + $0xe10] sm:$0xff]  ;;  %v476_v21 = vld [vmem:[%s7394_s1 + $0xe48] sm:$0xff] }
  0xc0   :  { %3375 = vmatprep.subr.bf16.mxu1 %v3374_v33  ;;  %v437_v33 = vld [vmem:[%s7394_s1 + $0xd10] sm:$0xff]  ;;  %v3410_v19 = vpack.c.bf16 %v474_v12, %v470_v10  ;;  %v482_v26 = vld [vmem:[%s7394_s1 + $0xe78] sm:$0xff] }
  0xc1   :  { %v514_v10 = vld [vmem:[%s7394_s1 + $0xf78] sm:$0xff] }
  0xc2   :  { %2801 = vmatpush1.bf16.msra.mxu0 %v2800_v41  ;;  %v2820_v41 = vpack.c.bf16 %v439_v32, %v435_v31  ;;  %v479_v31 = vld [vmem:[%s7394_s1 + $0xe60] sm:$0xff]  ;;  %v477_v32 = vld [vmem:[%s7394_s1 + $0xe50] sm:$0xff] }
  0xc3   :  { %3377 = vmatpush1.bf16.msra.mxu1 %v3376_v42  ;;  %2803 = vmatprep.subr.bf16.mxu0 %v2802_v43  ;;  %v3396_v42 = vpack.c.bf16 %v441_v35, %v437_v33  ;;  %v2822_v43 = vpack.c.bf16 %v448_v37, %v444_v36  ;;  %v3414_v33 = vpack.c.bf16 %v482_v26, %v478_v23  ;;  %v484_v35 = vld [vmem:[%s7394_s1 + $0xe88] sm:$0xff]  ;;  %v486_v37 = vld [vmem:[%s7394_s1 + $0xe98] sm:$0xff] }
  0xc4   :  { %3379 = vmatprep.subr.bf16.mxu1 %v3378_v47  ;;  %v3398_v47 = vpack.c.bf16 %v450_v40, %v446_v38  ;;  %v488_v36 = vld [vmem:[%s7394_s1 + $0xea8] sm:$0xff]  ;;  %v490_v38 = vld [vmem:[%s7394_s1 + $0xeb8] sm:$0xff] }
  0xc5   :  { %1499 = vmatmul.mubr.f32.vlgmr.msra.gmra.mrb[0].mxu0 %v4669_v45  ;;  %v522_v23 = vld [vmem:[%s7394_s1 + $0xfb8] sm:$0xff] }
  0xc6   :  { %2805 = vmatpush1.bf16.msra.mxu0 %v2804_v53  ;;  %2138 = vmatmul.mubr.f32.vlgmr.msra.gmra.mrb[0].mxu1 %v4669_v45  ;;  %v425_v45 = vld [vmem:[%s7394_s1 + $0xcb0] sm:$0xff]  ;;  %v2824_v53 = vpack.c.bf16 %v447_v39, %v443_v44  ;;  %v487_v44 = vld [vmem:[%s7394_s1 + $0xea0] sm:$0xff] }
  0xc7   :  { %3381 = vmatpush1.bf16.msra.mxu1 %v3380_v54  ;;  %2807 = vmatprep.subr.bf16.mxu0 %v2806_v55  ;;  %v3388_v15 = vpack.c.bf16 %v425_v45, %v421_v7  ;;  %v3400_v54 = vpack.c.bf16 %v449_v25, %v445_v46  ;;  %v2826_v55 = vpack.c.bf16 %v456_v49, %v452_v48  ;;  %v468_v45 = vld [vmem:[%s7394_s1 + $0xe08] sm:$0xff]  ;;  %v485_v39 = vld [vmem:[%s7394_s1 + $0xe90] sm:$0xff]  ;;  %v494_v49 = vld [vmem:[%s7394_s1 + $0xed8] sm:$0xff] }
  0xc8   :  { %3383 = vmatprep.subr.bf16.mxu1 %v3382_v24  ;;  %1569 = vmatprep.mubr.f32.mxu0 %v1231_v63  ;;  %v3402_v24 = vpack.c.bf16 %v458_v52, %v454_v51  ;;  %v3418_v46 = vpack.c.bf16 %v490_v38, %v486_v37  ;;  %v492_v25 = vld [vmem:[%s7394_s1 + $0xec8] sm:$0xff]  ;;  %v498_v51 = vld [vmem:[%s7394_s1 + $0xef8] sm:$0xff] }
  0xc9   :  { %2208 = vmatprep.mubr.f32.mxu1 %v1231_v63  ;;  %v462_v63 = vld [vmem:[%s7394_s1 + $0xdd8] sm:$0xff]  ;;  %v496_v48 = vld [vmem:[%s7394_s1 + $0xee8] sm:$0xff] }
  0xca   :  { %2809 = vmatpush1.bf16.msra.mxu0 %v2808_v2  ;;  %v3404_v2 = vpack.c.bf16 %v457_v59, %v453_v58  ;;  %v3406_v7 = vpack.c.bf16 %v466_v0, %v462_v63  ;;  %v3422_v58 = vpack.c.bf16 %v498_v51, %v494_v49  ;;  %v500_v59 = vld [vmem:[%s7394_s1 + $0xf08] sm:$0xff]  ;;  %v506_v63 = vld [vmem:[%s7394_s1 + $0xf38] sm:$0xff]  ;;  %v5422_v51 = vld [vmem:[%s7395_s0 + $0x10] sm:$0xff] }
  0xcb   :  { %3385 = vmatpush1.bf16.msra.mxu1 %v3384_v3  ;;  %2811 = vmatprep.subr.bf16.mxu0 %v2810_v4  ;;  %v2830_v3 = vpack.c.bf16 %v464_v62, %v460_v60  ;;  %v459_v4 = vld [vmem:[%s7394_s1 + $0xdc0] sm:$0xff]  ;;  %v504_v60 = vld [vmem:[%s7394_s1 + $0xf28] sm:$0xff]  ;;  %v502_v62 = vld [vmem:[%s7394_s1 + $0xf18] sm:$0xff] }
  0xcc   :  { %3387 = vmatprep.subr.bf16.mxu1 %v3386_v8  ;;  %v465_v8 = vld [vmem:[%s7394_s1 + $0xdf0] sm:$0xff]  ;;  %v2832_v13 = vpack.c.bf16 %v463_v5, %v459_v4  ;;  %v503_v4 = vld [vmem:[%s7394_s1 + $0xf20] sm:$0xff]  ;;  %v530_v37 = vld [vmem:[%s7394_s1 + $0xff8] sm:$0xff] }
  0xcd   :  { %v501_v5 = vld [vmem:[%s7394_s1 + $0xf10] sm:$0xff]  ;;  %v538_v49 = vld [vmem:[%s7394_s1 + $0x1038] sm:$0xff] }
  0xce   :  { %2813 = vmatpush1.bf16.msra.mxu0 %v2812_v14  ;;  %v3408_v14 = vpack.c.bf16 %v465_v8, %v461_v6  ;;  %v3426_v6 = vpack.c.bf16 %v506_v63, %v502_v62  ;;  %v508_v8 = vld [vmem:[%s7394_s1 + $0xf48] sm:$0xff]  ;;  %v5444_v62 = vrot.slane %v5422_v51, %v4103_v11  ;;  %v542_v63 = vld [vmem:[%s7394_s1 + $0x1058] sm:$0xff] }
  0xcf   :  { %3389 = vmatpush1.bf16.msra.mxu1 %v3388_v15  ;;  %2815 = vmatprep.subr.bf16.mxu0 %v2814_v16  ;;  %v2834_v15 = vpack.c.bf16 %v472_v9, %v468_v45  ;;  %v467_v16 = vld [vmem:[%s7394_s1 + $0xe00] sm:$0xff]  ;;  %v512_v45 = vld [vmem:[%s7394_s1 + $0xf68] sm:$0xff]  ;;  %v510_v9 = vld [vmem:[%s7394_s1 + $0xf58] sm:$0xff] }
  0xd0   :  { %3391 = vmatprep.subr.bf16.mxu1 %v3390_v20  ;;  %v473_v20 = vld [vmem:[%s7394_s1 + $0xe30] sm:$0xff]  ;;  %v2836_v27 = vpack.c.bf16 %v471_v17, %v467_v16  ;;  %v511_v16 = vld [vmem:[%s7394_s1 + $0xf60] sm:$0xff] }
  0xd1   :  { %v509_v17 = vld [vmem:[%s7394_s1 + $0xf50] sm:$0xff] }
  0xd2   :  { %2817 = vmatpush1.bf16.msra.mxu0 %v2816_v28  ;;  %v3412_v28 = vpack.c.bf16 %v473_v20, %v469_v18  ;;  %v3430_v18 = vpack.c.bf16 %v514_v10, %v510_v9  ;;  %v516_v20 = vld [vmem:[%s7394_s1 + $0xf88] sm:$0xff]  ;;  %v1247_v10 = vcombine.high %v5444_v62, %v5444_v62 }
  0xd3   :  { %3393 = vmatpush1.bf16.msra.mxu1 %v3392_v29  ;;  %2819 = vmatprep.subr.bf16.mxu0 %v2818_v30  ;;  %v2838_v29 = vpack.c.bf16 %v480_v22, %v476_v21  ;;  %v475_v30 = vld [vmem:[%s7394_s1 + $0xe40] sm:$0xff]  ;;  %v520_v21 = vld [vmem:[%s7394_s1 + $0xfa8] sm:$0xff]  ;;  %v518_v22 = vld [vmem:[%s7394_s1 + $0xf98] sm:$0xff] }
  0xd4   :  { %3395 = vmatprep.subr.bf16.mxu1 %v3394_v34  ;;  %v481_v34 = vld [vmem:[%s7394_s1 + $0xe70] sm:$0xff]  ;;  %v2840_v40 = vpack.c.bf16 %v479_v31, %v475_v30  ;;  %v519_v30 = vld [vmem:[%s7394_s1 + $0xfa0] sm:$0xff]  ;;  %v552_v9 = vld [vmem:[%s7394_s1 + $0x10a8] sm:$0xff] }
  0xd5   :  { %v517_v31 = vld [vmem:[%s7394_s1 + $0xf90] sm:$0xff] }
  0xd6   :  { %2821 = vmatpush1.bf16.msra.mxu0 %v2820_v41  ;;  %v3416_v41 = vpack.c.bf16 %v481_v34, %v477_v32  ;;  %v3434_v32 = vpack.c.bf16 %v522_v23, %v518_v22  ;;  %v524_v34 = vld [vmem:[%s7394_s1 + $0xfc8] sm:$0xff]  ;;  %v558_v23 = vld [vmem:[%s7394_s1 + $0x10d8] sm:$0xff] }
  0xd7   :  { %3397 = vmatpush1.bf16.msra.mxu1 %v3396_v42  ;;  %2823 = vmatprep.subr.bf16.mxu0 %v2822_v43  ;;  %v2842_v42 = vpack.c.bf16 %v488_v36, %v484_v35  ;;  %v483_v43 = vld [vmem:[%s7394_s1 + $0xe80] sm:$0xff]  ;;  %v528_v35 = vld [vmem:[%s7394_s1 + $0xfe8] sm:$0xff]  ;;  %v526_v36 = vld [vmem:[%s7394_s1 + $0xfd8] sm:$0xff] }
  0xd8   :  { %3399 = vmatprep.subr.bf16.mxu1 %v3398_v47  ;;  %v489_v47 = vld [vmem:[%s7394_s1 + $0xeb0] sm:$0xff]  ;;  %v2844_v52 = vpack.c.bf16 %v487_v44, %v483_v43  ;;  %v527_v43 = vld [vmem:[%s7394_s1 + $0xfe0] sm:$0xff]  ;;  %v560_v22 = vld [vmem:[%s7394_s1 + $0x10e8] sm:$0xff] }
  0xd9   :  { %v525_v44 = vld [vmem:[%s7394_s1 + $0xfd0] sm:$0xff] }
  0xda   :  { %2825 = vmatpush1.bf16.msra.mxu0 %v2824_v53  ;;  %v3420_v53 = vpack.c.bf16 %v489_v47, %v485_v39  ;;  %v3438_v39 = vpack.c.bf16 %v530_v37, %v526_v36  ;;  %v532_v47 = vld [vmem:[%s7394_s1 + $0x1008] sm:$0xff]  ;;  %v566_v37 = vld [vmem:[%s7394_s1 + $0x1118] sm:$0xff] }
  0xdb   :  { %3401 = vmatpush1.bf16.msra.mxu1 %v3400_v54  ;;  %2827 = vmatprep.subr.bf16.mxu0 %v2826_v55  ;;  %v2846_v54 = vpack.c.bf16 %v496_v48, %v492_v25  ;;  %v491_v55 = vld [vmem:[%s7394_s1 + $0xec0] sm:$0xff]  ;;  %v536_v25 = vld [vmem:[%s7394_s1 + $0x1028] sm:$0xff]  ;;  %v534_v48 = vld [vmem:[%s7394_s1 + $0x1018] sm:$0xff] }
  0xdc   :  { %3403 = vmatprep.subr.bf16.mxu1 %v3402_v24  ;;  %v497_v24 = vld [vmem:[%s7394_s1 + $0xef0] sm:$0xff]  ;;  %v2848_v0 = vpack.c.bf16 %v495_v56, %v491_v55  ;;  %v531_v55 = vld [vmem:[%s7394_s1 + $0x1000] sm:$0xff]  ;;  %v568_v36 = vld [vmem:[%s7394_s1 + $0x1128] sm:$0xff] }
  0xdd   :  { %v535_v56 = vld [vmem:[%s7394_s1 + $0x1020] sm:$0xff] }
  0xde   :  { %2829 = vmatpush1.bf16.msra.mxu0 %v2828_v1  ;;  %v3424_v1 = vpack.c.bf16 %v497_v24, %v493_v57  ;;  %v533_v57 = vld [vmem:[%s7394_s1 + $0x1010] sm:$0xff] }
  0xdf   :  { %3405 = vmatpush1.bf16.msra.mxu1 %v3404_v2  ;;  %2831 = vmatprep.subr.bf16.mxu0 %v2830_v3  ;;  %v2850_v2 = vpack.c.bf16 %v504_v60, %v500_v59  ;;  %v499_v3 = vld [vmem:[%s7394_s1 + $0xf00] sm:$0xff]  ;;  %v537_v24 = vld [vmem:[%s7394_s1 + $0x1030] sm:$0xff]  ;;  %v540_v59 = vld [vmem:[%s7394_s1 + $0x1048] sm:$0xff] }
  0xe0   :  { %3407 = vmatprep.subr.bf16.mxu1 %v3406_v7  ;;  %v505_v7 = vld [vmem:[%s7394_s1 + $0xf30] sm:$0xff]  ;;  %v2852_v12 = vpack.c.bf16 %v503_v4, %v499_v3  ;;  %v544_v60 = vld [vmem:[%s7394_s1 + $0x1068] sm:$0xff]  ;;  %v539_v4 = vld [vmem:[%s7394_s1 + $0x1040] sm:$0xff] }
  0xe1   :  { %v2870_v3 = vpack.c.bf16 %v544_v60, %v540_v59  ;;  %v577_v59 = vld [vmem:[%s7394_s1 + $0x1170] sm:$0xff]  ;;  %v580_v60 = vld [vmem:[%s7394_s1 + $0x1188] sm:$0xff] }
  0xe2   :  { %2833 = vmatpush1.bf16.msra.mxu0 %v2832_v13  ;;  %v3428_v13 = vpack.c.bf16 %v505_v7, %v501_v5  ;;  %v543_v5 = vld [vmem:[%s7394_s1 + $0x1060] sm:$0xff] }
  0xe3   :  { %3409 = vmatpush1.bf16.msra.mxu1 %v3408_v14  ;;  %2835 = vmatprep.subr.bf16.mxu0 %v2834_v15  ;;  %v2854_v14 = vpack.c.bf16 %v512_v45, %v508_v8  ;;  %v507_v15 = vld [vmem:[%s7394_s1 + $0xf40] sm:$0xff]  ;;  %v545_v8 = vld [vmem:[%s7394_s1 + $0x1070] sm:$0xff]  ;;  %v548_v45 = vld [vmem:[%s7394_s1 + $0x1088] sm:$0xff] }
  0xe4   :  { %3411 = vmatprep.subr.bf16.mxu1 %v3410_v19  ;;  %v513_v19 = vld [vmem:[%s7394_s1 + $0xf70] sm:$0xff]  ;;  %v2856_v26 = vpack.c.bf16 %v511_v16, %v507_v15  ;;  %v2874_v16 = vpack.c.bf16 %v552_v9, %v548_v45  ;;  %v588_v9 = vld [vmem:[%s7394_s1 + $0x11c8] sm:$0xff] }
  0xe5   :  { %v585_v45 = vld [vmem:[%s7394_s1 + $0x11b0] sm:$0xff] }
  0xe6   :  { %2837 = vmatpush1.bf16.msra.mxu0 %v2836_v27  ;;  %v3432_v27 = vpack.c.bf16 %v513_v19, %v509_v17  ;;  %v547_v17 = vld [vmem:[%s7394_s1 + $0x1080] sm:$0xff]  ;;  %v549_v19 = vld [vmem:[%s7394_s1 + $0x1090] sm:$0xff] }
  0xe7   :  { %3413 = vmatpush1.bf16.msra.mxu1 %v3412_v28  ;;  %2839 = vmatprep.subr.bf16.mxu0 %v2838_v29  ;;  %v2858_v28 = vpack.c.bf16 %v520_v21, %v516_v20  ;;  %v515_v29 = vld [vmem:[%s7394_s1 + $0xf80] sm:$0xff]  ;;  %v556_v21 = vld [vmem:[%s7394_s1 + $0x10c8] sm:$0xff] }
  0xe8   :  { %3415 = vmatprep.subr.bf16.mxu1 %v3414_v33  ;;  %v521_v33 = vld [vmem:[%s7394_s1 + $0xfb0] sm:$0xff]  ;;  %v2860_v38 = vpack.c.bf16 %v519_v30, %v515_v29  ;;  %v2878_v29 = vpack.c.bf16 %v560_v22, %v556_v21  ;;  %v555_v30 = vld [vmem:[%s7394_s1 + $0x10c0] sm:$0xff]  ;;  %v596_v21 = vld [vmem:[%s7394_s1 + $0x1208] sm:$0xff] }
  0xe9   :  { %v600_v22 = vld [vmem:[%s7394_s1 + $0x1228] sm:$0xff] }
  0xea   :  { %2841 = vmatpush1.bf16.msra.mxu0 %v2840_v40  ;;  %v3436_v40 = vpack.c.bf16 %v521_v33, %v517_v31  ;;  %v559_v31 = vld [vmem:[%s7394_s1 + $0x10e0] sm:$0xff] }
  0xeb   :  { %3417 = vmatpush1.bf16.msra.mxu1 %v3416_v41  ;;  %2843 = vmatprep.subr.bf16.mxu0 %v2842_v42  ;;  %v2862_v41 = vpack.c.bf16 %v528_v35, %v524_v34  ;;  %v523_v42 = vld [vmem:[%s7394_s1 + $0xfc0] sm:$0xff]  ;;  %v561_v34 = vld [vmem:[%s7394_s1 + $0x10f0] sm:$0xff]  ;;  %v564_v35 = vld [vmem:[%s7394_s1 + $0x1108] sm:$0xff] }
  0xec   :  { %3419 = vmatprep.subr.bf16.mxu1 %v3418_v46  ;;  %v529_v46 = vld [vmem:[%s7394_s1 + $0xff0] sm:$0xff] }
  0xee   :  { %2845 = vmatpush1.bf16.msra.mxu0 %v2844_v52  ;;  %v2864_v52 = vpack.c.bf16 %v527_v43, %v523_v42  ;;  %v2882_v42 = vpack.c.bf16 %v568_v36, %v564_v35  ;;  %v563_v43 = vld [vmem:[%s7394_s1 + $0x1100] sm:$0xff]  ;;  %v604_v35 = vld [vmem:[%s7394_s1 + $0x1248] sm:$0xff] }
  0xef   :  { %3421 = vmatpush1.bf16.msra.mxu1 %v3420_v53  ;;  %2847 = vmatprep.subr.bf16.mxu0 %v2846_v54  ;;  %v3440_v53 = vpack.c.bf16 %v529_v46, %v525_v44  ;;  %v2866_v54 = vpack.c.bf16 %v536_v25, %v532_v47  ;;  %v567_v44 = vld [vmem:[%s7394_s1 + $0x1120] sm:$0xff]  ;;  %v569_v47 = vld [vmem:[%s7394_s1 + $0x1130] sm:$0xff]  ;;  %v572_v25 = vld [vmem:[%s7394_s1 + $0x1148] sm:$0xff] }
  0xf0   :  { %3423 = vmatprep.subr.bf16.mxu1 %v3422_v58  ;;  %v3442_v58 = vpack.c.bf16 %v538_v49, %v534_v48  ;;  %v576_v48 = vld [vmem:[%s7394_s1 + $0x1168] sm:$0xff]  ;;  %v574_v49 = vld [vmem:[%s7394_s1 + $0x1158] sm:$0xff] }
  0xf1   :  { %v608_v36 = vld [vmem:[%s7394_s1 + $0x1268] sm:$0xff] }
  0xf2   :  { %2849 = vmatpush1.bf16.msra.mxu0 %v2848_v0  ;;  %v546_v0 = vld [vmem:[%s7394_s1 + $0x1078] sm:$0xff] }
  0xf3   :  { %3425 = vmatpush1.bf16.msra.mxu1 %v3424_v1  ;;  %2851 = vmatprep.subr.bf16.mxu0 %v2850_v2  ;;  %v2868_v1 = vpack.c.bf16 %v535_v56, %v531_v55  ;;  %v3444_v2 = vpack.c.bf16 %v537_v24, %v533_v57  ;;  %v3446_v7 = vpack.c.bf16 %v546_v0, %v542_v63  ;;  %v571_v56 = vld [vmem:[%s7394_s1 + $0x1140] sm:$0xff]  ;;  %v584_v63 = vld [vmem:[%s7394_s1 + $0x11a8] sm:$0xff]  ;;  %v582_v0 = vld [vmem:[%s7394_s1 + $0x1198] sm:$0xff] }
  0xf4   :  { %3427 = vmatprep.subr.bf16.mxu1 %v3426_v6  ;;  %v541_v6 = vld [vmem:[%s7394_s1 + $0x1050] sm:$0xff]  ;;  %v2886_v55 = vpack.c.bf16 %v576_v48, %v572_v25  ;;  %v575_v57 = vld [vmem:[%s7394_s1 + $0x1160] sm:$0xff]  ;;  %v612_v25 = vld [vmem:[%s7394_s1 + $0x1288] sm:$0xff] }
  0xf5   :  { %v3448_v15 = vpack.c.bf16 %v545_v8, %v541_v6  ;;  %v583_v6 = vld [vmem:[%s7394_s1 + $0x11a0] sm:$0xff]  ;;  %v616_v48 = vld [vmem:[%s7394_s1 + $0x12a8] sm:$0xff] }
  0xf6   :  { %2853 = vmatpush1.bf16.msra.mxu0 %v2852_v12  ;;  %v550_v12 = vld [vmem:[%s7394_s1 + $0x1098] sm:$0xff] }
  0xf7   :  { %3429 = vmatpush1.bf16.msra.mxu1 %v3428_v13  ;;  %2855 = vmatprep.subr.bf16.mxu0 %v2854_v14  ;;  %v554_v13 = vld [vmem:[%s7394_s1 + $0x10b8] sm:$0xff]  ;;  %v2872_v14 = vpack.c.bf16 %v543_v5, %v539_v4  ;;  %v2890_v4 = vpack.c.bf16 %v584_v63, %v580_v60  ;;  %v579_v5 = vld [vmem:[%s7394_s1 + $0x1180] sm:$0xff]  ;;  %v620_v60 = vld [vmem:[%s7394_s1 + $0x12c8] sm:$0xff] }
  0xf8   :  { %3431 = vmatprep.subr.bf16.mxu1 %v3430_v18  ;;  %v551_v18 = vld [vmem:[%s7394_s1 + $0x10a0] sm:$0xff]  ;;  %v3450_v20 = vpack.c.bf16 %v554_v13, %v550_v12  ;;  %v590_v12 = vld [vmem:[%s7394_s1 + $0x11d8] sm:$0xff]  ;;  %v624_v63 = vld [vmem:[%s7394_s1 + $0x12e8] sm:$0xff] }
  0xf9   :  { %v594_v13 = vld [vmem:[%s7394_s1 + $0x11f8] sm:$0xff] }
  0xfa   :  { %2857 = vmatpush1.bf16.msra.mxu0 %v2856_v26  ;;  %v562_v26 = vld [vmem:[%s7394_s1 + $0x10f8] sm:$0xff] }
  0xfb   :  { %3433 = vmatpush1.bf16.msra.mxu1 %v3432_v27  ;;  %2859 = vmatprep.subr.bf16.mxu0 %v2858_v28  ;;  %v2876_v27 = vpack.c.bf16 %v551_v18, %v547_v17  ;;  %v3454_v33 = vpack.c.bf16 %v562_v26, %v558_v23  ;;  %v587_v17 = vld [vmem:[%s7394_s1 + $0x11c0] sm:$0xff]  ;;  %v598_v23 = vld [vmem:[%s7394_s1 + $0x1218] sm:$0xff] }
  0xfc   :  { %3435 = vmatprep.subr.bf16.mxu1 %v3434_v32  ;;  %v557_v32 = vld [vmem:[%s7394_s1 + $0x10d0] sm:$0xff]  ;;  %v591_v18 = vld [vmem:[%s7394_s1 + $0x11e0] sm:$0xff]  ;;  %v602_v26 = vld [vmem:[%s7394_s1 + $0x1238] sm:$0xff] }
  0xfe   :  { %2861 = vmatpush1.bf16.msra.mxu0 %v2860_v38  ;;  %v570_v38 = vld [vmem:[%s7394_s1 + $0x1138] sm:$0xff] }
  0xff   :  { %3437 = vmatpush1.bf16.msra.mxu1 %v3436_v40  ;;  %2863 = vmatprep.subr.bf16.mxu0 %v2862_v41  ;;  %v2880_v40 = vpack.c.bf16 %v559_v31, %v555_v30  ;;  %v3456_v41 = vpack.c.bf16 %v561_v34, %v557_v32  ;;  %v3458_v46 = vpack.c.bf16 %v570_v38, %v566_v37  ;;  %v595_v30 = vld [vmem:[%s7394_s1 + $0x1200] sm:$0xff]  ;;  %v597_v32 = vld [vmem:[%s7394_s1 + $0x1210] sm:$0xff]  ;;  %v606_v37 = vld [vmem:[%s7394_s1 + $0x1258] sm:$0xff] }
 0x100   :  { %3439 = vmatprep.subr.bf16.mxu1 %v3438_v39  ;;  %v565_v39 = vld [vmem:[%s7394_s1 + $0x1110] sm:$0xff]  ;;  %v599_v31 = vld [vmem:[%s7394_s1 + $0x1220] sm:$0xff]  ;;  %v610_v38 = vld [vmem:[%s7394_s1 + $0x1278] sm:$0xff] }
 0x101   :  { %v601_v34 = vld [vmem:[%s7394_s1 + $0x1230] sm:$0xff] }
 0x102   :  { %2865 = vmatpush1.bf16.msra.mxu0 %v2864_v52  ;;  %v578_v52 = vld [vmem:[%s7394_s1 + $0x1178] sm:$0xff] }
 0x103   :  { %3441 = vmatpush1.bf16.msra.mxu1 %v3440_v53  ;;  %2867 = vmatprep.subr.bf16.mxu0 %v2866_v54  ;;  %v2884_v53 = vpack.c.bf16 %v567_v44, %v563_v43  ;;  %v3460_v54 = vpack.c.bf16 %v569_v47, %v565_v39  ;;  %v3462_v24 = vpack.c.bf16 %v578_v52, %v574_v49  ;;  %v603_v43 = vld [vmem:[%s7394_s1 + $0x1240] sm:$0xff]  ;;  %v605_v39 = vld [vmem:[%s7394_s1 + $0x1250] sm:$0xff]  ;;  %v614_v49 = vld [vmem:[%s7394_s1 + $0x1298] sm:$0xff] }
 0x104   :  { %3443 = vmatprep.subr.bf16.mxu1 %v3442_v58  ;;  %v573_v58 = vld [vmem:[%s7394_s1 + $0x1150] sm:$0xff]  ;;  %v607_v44 = vld [vmem:[%s7394_s1 + $0x1260] sm:$0xff]  ;;  %v618_v52 = vld [vmem:[%s7394_s1 + $0x12b8] sm:$0xff] }
 0x105   :  { %1570 = vmatmul.mubr.f32.vlgmr.msra.gmra.mrb[0].mxu0 %v5047_v50  ;;  %v609_v47 = vld [vmem:[%s7394_s1 + $0x1270] sm:$0xff] }
 0x106   :  { %2869 = vmatpush1.bf16.msra.mxu0 %v2868_v1  ;;  %2209 = vmatmul.mubr.f32.vlgmr.msra.gmra.mrb[0].mxu1 %v5047_v50  ;;  %v553_v50 = vld [vmem:[%s7394_s1 + $0x10b0] sm:$0xff]  ;;  %v586_v1 = vld [vmem:[%s7394_s1 + $0x11b8] sm:$0xff] }
 0x107   :  { %3445 = vmatpush1.bf16.msra.mxu1 %v3444_v2  ;;  %2871 = vmatprep.subr.bf16.mxu0 %v2870_v3  ;;  %v3452_v28 = vpack.c.bf16 %v553_v50, %v549_v19  ;;  %v2888_v2 = vpack.c.bf16 %v575_v57, %v571_v56  ;;  %v3464_v3 = vpack.c.bf16 %v577_v59, %v573_v58  ;;  %v589_v19 = vld [vmem:[%s7394_s1 + $0x11d0] sm:$0xff]  ;;  %v611_v56 = vld [vmem:[%s7394_s1 + $0x1280] sm:$0xff] }
 0x108   :  { %3447 = vmatprep.subr.bf16.mxu1 %v3446_v7  ;;  %1640 = vmatprep.mubr.f32.mxu0 %v1247_v10  ;;  %v581_v7 = vld [vmem:[%s7394_s1 + $0x1190] sm:$0xff]  ;;  %v3466_v8 = vpack.c.bf16 %v586_v1, %v582_v0  ;;  %v615_v57 = vld [vmem:[%s7394_s1 + $0x12a0] sm:$0xff]  ;;  %v622_v0 = vld [vmem:[%s7394_s1 + $0x12d8] sm:$0xff] }
 0x109   :  { %2279 = vmatprep.mubr.f32.mxu1 %v1247_v10  ;;  %v592_v10 = vld [vmem:[%s7394_s1 + $0x11e8] sm:$0xff]  ;;  %v593_v50 = vld [vmem:[%s7394_s1 + $0x11f0] sm:$0xff]  ;;  %v626_v1 = vld [vmem:[%s7394_s1 + $0x12f8] sm:$0xff] }
 0x10a   :  { %2873 = vmatpush1.bf16.msra.mxu0 %v2872_v14  ;;  %v2892_v14 = vpack.c.bf16 %v583_v6, %v579_v5  ;;  %v613_v58 = vld [vmem:[%s7394_s1 + $0x1290] sm:$0xff]  ;;  %v619_v5 = vld [vmem:[%s7394_s1 + $0x12c0] sm:$0xff] }
 0x10b   :  { %3449 = vmatpush1.bf16.msra.mxu1 %v3448_v15  ;;  %2875 = vmatprep.subr.bf16.mxu0 %v2874_v16  ;;  %v3468_v15 = vpack.c.bf16 %v585_v45, %v581_v7  ;;  %v2894_v16 = vpack.c.bf16 %v592_v10, %v588_v9  ;;  %v617_v59 = vld [vmem:[%s7394_s1 + $0x12b0] sm:$0xff]  ;;  %v623_v6 = vld [vmem:[%s7394_s1 + $0x12e0] sm:$0xff]  ;;  %v628_v9 = vld [vmem:[%s7394_s1 + $0x1308] sm:$0xff] }
 0x10c   :  { %3451 = vmatprep.subr.bf16.mxu1 %v3450_v20  ;;  %v3470_v20 = vpack.c.bf16 %v594_v13, %v590_v12  ;;  %v621_v7 = vld [vmem:[%s7394_s1 + $0x12d0] sm:$0xff]  ;;  %v632_v10 = vld [vmem:[%s7394_s1 + $0x1328] sm:$0xff]  ;;  %v630_v12 = vld [vmem:[%s7394_s1 + $0x1318] sm:$0xff] }
 0x10d   :  { %v625_v45 = vld [vmem:[%s7394_s1 + $0x12f0] sm:$0xff]  ;;  %v634_v13 = vld [vmem:[%s7394_s1 + $0x1338] sm:$0xff] }
 0x10e   :  { %2877 = vmatpush1.bf16.msra.mxu0 %v2876_v27  ;;  %v2896_v27 = vpack.c.bf16 %v591_v18, %v587_v17  ;;  %v627_v17 = vld [vmem:[%s7394_s1 + $0x1300] sm:$0xff] }
 0x10f   :  { %3453 = vmatpush1.bf16.msra.mxu1 %v3452_v28  ;;  %2879 = vmatprep.subr.bf16.mxu0 %v2878_v29  ;;  %v3472_v28 = vpack.c.bf16 %v593_v50, %v589_v19  ;;  %v2898_v29 = vpack.c.bf16 %v600_v22, %v596_v21  ;;  %v631_v18 = vld [vmem:[%s7394_s1 + $0x1320] sm:$0xff]  ;;  %v629_v19 = vld [vmem:[%s7394_s1 + $0x1310] sm:$0xff]  ;;  %v636_v21 = vld [vmem:[%s7394_s1 + $0x1348] sm:$0xff] }
 0x110   :  { %3455 = vmatprep.subr.bf16.mxu1 %v3454_v33  ;;  %v3474_v33 = vpack.c.bf16 %v602_v26, %v598_v23  ;;  %v633_v50 = vld [vmem:[%s7394_s1 + $0x1330] sm:$0xff]  ;;  %v640_v22 = vld [vmem:[%s7394_s1 + $0x1368] sm:$0xff]  ;;  %v638_v23 = vld [vmem:[%s7394_s1 + $0x1358] sm:$0xff] }
 0x111   :  { %v642_v26 = vld [vmem:[%s7394_s1 + $0x1378] sm:$0xff] }
 0x112   :  { %2881 = vmatpush1.bf16.msra.mxu0 %v2880_v40  ;;  %v2900_v40 = vpack.c.bf16 %v599_v31, %v595_v30  ;;  %v635_v30 = vld [vmem:[%s7394_s1 + $0x1340] sm:$0xff] }
 0x113   :  { %3457 = vmatpush1.bf16.msra.mxu1 %v3456_v41  ;;  %2883 = vmatprep.subr.bf16.mxu0 %v2882_v42  ;;  %v3476_v41 = vpack.c.bf16 %v601_v34, %v597_v32  ;;  %v2902_v42 = vpack.c.bf16 %v608_v36, %v604_v35  ;;  %v639_v31 = vld [vmem:[%s7394_s1 + $0x1360] sm:$0xff]  ;;  %v637_v32 = vld [vmem:[%s7394_s1 + $0x1350] sm:$0xff]  ;;  %v644_v35 = vld [vmem:[%s7394_s1 + $0x1388] sm:$0xff] }
 0x114   :  { %3459 = vmatprep.subr.bf16.mxu1 %v3458_v46  ;;  %v3478_v46 = vpack.c.bf16 %v610_v38, %v606_v37  ;;  %v641_v34 = vld [vmem:[%s7394_s1 + $0x1370] sm:$0xff]  ;;  %v648_v36 = vld [vmem:[%s7394_s1 + $0x13a8] sm:$0xff]  ;;  %v646_v37 = vld [vmem:[%s7394_s1 + $0x1398] sm:$0xff] }
 0x115   :  { %v650_v38 = vld [vmem:[%s7394_s1 + $0x13b8] sm:$0xff] }
 0x116   :  { %2885 = vmatpush1.bf16.msra.mxu0 %v2884_v53  ;;  %v2904_v53 = vpack.c.bf16 %v607_v44, %v603_v43  ;;  %v643_v43 = vld [vmem:[%s7394_s1 + $0x1380] sm:$0xff] }
 0x117   :  { %3461 = vmatpush1.bf16.msra.mxu1 %v3460_v54  ;;  %2887 = vmatprep.subr.bf16.mxu0 %v2886_v55  ;;  %v3480_v54 = vpack.c.bf16 %v609_v47, %v605_v39  ;;  %v2906_v55 = vpack.c.bf16 %v616_v48, %v612_v25  ;;  %v647_v44 = vld [vmem:[%s7394_s1 + $0x13a0] sm:$0xff]  ;;  %v645_v39 = vld [vmem:[%s7394_s1 + $0x1390] sm:$0xff]  ;;  %v652_v25 = vld [vmem:[%s7394_s1 + $0x13c8] sm:$0xff] }
 0x118   :  { %3463 = vmatprep.subr.bf16.mxu1 %v3462_v24  ;;  %v3482_v24 = vpack.c.bf16 %v618_v52, %v614_v49  ;;  %v649_v47 = vld [vmem:[%s7394_s1 + $0x13b0] sm:$0xff]  ;;  %v656_v48 = vld [vmem:[%s7394_s1 + $0x13e8] sm:$0xff]  ;;  %v654_v49 = vld [vmem:[%s7394_s1 + $0x13d8] sm:$0xff] }
 0x119   :  { %v658_v52 = vld [vmem:[%s7394_s1 + $0x13f8] sm:$0xff] }
 0x11a   :  { %2889 = vmatpush1.bf16.msra.mxu0 %v2888_v2  ;;  %v2908_v2 = vpack.c.bf16 %v615_v57, %v611_v56  ;;  %v651_v56 = vld [vmem:[%s7394_s1 + $0x13c0] sm:$0xff] }
 0x11b   :  { %3465 = vmatpush1.bf16.msra.mxu1 %v3464_v3  ;;  %2891 = vmatprep.subr.bf16.mxu0 %v2890_v4  ;;  %v3484_v3 = vpack.c.bf16 %v617_v59, %v613_v58  ;;  %v2910_v4 = vpack.c.bf16 %v624_v63, %v620_v60  ;;  %v655_v57 = vld [vmem:[%s7394_s1 + $0x13e0] sm:$0xff]  ;;  %v653_v58 = vld [vmem:[%s7394_s1 + $0x13d0] sm:$0xff]  ;;  %v660_v60 = vld [vmem:[%s7394_s1 + $0x1408] sm:$0xff] }
 0x11c   :  { %3467 = vmatprep.subr.bf16.mxu1 %v3466_v8  ;;  %v3486_v8 = vpack.c.bf16 %v626_v1, %v622_v0  ;;  %v657_v59 = vld [vmem:[%s7394_s1 + $0x13f0] sm:$0xff]  ;;  %v664_v63 = vld [vmem:[%s7394_s1 + $0x1428] sm:$0xff]  ;;  %v1232_v0 = vcombine.high %v5422_v51, %v5422_v51  ;;  %v662_v1 = vld [vmem:[%s7394_s1 + $0x1418] sm:$0xff] }
 0x11d   :  { %v663_v51 = vld [vmem:[%s7394_s1 + $0x1420] sm:$0xff] }
 0x11e   :  { %2893 = vmatpush1.bf16.msra.mxu0 %v2892_v14  ;;  %v2912_v14 = vpack.c.bf16 %v623_v6, %v619_v5  ;;  %v2930_v5 = vpack.c.bf16 %v664_v63, %v660_v60  ;;  %v659_v6 = vld [vmem:[%s7394_s1 + $0x1400] sm:$0xff]  ;;  %v697_v60 = vld [vmem:[%s7394_s1 + $0x1530] sm:$0xff]  ;;  %v700_v63 = vld [vmem:[%s7394_s1 + $0x1548] sm:$0xff] }
 0x11f   :  { %3469 = vmatpush1.bf16.msra.mxu1 %v3468_v15  ;;  %2895 = vmatprep.subr.bf16.mxu0 %v2894_v16  ;;  %v3488_v15 = vpack.c.bf16 %v625_v45, %v621_v7  ;;  %v2914_v16 = vpack.c.bf16 %v632_v10, %v628_v9  ;;  %v661_v7 = vld [vmem:[%s7394_s1 + $0x1410] sm:$0xff]  ;;  %v668_v9 = vld [vmem:[%s7394_s1 + $0x1448] sm:$0xff] }
 0x120   :  { %3471 = vmatprep.subr.bf16.mxu1 %v3470_v20  ;;  %v3490_v20 = vpack.c.bf16 %v634_v13, %v630_v12  ;;  %v665_v45 = vld [vmem:[%s7394_s1 + $0x1430] sm:$0xff]  ;;  %v672_v10 = vld [vmem:[%s7394_s1 + $0x1468] sm:$0xff]  ;;  %v5837_v12 = vrot.slane %v1232_v0, %v4103_v11  ;;  %v670_v13 = vld [vmem:[%s7394_s1 + $0x1458] sm:$0xff] }
 0x121   :  { %v704_v0 = vld [vmem:[%s7394_s1 + $0x1568] sm:$0xff] }
 0x122   :  { %2897 = vmatpush1.bf16.msra.mxu0 %v2896_v27  ;;  %v2916_v27 = vpack.c.bf16 %v631_v18, %v627_v17  ;;  %v2934_v17 = vpack.c.bf16 %v672_v10, %v668_v9  ;;  %v667_v18 = vld [vmem:[%s7394_s1 + $0x1440] sm:$0xff]  ;;  %v708_v9 = vld [vmem:[%s7394_s1 + $0x1588] sm:$0xff] }
 0x123   :  { %3473 = vmatpush1.bf16.msra.mxu1 %v3472_v28  ;;  %2899 = vmatprep.subr.bf16.mxu0 %v2898_v29  ;;  %v3492_v28 = vpack.c.bf16 %v633_v50, %v629_v19  ;;  %v2918_v29 = vpack.c.bf16 %v640_v22, %v636_v21  ;;  %v671_v19 = vld [vmem:[%s7394_s1 + $0x1460] sm:$0xff]  ;;  %v673_v21 = vld [vmem:[%s7394_s1 + $0x1470] sm:$0xff]  ;;  %v676_v22 = vld [vmem:[%s7394_s1 + $0x1488] sm:$0xff] }
 0x124   :  { %3475 = vmatprep.subr.bf16.mxu1 %v3474_v33  ;;  %v3494_v33 = vpack.c.bf16 %v642_v26, %v638_v23  ;;  %v680_v23 = vld [vmem:[%s7394_s1 + $0x14a8] sm:$0xff]  ;;  %v1248_v26 = vcombine.high %v5837_v12, %v5837_v12 }
 0x125   :  { %v712_v10 = vld [vmem:[%s7394_s1 + $0x15a8] sm:$0xff] }
 0x126   :  { %2901 = vmatpush1.bf16.msra.mxu0 %v2900_v40  ;;  %v2920_v40 = vpack.c.bf16 %v639_v31, %v635_v30  ;;  %v2938_v31 = vpack.c.bf16 %v680_v23, %v676_v22  ;;  %v716_v22 = vld [vmem:[%s7394_s1 + $0x15c8] sm:$0xff] }
 0x127   :  { %3477 = vmatpush1.bf16.msra.mxu1 %v3476_v41  ;;  %2903 = vmatprep.subr.bf16.mxu0 %v2902_v42  ;;  %v3496_v41 = vpack.c.bf16 %v641_v34, %v637_v32  ;;  %v2922_v42 = vpack.c.bf16 %v648_v36, %v644_v35  ;;  %v675_v32 = vld [vmem:[%s7394_s1 + $0x1480] sm:$0xff]  ;;  %v677_v34 = vld [vmem:[%s7394_s1 + $0x1490] sm:$0xff]  ;;  %v684_v36 = vld [vmem:[%s7394_s1 + $0x14c8] sm:$0xff] }
 0x128   :  { %3479 = vmatprep.subr.bf16.mxu1 %v3478_v46  ;;  %v3498_v46 = vpack.c.bf16 %v650_v38, %v646_v37  ;;  %v688_v37 = vld [vmem:[%s7394_s1 + $0x14e8] sm:$0xff]  ;;  %v686_v38 = vld [vmem:[%s7394_s1 + $0x14d8] sm:$0xff] }
 0x129   :  { %v720_v23 = vld [vmem:[%s7394_s1 + $0x15e8] sm:$0xff] }
 0x12a   :  { %2905 = vmatpush1.bf16.msra.mxu0 %v2904_v53  ;;  %v2924_v53 = vpack.c.bf16 %v647_v44, %v643_v43  ;;  %v2942_v43 = vpack.c.bf16 %v688_v37, %v684_v36  ;;  %v683_v44 = vld [vmem:[%s7394_s1 + $0x14c0] sm:$0xff]  ;;  %v728_v36 = vld [vmem:[%s7394_s1 + $0x1628] sm:$0xff]  ;;  %v726_v37 = vld [vmem:[%s7394_s1 + $0x1618] sm:$0xff] }
 0x12b   :  { %3481 = vmatpush1.bf16.msra.mxu1 %v3480_v54  ;;  %2907 = vmatprep.subr.bf16.mxu0 %v2906_v55  ;;  %v3500_v54 = vpack.c.bf16 %v649_v47, %v645_v39  ;;  %v2926_v55 = vpack.c.bf16 %v656_v48, %v652_v25  ;;  %v687_v39 = vld [vmem:[%s7394_s1 + $0x14e0] sm:$0xff]  ;;  %v689_v25 = vld [vmem:[%s7394_s1 + $0x14f0] sm:$0xff]  ;;  %v692_v48 = vld [vmem:[%s7394_s1 + $0x1508] sm:$0xff] }
 0x12c   :  { %3483 = vmatprep.subr.bf16.mxu1 %v3482_v24  ;;  %v3502_v24 = vpack.c.bf16 %v658_v52, %v654_v49  ;;  %v696_v49 = vld [vmem:[%s7394_s1 + $0x1528] sm:$0xff]  ;;  %v694_v52 = vld [vmem:[%s7394_s1 + $0x1518] sm:$0xff] }
 0x12e   :  { %2909 = vmatpush1.bf16.msra.mxu0 %v2908_v2  ;;  %v666_v2 = vld [vmem:[%s7394_s1 + $0x1438] sm:$0xff] }
 0x12f   :  { %3485 = vmatpush1.bf16.msra.mxu1 %v3484_v3  ;;  %2911 = vmatprep.subr.bf16.mxu0 %v2910_v4  ;;  %v2928_v3 = vpack.c.bf16 %v655_v57, %v651_v56  ;;  %v3504_v4 = vpack.c.bf16 %v657_v59, %v653_v58  ;;  %v2946_v56 = vpack.c.bf16 %v696_v49, %v692_v48  ;;  %v691_v57 = vld [vmem:[%s7394_s1 + $0x1500] sm:$0xff]  ;;  %v736_v48 = vld [vmem:[%s7394_s1 + $0x1668] sm:$0xff]  ;;  %v734_v49 = vld [vmem:[%s7394_s1 + $0x1658] sm:$0xff] }
 0x130   :  { %3487 = vmatprep.subr.bf16.mxu1 %v3486_v8  ;;  %v3506_v8 = vpack.c.bf16 %v666_v2, %v662_v1  ;;  %v695_v58 = vld [vmem:[%s7394_s1 + $0x1520] sm:$0xff]  ;;  %v702_v1 = vld [vmem:[%s7394_s1 + $0x1558] sm:$0xff] }
 0x131   :  { %v706_v2 = vld [vmem:[%s7394_s1 + $0x1578] sm:$0xff] }
 0x132   :  { %2913 = vmatpush1.bf16.msra.mxu0 %v2912_v14  ;;  %v674_v14 = vld [vmem:[%s7394_s1 + $0x1478] sm:$0xff] }
 0x133   :  { %3489 = vmatpush1.bf16.msra.mxu1 %v3488_v15  ;;  %2915 = vmatprep.subr.bf16.mxu0 %v2914_v16  ;;  %v2932_v15 = vpack.c.bf16 %v663_v51, %v659_v6  ;;  %v3508_v16 = vpack.c.bf16 %v665_v45, %v661_v7  ;;  %v3510_v50 = vpack.c.bf16 %v674_v14, %v670_v13  ;;  %v699_v6 = vld [vmem:[%s7394_s1 + $0x1540] sm:$0xff]  ;;  %v701_v7 = vld [vmem:[%s7394_s1 + $0x1550] sm:$0xff]  ;;  %v710_v13 = vld [vmem:[%s7394_s1 + $0x1598] sm:$0xff] }
 0x134   :  { %3491 = vmatprep.subr.bf16.mxu1 %v3490_v20  ;;  %v669_v20 = vld [vmem:[%s7394_s1 + $0x1450] sm:$0xff]  ;;  %v703_v51 = vld [vmem:[%s7394_s1 + $0x1560] sm:$0xff]  ;;  %v714_v14 = vld [vmem:[%s7394_s1 + $0x15b8] sm:$0xff] }
 0x135   :  { %v3512_v30 = vpack.c.bf16 %v673_v21, %v669_v20  ;;  %v705_v45 = vld [vmem:[%s7394_s1 + $0x1570] sm:$0xff] }
 0x136   :  { %2917 = vmatpush1.bf16.msra.mxu0 %v2916_v27  ;;  %v678_v27 = vld [vmem:[%s7394_s1 + $0x1498] sm:$0xff]  ;;  %v709_v20 = vld [vmem:[%s7394_s1 + $0x1590] sm:$0xff] }
 0x137   :  { %3493 = vmatpush1.bf16.msra.mxu1 %v3492_v28  ;;  %2919 = vmatprep.subr.bf16.mxu0 %v2918_v29  ;;  %v682_v28 = vld [vmem:[%s7394_s1 + $0x14b8] sm:$0xff]  ;;  %v2936_v29 = vpack.c.bf16 %v671_v19, %v667_v18  ;;  %v707_v18 = vld [vmem:[%s7394_s1 + $0x1580] sm:$0xff]  ;;  %v713_v21 = vld [vmem:[%s7394_s1 + $0x15b0] sm:$0xff] }
 0x138   :  { %3495 = vmatprep.subr.bf16.mxu1 %v3494_v33  ;;  %v679_v33 = vld [vmem:[%s7394_s1 + $0x14a0] sm:$0xff]  ;;  %v3514_v35 = vpack.c.bf16 %v682_v28, %v678_v27  ;;  %v722_v27 = vld [vmem:[%s7394_s1 + $0x15f8] sm:$0xff] }
 0x139   :  { %v711_v19 = vld [vmem:[%s7394_s1 + $0x15a0] sm:$0xff] }
 0x13a   :  { %2921 = vmatpush1.bf16.msra.mxu0 %v2920_v40  ;;  %v690_v40 = vld [vmem:[%s7394_s1 + $0x14f8] sm:$0xff]  ;;  %v2956_v28 = vpack.c.bf16 %v711_v19, %v707_v18  ;;  %v751_v18 = vld [vmem:[%s7394_s1 + $0x16e0] sm:$0xff]  ;;  %v749_v19 = vld [vmem:[%s7394_s1 + $0x16d0] sm:$0xff] }
 0x13b   :  { %3497 = vmatpush1.bf16.msra.mxu1 %v3496_v41  ;;  %2923 = vmatprep.subr.bf16.mxu0 %v2922_v42  ;;  %v2940_v41 = vpack.c.bf16 %v679_v33, %v675_v32  ;;  %v3518_v47 = vpack.c.bf16 %v690_v40, %v686_v38  ;;  %v719_v32 = vld [vmem:[%s7394_s1 + $0x15e0] sm:$0xff]  ;;  %v717_v33 = vld [vmem:[%s7394_s1 + $0x15d0] sm:$0xff]  ;;  %v730_v38 = vld [vmem:[%s7394_s1 + $0x1638] sm:$0xff] }
 0x13c   :  { %3499 = vmatprep.subr.bf16.mxu1 %v3498_v46  ;;  %v685_v46 = vld [vmem:[%s7394_s1 + $0x14d0] sm:$0xff] }
 0x13e   :  { %2925 = vmatpush1.bf16.msra.mxu0 %v2924_v53  ;;  %v698_v53 = vld [vmem:[%s7394_s1 + $0x1538] sm:$0xff] }
 0x13f   :  { %3501 = vmatpush1.bf16.msra.mxu1 %v3500_v54  ;;  %2927 = vmatprep.subr.bf16.mxu0 %v2926_v55  ;;  %v2944_v54 = vpack.c.bf16 %v687_v39, %v683_v44  ;;  %v3520_v55 = vpack.c.bf16 %v689_v25, %v685_v46  ;;  %v3522_v59 = vpack.c.bf16 %v698_v53, %v694_v52  ;;  %v727_v44 = vld [vmem:[%s7394_s1 + $0x1620] sm:$0xff]  ;;  %v725_v39 = vld [vmem:[%s7394_s1 + $0x1610] sm:$0xff]  ;;  %v732_v25 = vld [vmem:[%s7394_s1 + $0x1648] sm:$0xff] }
 0x140   :  { %3503 = vmatprep.subr.bf16.mxu1 %v3502_v24  ;;  %v693_v24 = vld [vmem:[%s7394_s1 + $0x1510] sm:$0xff]  ;;  %v3538_v46 = vpack.c.bf16 %v730_v38, %v726_v37  ;;  %v738_v52 = vld [vmem:[%s7394_s1 + $0x1678] sm:$0xff] }
 0x141   :  { %v770_v37 = vld [vmem:[%s7394_s1 + $0x1778] sm:$0xff] }
 0x142   :  { %2929 = vmatpush1.bf16.msra.mxu0 %v2928_v3  ;;  %v2948_v3 = vpack.c.bf16 %v695_v58, %v691_v57  ;;  %v735_v57 = vld [vmem:[%s7394_s1 + $0x1660] sm:$0xff]  ;;  %v733_v58 = vld [vmem:[%s7394_s1 + $0x1650] sm:$0xff] }
 0x143   :  { %3505 = vmatpush1.bf16.msra.mxu1 %v3504_v4  ;;  %2931 = vmatprep.subr.bf16.mxu0 %v2930_v5  ;;  %v3524_v4 = vpack.c.bf16 %v697_v60, %v693_v24  ;;  %v2950_v5 = vpack.c.bf16 %v704_v0, %v700_v63  ;;  %v3542_v24 = vpack.c.bf16 %v738_v52, %v734_v49  ;;  %v740_v60 = vld [vmem:[%s7394_s1 + $0x1688] sm:$0xff]  ;;  %v742_v0 = vld [vmem:[%s7394_s1 + $0x1698] sm:$0xff] }
 0x144   :  { %3507 = vmatprep.subr.bf16.mxu1 %v3506_v8  ;;  %v3526_v8 = vpack.c.bf16 %v706_v2, %v702_v1  ;;  %v744_v63 = vld [vmem:[%s7394_s1 + $0x16a8] sm:$0xff]  ;;  %v746_v1 = vld [vmem:[%s7394_s1 + $0x16b8] sm:$0xff] }
 0x145   :  { %1641 = vmatmul.mubr.f32.vlgmr.msra.gmra.mrb[0].mxu0 %v5444_v62  ;;  %v778_v49 = vld [vmem:[%s7394_s1 + $0x17b8] sm:$0xff] }
 0x146   :  { %2933 = vmatpush1.bf16.msra.mxu0 %v2932_v15  ;;  %2280 = vmatmul.mubr.f32.vlgmr.msra.gmra.mrb[0].mxu1 %v5444_v62  ;;  %v681_v62 = vld [vmem:[%s7394_s1 + $0x14b0] sm:$0xff]  ;;  %v2952_v15 = vpack.c.bf16 %v703_v51, %v699_v6  ;;  %v743_v6 = vld [vmem:[%s7394_s1 + $0x16a0] sm:$0xff] }
 0x147   :  { %3509 = vmatpush1.bf16.msra.mxu1 %v3508_v16  ;;  %2935 = vmatprep.subr.bf16.mxu0 %v2934_v17  ;;  %v3516_v42 = vpack.c.bf16 %v681_v62, %v677_v34  ;;  %v3528_v16 = vpack.c.bf16 %v705_v45, %v701_v7  ;;  %v2954_v17 = vpack.c.bf16 %v712_v10, %v708_v9  ;;  %v724_v62 = vld [vmem:[%s7394_s1 + $0x1608] sm:$0xff]  ;;  %v741_v51 = vld [vmem:[%s7394_s1 + $0x1690] sm:$0xff]  ;;  %v750_v10 = vld [vmem:[%s7394_s1 + $0x16d8] sm:$0xff] }
 0x148   :  { %3511 = vmatprep.subr.bf16.mxu1 %v3510_v50  ;;  %1711 = vmatprep.mubr.f32.mxu0 %v1248_v26  ;;  %v3530_v50 = vpack.c.bf16 %v714_v14, %v710_v13  ;;  %v3546_v7 = vpack.c.bf16 %v746_v1, %v742_v0  ;;  %v748_v45 = vld [vmem:[%s7394_s1 + $0x16c8] sm:$0xff]  ;;  %v754_v13 = vld [vmem:[%s7394_s1 + $0x16f8] sm:$0xff] }
 0x149   :  { %2350 = vmatprep.mubr.f32.mxu1 %v1248_v26  ;;  %v718_v26 = vld [vmem:[%s7394_s1 + $0x15d8] sm:$0xff]  ;;  %v752_v9 = vld [vmem:[%s7394_s1 + $0x16e8] sm:$0xff] }
 0x14a   :  { %2937 = vmatpush1.bf16.msra.mxu0 %v2936_v29  ;;  %v3532_v29 = vpack.c.bf16 %v713_v21, %v709_v20  ;;  %v3534_v34 = vpack.c.bf16 %v722_v27, %v718_v26  ;;  %v3550_v20 = vpack.c.bf16 %v754_v13, %v750_v10  ;;  %v756_v21 = vld [vmem:[%s7394_s1 + $0x1708] sm:$0xff]  ;;  %v762_v26 = vld [vmem:[%s7394_s1 + $0x1738] sm:$0xff] }
 0x14b   :  { %3513 = vmatpush1.bf16.msra.mxu1 %v3512_v30  ;;  %2939 = vmatprep.subr.bf16.mxu0 %v2938_v31  ;;  %v2958_v30 = vpack.c.bf16 %v720_v23, %v716_v22  ;;  %v715_v31 = vld [vmem:[%s7394_s1 + $0x15c0] sm:$0xff]  ;;  %v760_v22 = vld [vmem:[%s7394_s1 + $0x1728] sm:$0xff]  ;;  %v758_v23 = vld [vmem:[%s7394_s1 + $0x1718] sm:$0xff] }
 0x14c   :  { %3515 = vmatprep.subr.bf16.mxu1 %v3514_v35  ;;  %v721_v35 = vld [vmem:[%s7394_s1 + $0x15f0] sm:$0xff]  ;;  %v2960_v40 = vpack.c.bf16 %v719_v32, %v715_v31  ;;  %v759_v31 = vld [vmem:[%s7394_s1 + $0x1720] sm:$0xff]  ;;  %v786_v0 = vld [vmem:[%s7394_s1 + $0x17f8] sm:$0xff] }
 0x14d   :  { %v757_v32 = vld [vmem:[%s7394_s1 + $0x1710] sm:$0xff]  ;;  %v794_v10 = vld [vmem:[%s7394_s1 + $0x1838] sm:$0xff] }
 0x14e   :  { %2941 = vmatpush1.bf16.msra.mxu0 %v2940_v41  ;;  %v3536_v41 = vpack.c.bf16 %v721_v35, %v717_v33  ;;  %v3554_v33 = vpack.c.bf16 %v762_v26, %v758_v23  ;;  %v764_v35 = vld [vmem:[%s7394_s1 + $0x1748] sm:$0xff]  ;;  %v6212_v13 = vld [vmem:[%s7395_s0 + $0x18] sm:$0xff] }
 0x14f   :  { %3517 = vmatpush1.bf16.msra.mxu1 %v3516_v42  ;;  %2943 = vmatprep.subr.bf16.mxu0 %v2942_v43  ;;  %v2962_v42 = vpack.c.bf16 %v728_v36, %v724_v62  ;;  %v723_v43 = vld [vmem:[%s7394_s1 + $0x1600] sm:$0xff]  ;;  %v768_v62 = vld [vmem:[%s7394_s1 + $0x1768] sm:$0xff]  ;;  %v766_v36 = vld [vmem:[%s7394_s1 + $0x1758] sm:$0xff]  ;;  %v6234_v23 = vrot.slane %v6212_v13, %v4103_v11 }
 0x150   :  { %3519 = vmatprep.subr.bf16.mxu1 %v3518_v47  ;;  %v729_v47 = vld [vmem:[%s7394_s1 + $0x1630] sm:$0xff]  ;;  %v2964_v53 = vpack.c.bf16 %v727_v44, %v723_v43  ;;  %v767_v43 = vld [vmem:[%s7394_s1 + $0x1760] sm:$0xff]  ;;  %v798_v26 = vld [vmem:[%s7394_s1 + $0x1858] sm:$0xff] }
 0x151   :  { %v765_v44 = vld [vmem:[%s7394_s1 + $0x1750] sm:$0xff] }
 0x152   :  { %2945 = vmatpush1.bf16.msra.mxu0 %v2944_v54  ;;  %v3540_v54 = vpack.c.bf16 %v729_v47, %v725_v39  ;;  %v3558_v39 = vpack.c.bf16 %v770_v37, %v766_v36  ;;  %v772_v47 = vld [vmem:[%s7394_s1 + $0x1788] sm:$0xff]  ;;  %v1264_v37 = vcombine.high %v6234_v23, %v6234_v23 }
 0x153   :  { %3521 = vmatpush1.bf16.msra.mxu1 %v3520_v55  ;;  %2947 = vmatprep.subr.bf16.mxu0 %v2946_v56  ;;  %v2966_v55 = vpack.c.bf16 %v736_v48, %v732_v25  ;;  %v731_v56 = vld [vmem:[%s7394_s1 + $0x1640] sm:$0xff]  ;;  %v776_v25 = vld [vmem:[%s7394_s1 + $0x17a8] sm:$0xff]  ;;  %v774_v48 = vld [vmem:[%s7394_s1 + $0x1798] sm:$0xff] }
 0x154   :  { %3523 = vmatprep.subr.bf16.mxu1 %v3522_v59  ;;  %v737_v59 = vld [vmem:[%s7394_s1 + $0x1670] sm:$0xff]  ;;  %v2968_v2 = vpack.c.bf16 %v735_v57, %v731_v56  ;;  %v775_v56 = vld [vmem:[%s7394_s1 + $0x17a0] sm:$0xff]  ;;  %v808_v36 = vld [vmem:[%s7394_s1 + $0x18a8] sm:$0xff] }
 0x155   :  { %v773_v57 = vld [vmem:[%s7394_s1 + $0x1790] sm:$0xff] }
 0x156   :  { %2949 = vmatpush1.bf16.msra.mxu0 %v2948_v3  ;;  %v3544_v3 = vpack.c.bf16 %v737_v59, %v733_v58  ;;  %v3562_v58 = vpack.c.bf16 %v778_v49, %v774_v48  ;;  %v780_v59 = vld [vmem:[%s7394_s1 + $0x17c8] sm:$0xff]  ;;  %v814_v49 = vld [vmem:[%s7394_s1 + $0x18d8] sm:$0xff] }
 0x157   :  { %3525 = vmatpush1.bf16.msra.mxu1 %v3524_v4  ;;  %2951 = vmatprep.subr.bf16.mxu0 %v2950_v5  ;;  %v2970_v4 = vpack.c.bf16 %v744_v63, %v740_v60  ;;  %v739_v5 = vld [vmem:[%s7394_s1 + $0x1680] sm:$0xff]  ;;  %v784_v60 = vld [vmem:[%s7394_s1 + $0x17e8] sm:$0xff]  ;;  %v782_v63 = vld [vmem:[%s7394_s1 + $0x17d8] sm:$0xff] }
 0x158   :  { %3527 = vmatprep.subr.bf16.mxu1 %v3526_v8  ;;  %v745_v8 = vld [vmem:[%s7394_s1 + $0x16b0] sm:$0xff]  ;;  %v2972_v14 = vpack.c.bf16 %v743_v6, %v739_v5  ;;  %v783_v5 = vld [vmem:[%s7394_s1 + $0x17e0] sm:$0xff]  ;;  %v816_v48 = vld [vmem:[%s7394_s1 + $0x18e8] sm:$0xff] }
 0x159   :  { %v781_v6 = vld [vmem:[%s7394_s1 + $0x17d0] sm:$0xff] }
 0x15a   :  { %2953 = vmatpush1.bf16.msra.mxu0 %v2952_v15  ;;  %v3548_v15 = vpack.c.bf16 %v745_v8, %v741_v51  ;;  %v3566_v51 = vpack.c.bf16 %v786_v0, %v782_v63  ;;  %v788_v8 = vld [vmem:[%s7394_s1 + $0x1808] sm:$0xff]  ;;  %v822_v0 = vld [vmem:[%s7394_s1 + $0x1918] sm:$0xff] }
 0x15b   :  { %3529 = vmatpush1.bf16.msra.mxu1 %v3528_v16  ;;  %2955 = vmatprep.subr.bf16.mxu0 %v2954_v17  ;;  %v2974_v16 = vpack.c.bf16 %v752_v9, %v748_v45  ;;  %v747_v17 = vld [vmem:[%s7394_s1 + $0x16c0] sm:$0xff]  ;;  %v792_v45 = vld [vmem:[%s7394_s1 + $0x1828] sm:$0xff]  ;;  %v790_v9 = vld [vmem:[%s7394_s1 + $0x1818] sm:$0xff] }
 0x15c   :  { %3531 = vmatprep.subr.bf16.mxu1 %v3530_v50  ;;  %v753_v50 = vld [vmem:[%s7394_s1 + $0x16f0] sm:$0xff]  ;;  %v2976_v27 = vpack.c.bf16 %v751_v18, %v747_v17  ;;  %v787_v17 = vld [vmem:[%s7394_s1 + $0x1800] sm:$0xff]  ;;  %v824_v63 = vld [vmem:[%s7394_s1 + $0x1928] sm:$0xff] }
 0x15d   :  { %v791_v18 = vld [vmem:[%s7394_s1 + $0x1820] sm:$0xff] }
 0x15e   :  { %2957 = vmatpush1.bf16.msra.mxu0 %v2956_v28  ;;  %v3552_v28 = vpack.c.bf16 %v753_v50, %v749_v19  ;;  %v789_v19 = vld [vmem:[%s7394_s1 + $0x1810] sm:$0xff] }
 0x15f   :  { %3533 = vmatpush1.bf16.msra.mxu1 %v3532_v29  ;;  %2959 = vmatprep.subr.bf16.mxu0 %v2958_v30  ;;  %v2978_v29 = vpack.c.bf16 %v760_v22, %v756_v21  ;;  %v755_v30 = vld [vmem:[%s7394_s1 + $0x1700] sm:$0xff]  ;;  %v793_v50 = vld [vmem:[%s7394_s1 + $0x1830] sm:$0xff]  ;;  %v796_v21 = vld [vmem:[%s7394_s1 + $0x1848] sm:$0xff] }
 0x160   :  { %3535 = vmatprep.subr.bf16.mxu1 %v3534_v34  ;;  %v761_v34 = vld [vmem:[%s7394_s1 + $0x1730] sm:$0xff]  ;;  %v2980_v38 = vpack.c.bf16 %v759_v31, %v755_v30  ;;  %v800_v22 = vld [vmem:[%s7394_s1 + $0x1868] sm:$0xff]  ;;  %v795_v31 = vld [vmem:[%s7394_s1 + $0x1840] sm:$0xff] }
 0x161   :  { %v2998_v30 = vpack.c.bf16 %v800_v22, %v796_v21  ;;  %v833_v21 = vld [vmem:[%s7394_s1 + $0x1970] sm:$0xff]  ;;  %v836_v22 = vld [vmem:[%s7394_s1 + $0x1988] sm:$0xff] }
 0x162   :  { %2961 = vmatpush1.bf16.msra.mxu0 %v2960_v40  ;;  %v3556_v40 = vpack.c.bf16 %v761_v34, %v757_v32  ;;  %v799_v32 = vld [vmem:[%s7394_s1 + $0x1860] sm:$0xff] }
 0x163   :  { %3537 = vmatpush1.bf16.msra.mxu1 %v3536_v41  ;;  %2963 = vmatprep.subr.bf16.mxu0 %v2962_v42  ;;  %v2982_v41 = vpack.c.bf16 %v768_v62, %v764_v35  ;;  %v763_v42 = vld [vmem:[%s7394_s1 + $0x1740] sm:$0xff]  ;;  %v801_v35 = vld [vmem:[%s7394_s1 + $0x1870] sm:$0xff]  ;;  %v804_v62 = vld [vmem:[%s7394_s1 + $0x1888] sm:$0xff] }
 0x164   :  { %3539 = vmatprep.subr.bf16.mxu1 %v3538_v46  ;;  %v769_v46 = vld [vmem:[%s7394_s1 + $0x1770] sm:$0xff]  ;;  %v2984_v52 = vpack.c.bf16 %v767_v43, %v763_v42  ;;  %v3002_v43 = vpack.c.bf16 %v808_v36, %v804_v62  ;;  %v844_v36 = vld [vmem:[%s7394_s1 + $0x19c8] sm:$0xff] }
 0x165   :  { %v841_v62 = vld [vmem:[%s7394_s1 + $0x19b0] sm:$0xff] }
 0x166   :  { %2965 = vmatpush1.bf16.msra.mxu0 %v2964_v53  ;;  %v3560_v53 = vpack.c.bf16 %v769_v46, %v765_v44  ;;  %v803_v44 = vld [vmem:[%s7394_s1 + $0x1880] sm:$0xff]  ;;  %v805_v46 = vld [vmem:[%s7394_s1 + $0x1890] sm:$0xff] }
 0x167   :  { %3541 = vmatpush1.bf16.msra.mxu1 %v3540_v54  ;;  %2967 = vmatprep.subr.bf16.mxu0 %v2966_v55  ;;  %v2986_v54 = vpack.c.bf16 %v776_v25, %v772_v47  ;;  %v771_v55 = vld [vmem:[%s7394_s1 + $0x1780] sm:$0xff]  ;;  %v812_v25 = vld [vmem:[%s7394_s1 + $0x18c8] sm:$0xff] }
 0x168   :  { %3543 = vmatprep.subr.bf16.mxu1 %v3542_v24  ;;  %v777_v24 = vld [vmem:[%s7394_s1 + $0x17b0] sm:$0xff]  ;;  %v2988_v1 = vpack.c.bf16 %v775_v56, %v771_v55  ;;  %v3006_v55 = vpack.c.bf16 %v816_v48, %v812_v25  ;;  %v811_v56 = vld [vmem:[%s7394_s1 + $0x18c0] sm:$0xff]  ;;  %v852_v25 = vld [vmem:[%s7394_s1 + $0x1a08] sm:$0xff] }
 0x169   :  { %v856_v48 = vld [vmem:[%s7394_s1 + $0x1a28] sm:$0xff] }
 0x16a   :  { %2969 = vmatpush1.bf16.msra.mxu0 %v2968_v2  ;;  %v3564_v2 = vpack.c.bf16 %v777_v24, %v773_v57  ;;  %v815_v57 = vld [vmem:[%s7394_s1 + $0x18e0] sm:$0xff] }
 0x16b   :  { %3545 = vmatpush1.bf16.msra.mxu1 %v3544_v3  ;;  %2971 = vmatprep.subr.bf16.mxu0 %v2970_v4  ;;  %v2990_v3 = vpack.c.bf16 %v784_v60, %v780_v59  ;;  %v779_v4 = vld [vmem:[%s7394_s1 + $0x17c0] sm:$0xff]  ;;  %v817_v59 = vld [vmem:[%s7394_s1 + $0x18f0] sm:$0xff]  ;;  %v820_v60 = vld [vmem:[%s7394_s1 + $0x1908] sm:$0xff] }
 0x16c   :  { %3547 = vmatprep.subr.bf16.mxu1 %v3546_v7  ;;  %v785_v7 = vld [vmem:[%s7394_s1 + $0x17f0] sm:$0xff] }
 0x16e   :  { %2973 = vmatpush1.bf16.msra.mxu0 %v2972_v14  ;;  %v2992_v14 = vpack.c.bf16 %v783_v5, %v779_v4  ;;  %v3010_v4 = vpack.c.bf16 %v824_v63, %v820_v60  ;;  %v819_v5 = vld [vmem:[%s7394_s1 + $0x1900] sm:$0xff]  ;;  %v860_v60 = vld [vmem:[%s7394_s1 + $0x1a48] sm:$0xff] }
 0x16f   :  { %3549 = vmatpush1.bf16.msra.mxu1 %v3548_v15  ;;  %2975 = vmatprep.subr.bf16.mxu0 %v2974_v16  ;;  %v3568_v15 = vpack.c.bf16 %v785_v7, %v781_v6  ;;  %v2994_v16 = vpack.c.bf16 %v792_v45, %v788_v8  ;;  %v823_v6 = vld [vmem:[%s7394_s1 + $0x1920] sm:$0xff]  ;;  %v825_v8 = vld [vmem:[%s7394_s1 + $0x1930] sm:$0xff]  ;;  %v828_v45 = vld [vmem:[%s7394_s1 + $0x1948] sm:$0xff] }
 0x170   :  { %3551 = vmatprep.subr.bf16.mxu1 %v3550_v20  ;;  %v3570_v20 = vpack.c.bf16 %v794_v10, %v790_v9  ;;  %v832_v9 = vld [vmem:[%s7394_s1 + $0x1968] sm:$0xff]  ;;  %v830_v10 = vld [vmem:[%s7394_s1 + $0x1958] sm:$0xff] }
 0x171   :  { %v864_v63 = vld [vmem:[%s7394_s1 + $0x1a68] sm:$0xff] }
 0x172   :  { %2977 = vmatpush1.bf16.msra.mxu0 %v2976_v27  ;;  %v802_v27 = vld [vmem:[%s7394_s1 + $0x1878] sm:$0xff] }
 0x173   :  { %3553 = vmatpush1.bf16.msra.mxu1 %v3552_v28  ;;  %2979 = vmatprep.subr.bf16.mxu0 %v2978_v29  ;;  %v2996_v28 = vpack.c.bf16 %v791_v18, %v787_v17  ;;  %v3572_v29 = vpack.c.bf16 %v793_v50, %v789_v19  ;;  %v3574_v34 = vpack.c.bf16 %v802_v27, %v798_v26  ;;  %v827_v18 = vld [vmem:[%s7394_s1 + $0x1940] sm:$0xff]  ;;  %v840_v26 = vld [vmem:[%s7394_s1 + $0x19a8] sm:$0xff]  ;;  %v838_v27 = vld [vmem:[%s7394_s1 + $0x1998] sm:$0xff] }
 0x174   :  { %3555 = vmatprep.subr.bf16.mxu1 %v3554_v33  ;;  %v797_v33 = vld [vmem:[%s7394_s1 + $0x1850] sm:$0xff]  ;;  %v3014_v17 = vpack.c.bf16 %v832_v9, %v828_v45  ;;  %v831_v19 = vld [vmem:[%s7394_s1 + $0x1960] sm:$0xff]  ;;  %v868_v45 = vld [vmem:[%s7394_s1 + $0x1a88] sm:$0xff] }
 0x175   :  { %v3576_v42 = vpack.c.bf16 %v801_v35, %v797_v33  ;;  %v839_v33 = vld [vmem:[%s7394_s1 + $0x19a0] sm:$0xff]  ;;  %v872_v9 = vld [vmem:[%s7394_s1 + $0x1aa8] sm:$0xff] }
 0x176   :  { %2981 = vmatpush1.bf16.msra.mxu0 %v2980_v38  ;;  %v806_v38 = vld [vmem:[%s7394_s1 + $0x1898] sm:$0xff] }
 0x177   :  { %3557 = vmatpush1.bf16.msra.mxu1 %v3556_v40  ;;  %2983 = vmatprep.subr.bf16.mxu0 %v2982_v41  ;;  %v810_v40 = vld [vmem:[%s7394_s1 + $0x18b8] sm:$0xff]  ;;  %v3000_v41 = vpack.c.bf16 %v799_v32, %v795_v31  ;;  %v3018_v31 = vpack.c.bf16 %v840_v26, %v836_v22  ;;  %v835_v32 = vld [vmem:[%s7394_s1 + $0x1980] sm:$0xff]  ;;  %v876_v22 = vld [vmem:[%s7394_s1 + $0x1ac8] sm:$0xff] }
 0x178   :  { %3559 = vmatprep.subr.bf16.mxu1 %v3558_v39  ;;  %v807_v39 = vld [vmem:[%s7394_s1 + $0x18a0] sm:$0xff]  ;;  %v3578_v47 = vpack.c.bf16 %v810_v40, %v806_v38  ;;  %v846_v38 = vld [vmem:[%s7394_s1 + $0x19d8] sm:$0xff]  ;;  %v880_v26 = vld [vmem:[%s7394_s1 + $0x1ae8] sm:$0xff] }
 0x179   :  { %v850_v40 = vld [vmem:[%s7394_s1 + $0x19f8] sm:$0xff] }
 0x17a   :  { %2985 = vmatpush1.bf16.msra.mxu0 %v2984_v52  ;;  %v818_v52 = vld [vmem:[%s7394_s1 + $0x18f8] sm:$0xff] }
 0x17b   :  { %3561 = vmatpush1.bf16.msra.mxu1 %v3560_v53  ;;  %2987 = vmatprep.subr.bf16.mxu0 %v2986_v54  ;;  %v3004_v53 = vpack.c.bf16 %v807_v39, %v803_v44  ;;  %v3582_v24 = vpack.c.bf16 %v818_v52, %v814_v49  ;;  %v843_v44 = vld [vmem:[%s7394_s1 + $0x19c0] sm:$0xff]  ;;  %v854_v49 = vld [vmem:[%s7394_s1 + $0x1a18] sm:$0xff] }
 0x17c   :  { %3563 = vmatprep.subr.bf16.mxu1 %v3562_v58  ;;  %v813_v58 = vld [vmem:[%s7394_s1 + $0x18d0] sm:$0xff]  ;;  %v847_v39 = vld [vmem:[%s7394_s1 + $0x19e0] sm:$0xff]  ;;  %v858_v52 = vld [vmem:[%s7394_s1 + $0x1a38] sm:$0xff] }
 0x17e   :  { %2989 = vmatpush1.bf16.msra.mxu0 %v2988_v1  ;;  %v826_v1 = vld [vmem:[%s7394_s1 + $0x1938] sm:$0xff] }
 0x17f   :  { %3565 = vmatpush1.bf16.msra.mxu1 %v3564_v2  ;;  %2991 = vmatprep.subr.bf16.mxu0 %v2990_v3  ;;  %v3008_v2 = vpack.c.bf16 %v815_v57, %v811_v56  ;;  %v3584_v3 = vpack.c.bf16 %v817_v59, %v813_v58  ;;  %v3586_v7 = vpack.c.bf16 %v826_v1, %v822_v0  ;;  %v851_v56 = vld [vmem:[%s7394_s1 + $0x1a00] sm:$0xff]  ;;  %v853_v58 = vld [vmem:[%s7394_s1 + $0x1a10] sm:$0xff]  ;;  %v862_v0 = vld [vmem:[%s7394_s1 + $0x1a58] sm:$0xff] }
 0x180   :  { %3567 = vmatprep.subr.bf16.mxu1 %v3566_v51  ;;  %v821_v51 = vld [vmem:[%s7394_s1 + $0x1910] sm:$0xff]  ;;  %v855_v57 = vld [vmem:[%s7394_s1 + $0x1a20] sm:$0xff]  ;;  %v866_v1 = vld [vmem:[%s7394_s1 + $0x1a78] sm:$0xff] }
 0x181   :  { %v857_v59 = vld [vmem:[%s7394_s1 + $0x1a30] sm:$0xff] }
 0x182   :  { %2993 = vmatpush1.bf16.msra.mxu0 %v2992_v14  ;;  %v834_v14 = vld [vmem:[%s7394_s1 + $0x1978] sm:$0xff] }
 0x183   :  { %3569 = vmatpush1.bf16.msra.mxu1 %v3568_v15  ;;  %2995 = vmatprep.subr.bf16.mxu0 %v2994_v16  ;;  %v3012_v15 = vpack.c.bf16 %v823_v6, %v819_v5  ;;  %v3588_v16 = vpack.c.bf16 %v825_v8, %v821_v51  ;;  %v3590_v50 = vpack.c.bf16 %v834_v14, %v830_v10  ;;  %v859_v5 = vld [vmem:[%s7394_s1 + $0x1a40] sm:$0xff]  ;;  %v861_v51 = vld [vmem:[%s7394_s1 + $0x1a50] sm:$0xff]  ;;  %v870_v10 = vld [vmem:[%s7394_s1 + $0x1a98] sm:$0xff] }
 0x184   :  { %3571 = vmatprep.subr.bf16.mxu1 %v3570_v20  ;;  %v829_v20 = vld [vmem:[%s7394_s1 + $0x1950] sm:$0xff]  ;;  %v863_v6 = vld [vmem:[%s7394_s1 + $0x1a60] sm:$0xff]  ;;  %v874_v14 = vld [vmem:[%s7394_s1 + $0x1ab8] sm:$0xff] }
 0x185   :  { %1712 = vmatmul.mubr.f32.vlgmr.msra.gmra.mrb[0].mxu0 %v5837_v12  ;;  %v865_v8 = vld [vmem:[%s7394_s1 + $0x1a70] sm:$0xff] }
 0x186   :  { %2997 = vmatpush1.bf16.msra.mxu0 %v2996_v28  ;;  %2351 = vmatmul.mubr.f32.vlgmr.msra.gmra.mrb[0].mxu1 %v5837_v12  ;;  %v809_v12 = vld [vmem:[%s7394_s1 + $0x18b0] sm:$0xff]  ;;  %v842_v28 = vld [vmem:[%s7394_s1 + $0x19b8] sm:$0xff] }
 0x187   :  { %3573 = vmatpush1.bf16.msra.mxu1 %v3572_v29  ;;  %2999 = vmatprep.subr.bf16.mxu0 %v2998_v30  ;;  %v3580_v54 = vpack.c.bf16 %v809_v12, %v805_v46  ;;  %v3016_v29 = vpack.c.bf16 %v831_v19, %v827_v18  ;;  %v3592_v30 = vpack.c.bf16 %v833_v21, %v829_v20  ;;  %v845_v46 = vld [vmem:[%s7394_s1 + $0x19d0] sm:$0xff]  ;;  %v867_v18 = vld [vmem:[%s7394_s1 + $0x1a80] sm:$0xff] }
 0x188   :  { %3575 = vmatprep.subr.bf16.mxu1 %v3574_v34  ;;  %1782 = vmatprep.mubr.f32.mxu0 %v1264_v37  ;;  %v837_v34 = vld [vmem:[%s7394_s1 + $0x1990] sm:$0xff]  ;;  %v3594_v35 = vpack.c.bf16 %v842_v28, %v838_v27  ;;  %v871_v19 = vld [vmem:[%s7394_s1 + $0x1aa0] sm:$0xff]  ;;  %v878_v27 = vld [vmem:[%s7394_s1 + $0x1ad8] sm:$0xff] }
 0x189   :  { %2421 = vmatprep.mubr.f32.mxu1 %v1264_v37  ;;  %v848_v37 = vld [vmem:[%s7394_s1 + $0x19e8] sm:$0xff]  ;;  %v849_v12 = vld [vmem:[%s7394_s1 + $0x19f0] sm:$0xff]  ;;  %v882_v28 = vld [vmem:[%s7394_s1 + $0x1af8] sm:$0xff] }
 0x18a   :  { %3001 = vmatpush1.bf16.msra.mxu0 %v3000_v41  ;;  %v3020_v41 = vpack.c.bf16 %v839_v33, %v835_v32  ;;  %v869_v20 = vld [vmem:[%s7394_s1 + $0x1a90] sm:$0xff]  ;;  %v875_v32 = vld [vmem:[%s7394_s1 + $0x1ac0] sm:$0xff] }
 0x18b   :  { %3577 = vmatpush1.bf16.msra.mxu1 %v3576_v42  ;;  %3003 = vmatprep.subr.bf16.mxu0 %v3002_v43  ;;  %v3596_v42 = vpack.c.bf16 %v841_v62, %v837_v34  ;;  %v3022_v43 = vpack.c.bf16 %v848_v37, %v844_v36  ;;  %v873_v21 = vld [vmem:[%s7394_s1 + $0x1ab0] sm:$0xff]  ;;  %v879_v33 = vld [vmem:[%s7394_s1 + $0x1ae0] sm:$0xff]  ;;  %v884_v36 = vld [vmem:[%s7394_s1 + $0x1b08] sm:$0xff] }
 0x18c   :  { %3579 = vmatprep.subr.bf16.mxu1 %v3578_v47  ;;  %v3598_v47 = vpack.c.bf16 %v850_v40, %v846_v38  ;;  %v877_v34 = vld [vmem:[%s7394_s1 + $0x1ad0] sm:$0xff]  ;;  %v888_v37 = vld [vmem:[%s7394_s1 + $0x1b28] sm:$0xff]  ;;  %v886_v38 = vld [vmem:[%s7394_s1 + $0x1b18] sm:$0xff] }
 0x18d   :  { %v881_v62 = vld [vmem:[%s7394_s1 + $0x1af0] sm:$0xff]  ;;  %v890_v40 = vld [vmem:[%s7394_s1 + $0x1b38] sm:$0xff] }
 0x18e   :  { %3005 = vmatpush1.bf16.msra.mxu0 %v3004_v53  ;;  %v3024_v53 = vpack.c.bf16 %v847_v39, %v843_v44  ;;  %v883_v44 = vld [vmem:[%s7394_s1 + $0x1b00] sm:$0xff] }
 0x18f   :  { %3581 = vmatpush1.bf16.msra.mxu1 %v3580_v54  ;;  %3007 = vmatprep.subr.bf16.mxu0 %v3006_v55  ;;  %v3600_v54 = vpack.c.bf16 %v849_v12, %v845_v46  ;;  %v3026_v55 = vpack.c.bf16 %v856_v48, %v852_v25  ;;  %v887_v39 = vld [vmem:[%s7394_s1 + $0x1b20] sm:$0xff]  ;;  %v885_v46 = vld [vmem:[%s7394_s1 + $0x1b10] sm:$0xff]  ;;  %v892_v25 = vld [vmem:[%s7394_s1 + $0x1b48] sm:$0xff] }
 0x190   :  { %3583 = vmatprep.subr.bf16.mxu1 %v3582_v24  ;;  %v3602_v24 = vpack.c.bf16 %v858_v52, %v854_v49  ;;  %v889_v12 = vld [vmem:[%s7394_s1 + $0x1b30] sm:$0xff]  ;;  %v896_v48 = vld [vmem:[%s7394_s1 + $0x1b68] sm:$0xff]  ;;  %v894_v49 = vld [vmem:[%s7394_s1 + $0x1b58] sm:$0xff] }
 0x191   :  { %v898_v52 = vld [vmem:[%s7394_s1 + $0x1b78] sm:$0xff] }
 0x192   :  { %3009 = vmatpush1.bf16.msra.mxu0 %v3008_v2  ;;  %v3028_v2 = vpack.c.bf16 %v855_v57, %v851_v56  ;;  %v891_v56 = vld [vmem:[%s7394_s1 + $0x1b40] sm:$0xff] }
 0x193   :  { %3585 = vmatpush1.bf16.msra.mxu1 %v3584_v3  ;;  %3011 = vmatprep.subr.bf16.mxu0 %v3010_v4  ;;  %v3604_v3 = vpack.c.bf16 %v857_v59, %v853_v58  ;;  %v3030_v4 = vpack.c.bf16 %v864_v63, %v860_v60  ;;  %v895_v57 = vld [vmem:[%s7394_s1 + $0x1b60] sm:$0xff]  ;;  %v893_v58 = vld [vmem:[%s7394_s1 + $0x1b50] sm:$0xff]  ;;  %v900_v60 = vld [vmem:[%s7394_s1 + $0x1b88] sm:$0xff] }
 0x194   :  { %3587 = vmatprep.subr.bf16.mxu1 %v3586_v7  ;;  %v3606_v7 = vpack.c.bf16 %v866_v1, %v862_v0  ;;  %v897_v59 = vld [vmem:[%s7394_s1 + $0x1b70] sm:$0xff]  ;;  %v904_v63 = vld [vmem:[%s7394_s1 + $0x1ba8] sm:$0xff]  ;;  %v902_v0 = vld [vmem:[%s7394_s1 + $0x1b98] sm:$0xff] }
 0x195   :  { %v906_v1 = vld [vmem:[%s7394_s1 + $0x1bb8] sm:$0xff] }
 0x196   :  { %3013 = vmatpush1.bf16.msra.mxu0 %v3012_v15  ;;  %v3032_v15 = vpack.c.bf16 %v863_v6, %v859_v5  ;;  %v899_v5 = vld [vmem:[%s7394_s1 + $0x1b80] sm:$0xff] }
 0x197   :  { %3589 = vmatpush1.bf16.msra.mxu1 %v3588_v16  ;;  %3015 = vmatprep.subr.bf16.mxu0 %v3014_v17  ;;  %v3608_v16 = vpack.c.bf16 %v865_v8, %v861_v51  ;;  %v3034_v17 = vpack.c.bf16 %v872_v9, %v868_v45  ;;  %v903_v6 = vld [vmem:[%s7394_s1 + $0x1ba0] sm:$0xff]  ;;  %v901_v51 = vld [vmem:[%s7394_s1 + $0x1b90] sm:$0xff]  ;;  %v908_v45 = vld [vmem:[%s7394_s1 + $0x1bc8] sm:$0xff] }
 0x198   :  { %3591 = vmatprep.subr.bf16.mxu1 %v3590_v50  ;;  %v3610_v50 = vpack.c.bf16 %v874_v14, %v870_v10  ;;  %v905_v8 = vld [vmem:[%s7394_s1 + $0x1bb0] sm:$0xff]  ;;  %v912_v9 = vld [vmem:[%s7394_s1 + $0x1be8] sm:$0xff]  ;;  %v910_v10 = vld [vmem:[%s7394_s1 + $0x1bd8] sm:$0xff] }
 0x199   :  { %v914_v14 = vld [vmem:[%s7394_s1 + $0x1bf8] sm:$0xff] }
 0x19a   :  { %3017 = vmatpush1.bf16.msra.mxu0 %v3016_v29  ;;  %v3036_v29 = vpack.c.bf16 %v871_v19, %v867_v18  ;;  %v907_v18 = vld [vmem:[%s7394_s1 + $0x1bc0] sm:$0xff] }
 0x19b   :  { %3593 = vmatpush1.bf16.msra.mxu1 %v3592_v30  ;;  %3019 = vmatprep.subr.bf16.mxu0 %v3018_v31  ;;  %v3612_v30 = vpack.c.bf16 %v873_v21, %v869_v20  ;;  %v3038_v31 = vpack.c.bf16 %v880_v26, %v876_v22  ;;  %v911_v19 = vld [vmem:[%s7394_s1 + $0x1be0] sm:$0xff]  ;;  %v909_v20 = vld [vmem:[%s7394_s1 + $0x1bd0] sm:$0xff]  ;;  %v916_v22 = vld [vmem:[%s7394_s1 + $0x1c08] sm:$0xff] }
 0x19c   :  { %3595 = vmatprep.subr.bf16.mxu1 %v3594_v35  ;;  %v3614_v35 = vpack.c.bf16 %v882_v28, %v878_v27  ;;  %v913_v21 = vld [vmem:[%s7394_s1 + $0x1bf0] sm:$0xff]  ;;  %v920_v26 = vld [vmem:[%s7394_s1 + $0x1c28] sm:$0xff]  ;;  %v1249_v27 = vcombine.high %v6212_v13, %v6212_v13  ;;  %v918_v28 = vld [vmem:[%s7394_s1 + $0x1c18] sm:$0xff] }
 0x19d   :  { %v919_v13 = vld [vmem:[%s7394_s1 + $0x1c20] sm:$0xff] }
 0x19e   :  { %3021 = vmatpush1.bf16.msra.mxu0 %v3020_v41  ;;  %v3040_v41 = vpack.c.bf16 %v879_v33, %v875_v32  ;;  %v3058_v32 = vpack.c.bf16 %v920_v26, %v916_v22  ;;  %v915_v33 = vld [vmem:[%s7394_s1 + $0x1c00] sm:$0xff]  ;;  %v953_v22 = vld [vmem:[%s7394_s1 + $0x1d30] sm:$0xff]  ;;  %v956_v26 = vld [vmem:[%s7394_s1 + $0x1d48] sm:$0xff] }
 0x19f   :  { %3597 = vmatpush1.bf16.msra.mxu1 %v3596_v42  ;;  %3023 = vmatprep.subr.bf16.mxu0 %v3022_v43  ;;  %v3616_v42 = vpack.c.bf16 %v881_v62, %v877_v34  ;;  %v3042_v43 = vpack.c.bf16 %v888_v37, %v884_v36  ;;  %v917_v34 = vld [vmem:[%s7394_s1 + $0x1c10] sm:$0xff]  ;;  %v924_v36 = vld [vmem:[%s7394_s1 + $0x1c48] sm:$0xff] }
 0x1a0   :  { %3599 = vmatprep.subr.bf16.mxu1 %v3598_v47  ;;  %v3618_v47 = vpack.c.bf16 %v890_v40, %v886_v38  ;;  %v921_v62 = vld [vmem:[%s7394_s1 + $0x1c30] sm:$0xff]  ;;  %v928_v37 = vld [vmem:[%s7394_s1 + $0x1c68] sm:$0xff]  ;;  %v6627_v38 = vrot.slane %v1249_v27, %v4103_v11  ;;  %v926_v40 = vld [vmem:[%s7394_s1 + $0x1c58] sm:$0xff] }
 0x1a1   :  { %v960_v27 = vld [vmem:[%s7394_s1 + $0x1d68] sm:$0xff] }
 0x1a2   :  { %3025 = vmatpush1.bf16.msra.mxu0 %v3024_v53  ;;  %v3044_v53 = vpack.c.bf16 %v887_v39, %v883_v44  ;;  %v3062_v44 = vpack.c.bf16 %v928_v37, %v924_v36  ;;  %v923_v39 = vld [vmem:[%s7394_s1 + $0x1c40] sm:$0xff]  ;;  %v964_v36 = vld [vmem:[%s7394_s1 + $0x1d88] sm:$0xff] }
 0x1a3   :  { %3601 = vmatpush1.bf16.msra.mxu1 %v3600_v54  ;;  %3027 = vmatprep.subr.bf16.mxu0 %v3026_v55  ;;  %v3620_v54 = vpack.c.bf16 %v889_v12, %v885_v46  ;;  %v3046_v55 = vpack.c.bf16 %v896_v48, %v892_v25  ;;  %v927_v46 = vld [vmem:[%s7394_s1 + $0x1c60] sm:$0xff]  ;;  %v929_v25 = vld [vmem:[%s7394_s1 + $0x1c70] sm:$0xff]  ;;  %v932_v48 = vld [vmem:[%s7394_s1 + $0x1c88] sm:$0xff] }
 0x1a4   :  { %3603 = vmatprep.subr.bf16.mxu1 %v3602_v24  ;;  %v3622_v24 = vpack.c.bf16 %v898_v52, %v894_v49  ;;  %v936_v49 = vld [vmem:[%s7394_s1 + $0x1ca8] sm:$0xff]  ;;  %v1265_v52 = vcombine.high %v6627_v38, %v6627_v38 }
 0x1a5   :  { %v968_v37 = vld [vmem:[%s7394_s1 + $0x1da8] sm:$0xff] }
 0x1a6   :  { %3029 = vmatpush1.bf16.msra.mxu0 %v3028_v2  ;;  %v3048_v2 = vpack.c.bf16 %v895_v57, %v891_v56  ;;  %v3066_v57 = vpack.c.bf16 %v936_v49, %v932_v48  ;;  %v972_v48 = vld [vmem:[%s7394_s1 + $0x1dc8] sm:$0xff] }
 0x1a7   :  { %3605 = vmatpush1.bf16.msra.mxu1 %v3604_v3  ;;  %3031 = vmatprep.subr.bf16.mxu0 %v3030_v4  ;;  %v3624_v3 = vpack.c.bf16 %v897_v59, %v893_v58  ;;  %v3050_v4 = vpack.c.bf16 %v904_v63, %v900_v60  ;;  %v931_v58 = vld [vmem:[%s7394_s1 + $0x1c80] sm:$0xff]  ;;  %v933_v59 = vld [vmem:[%s7394_s1 + $0x1c90] sm:$0xff]  ;;  %v940_v63 = vld [vmem:[%s7394_s1 + $0x1cc8] sm:$0xff] }
 0x1a8   :  { %3607 = vmatprep.subr.bf16.mxu1 %v3606_v7  ;;  %v3626_v7 = vpack.c.bf16 %v906_v1, %v902_v0  ;;  %v944_v0 = vld [vmem:[%s7394_s1 + $0x1ce8] sm:$0xff]  ;;  %v942_v1 = vld [vmem:[%s7394_s1 + $0x1cd8] sm:$0xff] }
 0x1a9   :  { %v976_v49 = vld [vmem:[%s7394_s1 + $0x1de8] sm:$0xff] }
 0x1aa   :  { %3033 = vmatpush1.bf16.msra.mxu0 %v3032_v15  ;;  %v3052_v15 = vpack.c.bf16 %v903_v6, %v899_v5  ;;  %v3070_v5 = vpack.c.bf16 %v944_v0, %v940_v63  ;;  %v939_v6 = vld [vmem:[%s7394_s1 + $0x1cc0] sm:$0xff]  ;;  %v984_v63 = vld [vmem:[%s7394_s1 + $0x1e28] sm:$0xff]  ;;  %v982_v0 = vld [vmem:[%s7394_s1 + $0x1e18] sm:$0xff] }
 0x1ab   :  { %3609 = vmatpush1.bf16.msra.mxu1 %v3608_v16  ;;  %3035 = vmatprep.subr.bf16.mxu0 %v3034_v17  ;;  %v3628_v16 = vpack.c.bf16 %v905_v8, %v901_v51  ;;  %v3054_v17 = vpack.c.bf16 %v912_v9, %v908_v45  ;;  %v943_v51 = vld [vmem:[%s7394_s1 + $0x1ce0] sm:$0xff]  ;;  %v945_v45 = vld [vmem:[%s7394_s1 + $0x1cf0] sm:$0xff]  ;;  %v948_v9 = vld [vmem:[%s7394_s1 + $0x1d08] sm:$0xff] }
 0x1ac   :  { %3611 = vmatprep.subr.bf16.mxu1 %v3610_v50  ;;  %v3630_v50 = vpack.c.bf16 %v914_v14, %v910_v10  ;;  %v952_v10 = vld [vmem:[%s7394_s1 + $0x1d28] sm:$0xff]  ;;  %v950_v14 = vld [vmem:[%s7394_s1 + $0x1d18] sm:$0xff] }
 0x1ae   :  { %3037 = vmatpush1.bf16.msra.mxu0 %v3036_v29  ;;  %v922_v29 = vld [vmem:[%s7394_s1 + $0x1c38] sm:$0xff] }
 0x1af   :  { %3613 = vmatpush1.bf16.msra.mxu1 %v3612_v30  ;;  %3039 = vmatprep.subr.bf16.mxu0 %v3038_v31  ;;  %v3056_v30 = vpack.c.bf16 %v911_v19, %v907_v18  ;;  %v3632_v31 = vpack.c.bf16 %v913_v21, %v909_v20  ;;  %v3074_v18 = vpack.c.bf16 %v952_v10, %v948_v9  ;;  %v947_v19 = vld [vmem:[%s7394_s1 + $0x1d00] sm:$0xff]  ;;  %v992_v9 = vld [vmem:[%s7394_s1 + $0x1e68] sm:$0xff]  ;;  %v990_v10 = vld [vmem:[%s7394_s1 + $0x1e58] sm:$0xff] }
 0x1b0   :  { %3615 = vmatprep.subr.bf16.mxu1 %v3614_v35  ;;  %v3634_v35 = vpack.c.bf16 %v922_v29, %v918_v28  ;;  %v951_v20 = vld [vmem:[%s7394_s1 + $0x1d20] sm:$0xff]  ;;  %v958_v28 = vld [vmem:[%s7394_s1 + $0x1d58] sm:$0xff] }
 0x1b1   :  { %v962_v29 = vld [vmem:[%s7394_s1 + $0x1d78] sm:$0xff] }
 0x1b2   :  { %3041 = vmatpush1.bf16.msra.mxu0 %v3040_v41  ;;  %v930_v41 = vld [vmem:[%s7394_s1 + $0x1c78] sm:$0xff] }
 0x1b3   :  { %3617 = vmatpush1.bf16.msra.mxu1 %v3616_v42  ;;  %3043 = vmatprep.subr.bf16.mxu0 %v3042_v43  ;;  %v3060_v42 = vpack.c.bf16 %v919_v13, %v915_v33  ;;  %v3636_v43 = vpack.c.bf16 %v921_v62, %v917_v34  ;;  %v3638_v12 = vpack.c.bf16 %v930_v41, %v926_v40  ;;  %v955_v33 = vld [vmem:[%s7394_s1 + $0x1d40] sm:$0xff]  ;;  %v957_v34 = vld [vmem:[%s7394_s1 + $0x1d50] sm:$0xff]  ;;  %v966_v40 = vld [vmem:[%s7394_s1 + $0x1d98] sm:$0xff] }
 0x1b4   :  { %3619 = vmatprep.subr.bf16.mxu1 %v3618_v47  ;;  %v925_v47 = vld [vmem:[%s7394_s1 + $0x1c50] sm:$0xff]  ;;  %v959_v13 = vld [vmem:[%s7394_s1 + $0x1d60] sm:$0xff]  ;;  %v970_v41 = vld [vmem:[%s7394_s1 + $0x1db8] sm:$0xff] }
 0x1b5   :  { %v3640_v56 = vpack.c.bf16 %v929_v25, %v925_v47  ;;  %v961_v62 = vld [vmem:[%s7394_s1 + $0x1d70] sm:$0xff] }
 0x1b6   :  { %3045 = vmatpush1.bf16.msra.mxu0 %v3044_v53  ;;  %v934_v53 = vld [vmem:[%s7394_s1 + $0x1c98] sm:$0xff]  ;;  %v965_v47 = vld [vmem:[%s7394_s1 + $0x1d90] sm:$0xff] }
 0x1b7   :  { %3621 = vmatpush1.bf16.msra.mxu1 %v3620_v54  ;;  %3047 = vmatprep.subr.bf16.mxu0 %v3046_v55  ;;  %v938_v54 = vld [vmem:[%s7394_s1 + $0x1cb8] sm:$0xff]  ;;  %v3064_v55 = vpack.c.bf16 %v927_v46, %v923_v39  ;;  %v963_v39 = vld [vmem:[%s7394_s1 + $0x1d80] sm:$0xff]  ;;  %v969_v25 = vld [vmem:[%s7394_s1 + $0x1db0] sm:$0xff] }
 0x1b8   :  { %3623 = vmatprep.subr.bf16.mxu1 %v3622_v24  ;;  %v935_v24 = vld [vmem:[%s7394_s1 + $0x1ca0] sm:$0xff]  ;;  %v3642_v60 = vpack.c.bf16 %v938_v54, %v934_v53  ;;  %v978_v53 = vld [vmem:[%s7394_s1 + $0x1df8] sm:$0xff] }
 0x1b9   :  { %v967_v46 = vld [vmem:[%s7394_s1 + $0x1da0] sm:$0xff] }
 0x1ba   :  { %3049 = vmatpush1.bf16.msra.mxu0 %v3048_v2  ;;  %v946_v2 = vld [vmem:[%s7394_s1 + $0x1cf8] sm:$0xff]  ;;  %v3084_v54 = vpack.c.bf16 %v967_v46, %v963_v39  ;;  %v1007_v39 = vld [vmem:[%s7394_s1 + $0x1ee0] sm:$0xff]  ;;  %v1005_v46 = vld [vmem:[%s7394_s1 + $0x1ed0] sm:$0xff] }
 0x1bb   :  { %3625 = vmatpush1.bf16.msra.mxu1 %v3624_v3  ;;  %3051 = vmatprep.subr.bf16.mxu0 %v3050_v4  ;;  %v3068_v3 = vpack.c.bf16 %v935_v24, %v931_v58  ;;  %v3646_v8 = vpack.c.bf16 %v946_v2, %v942_v1  ;;  %v975_v58 = vld [vmem:[%s7394_s1 + $0x1de0] sm:$0xff]  ;;  %v973_v24 = vld [vmem:[%s7394_s1 + $0x1dd0] sm:$0xff]  ;;  %v986_v1 = vld [vmem:[%s7394_s1 + $0x1e38] sm:$0xff] }
 0x1bc   :  { %3627 = vmatprep.subr.bf16.mxu1 %v3626_v7  ;;  %v941_v7 = vld [vmem:[%s7394_s1 + $0x1cd0] sm:$0xff] }
 0x1be   :  { %3053 = vmatpush1.bf16.msra.mxu0 %v3052_v15  ;;  %v954_v15 = vld [vmem:[%s7394_s1 + $0x1d38] sm:$0xff] }
 0x1bf   :  { %3629 = vmatpush1.bf16.msra.mxu1 %v3628_v16  ;;  %3055 = vmatprep.subr.bf16.mxu0 %v3054_v17  ;;  %v3072_v16 = vpack.c.bf16 %v943_v51, %v939_v6  ;;  %v3648_v17 = vpack.c.bf16 %v945_v45, %v941_v7  ;;  %v3650_v21 = vpack.c.bf16 %v954_v15, %v950_v14  ;;  %v983_v6 = vld [vmem:[%s7394_s1 + $0x1e20] sm:$0xff]  ;;  %v981_v51 = vld [vmem:[%s7394_s1 + $0x1e10] sm:$0xff]  ;;  %v988_v45 = vld [vmem:[%s7394_s1 + $0x1e48] sm:$0xff] }
 0x1c0   :  { %3631 = vmatprep.subr.bf16.mxu1 %v3630_v50  ;;  %v949_v50 = vld [vmem:[%s7394_s1 + $0x1d10] sm:$0xff]  ;;  %v3666_v7 = vpack.c.bf16 %v986_v1, %v982_v0  ;;  %v994_v14 = vld [vmem:[%s7394_s1 + $0x1e78] sm:$0xff] }
 0x1c1   :  { %v1026_v0 = vld [vmem:[%s7394_s1 + $0x1f78] sm:$0xff] }
 0x1c2   :  { %3057 = vmatpush1.bf16.msra.mxu0 %v3056_v30  ;;  %v3076_v30 = vpack.c.bf16 %v951_v20, %v947_v19  ;;  %v991_v19 = vld [vmem:[%s7394_s1 + $0x1e60] sm:$0xff]  ;;  %v989_v20 = vld [vmem:[%s7394_s1 + $0x1e50] sm:$0xff] }
 0x1c3   :  { %3633 = vmatpush1.bf16.msra.mxu1 %v3632_v31  ;;  %3059 = vmatprep.subr.bf16.mxu0 %v3058_v32  ;;  %v3652_v31 = vpack.c.bf16 %v953_v22, %v949_v50  ;;  %v3078_v32 = vpack.c.bf16 %v960_v27, %v956_v26  ;;  %v3670_v50 = vpack.c.bf16 %v994_v14, %v990_v10  ;;  %v996_v22 = vld [vmem:[%s7394_s1 + $0x1e88] sm:$0xff]  ;;  %v998_v27 = vld [vmem:[%s7394_s1 + $0x1e98] sm:$0xff] }
 0x1c4   :  { %3635 = vmatprep.subr.bf16.mxu1 %v3634_v35  ;;  %v3654_v35 = vpack.c.bf16 %v962_v29, %v958_v28  ;;  %v1000_v26 = vld [vmem:[%s7394_s1 + $0x1ea8] sm:$0xff]  ;;  %v1002_v28 = vld [vmem:[%s7394_s1 + $0x1eb8] sm:$0xff] }
 0x1c5   :  { %1783 = vmatmul.mubr.f32.vlgmr.msra.gmra.mrb[0].mxu0 %v6234_v23  ;;  %v1034_v10 = vld [vmem:[%s7394_s1 + $0x1fb8] sm:$0xff] }
 0x1c6   :  { %3061 = vmatpush1.bf16.msra.mxu0 %v3060_v42  ;;  %2422 = vmatmul.mubr.f32.vlgmr.msra.gmra.mrb[0].mxu1 %v6234_v23  ;;  %v937_v23 = vld [vmem:[%s7394_s1 + $0x1cb0] sm:$0xff]  ;;  %v3080_v42 = vpack.c.bf16 %v959_v13, %v955_v33  ;;  %v999_v33 = vld [vmem:[%s7394_s1 + $0x1ea0] sm:$0xff] }
 0x1c7   :  { %3637 = vmatpush1.bf16.msra.mxu1 %v3636_v43  ;;  %3063 = vmatprep.subr.bf16.mxu0 %v3062_v44  ;;  %v3644_v4 = vpack.c.bf16 %v937_v23, %v933_v59  ;;  %v3656_v43 = vpack.c.bf16 %v961_v62, %v957_v34  ;;  %v3082_v44 = vpack.c.bf16 %v968_v37, %v964_v36  ;;  %v980_v23 = vld [vmem:[%s7394_s1 + $0x1e08] sm:$0xff]  ;;  %v997_v13 = vld [vmem:[%s7394_s1 + $0x1e90] sm:$0xff]  ;;  %v1006_v37 = vld [vmem:[%s7394_s1 + $0x1ed8] sm:$0xff] }
 0x1c8   :  { %3639 = vmatprep.subr.bf16.mxu1 %v3638_v12  ;;  %1853 = vmatprep.mubr.f32.mxu0 %v1265_v52  ;;  %v3658_v12 = vpack.c.bf16 %v970_v41, %v966_v40  ;;  %v3674_v34 = vpack.c.bf16 %v1002_v28, %v998_v27  ;;  %v1004_v62 = vld [vmem:[%s7394_s1 + $0x1ec8] sm:$0xff]  ;;  %v1010_v40 = vld [vmem:[%s7394_s1 + $0x1ef8] sm:$0xff] }
 0x1c9   :  { %2492 = vmatprep.mubr.f32.mxu1 %v1265_v52  ;;  %v974_v52 = vld [vmem:[%s7394_s1 + $0x1dd8] sm:$0xff]  ;;  %v1008_v36 = vld [vmem:[%s7394_s1 + $0x1ee8] sm:$0xff] }
 0x1ca   :  { %3065 = vmatpush1.bf16.msra.mxu0 %v3064_v55  ;;  %v3660_v55 = vpack.c.bf16 %v969_v25, %v965_v47  ;;  %v3662_v59 = vpack.c.bf16 %v978_v53, %v974_v52  ;;  %v3678_v47 = vpack.c.bf16 %v1010_v40, %v1006_v37  ;;  %v1012_v25 = vld [vmem:[%s7394_s1 + $0x1f08] sm:$0xff]  ;;  %v1018_v52 = vld [vmem:[%s7394_s1 + $0x1f38] sm:$0xff] }
 0x1cb   :  { %3641 = vmatpush1.bf16.msra.mxu1 %v3640_v56  ;;  %3067 = vmatprep.subr.bf16.mxu0 %v3066_v57  ;;  %v3086_v56 = vpack.c.bf16 %v976_v49, %v972_v48  ;;  %v971_v57 = vld [vmem:[%s7394_s1 + $0x1dc0] sm:$0xff]  ;;  %v1016_v48 = vld [vmem:[%s7394_s1 + $0x1f28] sm:$0xff]  ;;  %v1014_v49 = vld [vmem:[%s7394_s1 + $0x1f18] sm:$0xff] }
 0x1cc   :  { %3643 = vmatprep.subr.bf16.mxu1 %v3642_v60  ;;  %v977_v60 = vld [vmem:[%s7394_s1 + $0x1df0] sm:$0xff]  ;;  %v3088_v2 = vpack.c.bf16 %v975_v58, %v971_v57  ;;  %v1015_v57 = vld [vmem:[%s7394_s1 + $0x1f20] sm:$0xff]  ;;  %v1042_v27 = vld [vmem:[%s7394_s1 + $0x1ff8] sm:$0xff] }
 0x1cd   :  { %v1013_v58 = vld [vmem:[%s7394_s1 + $0x1f10] sm:$0xff]  ;;  %v1050_v37 = vld [vmem:[%s7394_s1 + $0x2038] sm:$0xff] }
 0x1ce   :  { %3069 = vmatpush1.bf16.msra.mxu0 %v3068_v3  ;;  %v3664_v3 = vpack.c.bf16 %v977_v60, %v973_v24  ;;  %v3682_v24 = vpack.c.bf16 %v1018_v52, %v1014_v49  ;;  %v1020_v60 = vld [vmem:[%s7394_s1 + $0x1f48] sm:$0xff]  ;;  %v1058_v49 = vld [vmem:[%s7394_s1 + $0x2078] sm:$0xff]  ;;  %v7026_v52 = vld.sshfl [vmem:[%s7395_s0 + $0x20] sm:$0x33 pattern:$0x76325410] }
 0x1cf   :  { %3645 = vmatpush1.bf16.msra.mxu1 %v3644_v4  ;;  %3071 = vmatprep.subr.bf16.mxu0 %v3070_v5  ;;  %v3090_v4 = vpack.c.bf16 %v984_v63, %v980_v23  ;;  %v979_v5 = vld [vmem:[%s7394_s1 + $0x1e00] sm:$0xff]  ;;  %v1024_v23 = vld [vmem:[%s7394_s1 + $0x1f68] sm:$0xff]  ;;  %v1022_v63 = vld [vmem:[%s7394_s1 + $0x1f58] sm:$0xff] }
 0x1d0   :  { %3647 = vmatprep.subr.bf16.mxu1 %v3646_v8  ;;  %v985_v8 = vld [vmem:[%s7394_s1 + $0x1e30] sm:$0xff]  ;;  %v3092_v15 = vpack.c.bf16 %v983_v6, %v979_v5  ;;  %v1023_v5 = vld [vmem:[%s7394_s1 + $0x1f60] sm:$0xff] }
 0x1d1   :  { %v1021_v6 = vld [vmem:[%s7394_s1 + $0x1f50] sm:$0xff] }
 0x1d2   :  { %3073 = vmatpush1.bf16.msra.mxu0 %v3072_v16  ;;  %v3668_v16 = vpack.c.bf16 %v985_v8, %v981_v51  ;;  %v3686_v51 = vpack.c.bf16 %v1026_v0, %v1022_v63  ;;  %v1028_v8 = vld [vmem:[%s7394_s1 + $0x1f88] sm:$0xff]  ;;  %v1273_v63 = vcombine.high %v7026_v52, %v7026_v52  ;;  %v1062_v0 = vld [vmem:[%s7394_s1 + $0x2098] sm:$0xff] }
 0x1d3   :  { %3649 = vmatpush1.bf16.msra.mxu1 %v3648_v17  ;;  %3075 = vmatprep.subr.bf16.mxu0 %v3074_v18  ;;  %v3094_v17 = vpack.c.bf16 %v992_v9, %v988_v45  ;;  %v987_v18 = vld [vmem:[%s7394_s1 + $0x1e40] sm:$0xff]  ;;  %v1032_v45 = vld [vmem:[%s7394_s1 + $0x1fa8] sm:$0xff]  ;;  %v1030_v9 = vld [vmem:[%s7394_s1 + $0x1f98] sm:$0xff] }
 0x1d4   :  { %3651 = vmatprep.subr.bf16.mxu1 %v3650_v21  ;;  %v993_v21 = vld [vmem:[%s7394_s1 + $0x1e70] sm:$0xff]  ;;  %v3096_v29 = vpack.c.bf16 %v991_v19, %v987_v18  ;;  %v1031_v18 = vld [vmem:[%s7394_s1 + $0x1fa0] sm:$0xff] }
 0x1d5   :  { %v1029_v19 = vld [vmem:[%s7394_s1 + $0x1f90] sm:$0xff] }
 0x1d6   :  { %3077 = vmatpush1.bf16.msra.mxu0 %v3076_v30  ;;  %v3672_v30 = vpack.c.bf16 %v993_v21, %v989_v20  ;;  %v3690_v20 = vpack.c.bf16 %v1034_v10, %v1030_v9  ;;  %v1036_v21 = vld [vmem:[%s7394_s1 + $0x1fc8] sm:$0xff]  ;;  %v1070_v9 = vld [vmem:[%s7394_s1 + $0x20d8] sm:$0xff] }
 0x1d7   :  { %3653 = vmatpush1.bf16.msra.mxu1 %v3652_v31  ;;  %3079 = vmatprep.subr.bf16.mxu0 %v3078_v32  ;;  %v3098_v31 = vpack.c.bf16 %v1000_v26, %v996_v22  ;;  %v995_v32 = vld [vmem:[%s7394_s1 + $0x1e80] sm:$0xff]  ;;  %v1040_v22 = vld [vmem:[%s7394_s1 + $0x1fe8] sm:$0xff]  ;;  %v1038_v26 = vld [vmem:[%s7394_s1 + $0x1fd8] sm:$0xff] }
 0x1d8   :  { %3655 = vmatprep.subr.bf16.mxu1 %v3654_v35  ;;  %v1001_v35 = vld [vmem:[%s7394_s1 + $0x1eb0] sm:$0xff]  ;;  %v3100_v41 = vpack.c.bf16 %v999_v33, %v995_v32  ;;  %v1039_v32 = vld [vmem:[%s7394_s1 + $0x1fe0] sm:$0xff]  ;;  %v1074_v10 = vld [vmem:[%s7394_s1 + $0x20f8] sm:$0xff] }
 0x1d9   :  { %v1037_v33 = vld [vmem:[%s7394_s1 + $0x1fd0] sm:$0xff] }
 0x1da   :  { %3081 = vmatpush1.bf16.msra.mxu0 %v3080_v42  ;;  %v3676_v42 = vpack.c.bf16 %v1001_v35, %v997_v13  ;;  %v3694_v13 = vpack.c.bf16 %v1042_v27, %v1038_v26  ;;  %v1044_v35 = vld [vmem:[%s7394_s1 + $0x2008] sm:$0xff]  ;;  %v1078_v26 = vld [vmem:[%s7394_s1 + $0x2118] sm:$0xff] }
 0x1db   :  { %3657 = vmatpush1.bf16.msra.mxu1 %v3656_v43  ;;  %3083 = vmatprep.subr.bf16.mxu0 %v3082_v44  ;;  %v3102_v43 = vpack.c.bf16 %v1008_v36, %v1004_v62  ;;  %v1003_v44 = vld [vmem:[%s7394_s1 + $0x1ec0] sm:$0xff]  ;;  %v1048_v62 = vld [vmem:[%s7394_s1 + $0x2028] sm:$0xff]  ;;  %v1046_v36 = vld [vmem:[%s7394_s1 + $0x2018] sm:$0xff] }
 0x1dc   :  { %3659 = vmatprep.subr.bf16.mxu1 %v3658_v12  ;;  %v1009_v12 = vld [vmem:[%s7394_s1 + $0x1ef0] sm:$0xff]  ;;  %v3104_v53 = vpack.c.bf16 %v1007_v39, %v1003_v44  ;;  %v1047_v44 = vld [vmem:[%s7394_s1 + $0x2020] sm:$0xff]  ;;  %v1082_v27 = vld [vmem:[%s7394_s1 + $0x2138] sm:$0xff] }
 0x1dd   :  { %v1045_v39 = vld [vmem:[%s7394_s1 + $0x2010] sm:$0xff] }
 0x1de   :  { %3085 = vmatpush1.bf16.msra.mxu0 %v3084_v54  ;;  %v3680_v54 = vpack.c.bf16 %v1009_v12, %v1005_v46  ;;  %v3698_v46 = vpack.c.bf16 %v1050_v37, %v1046_v36  ;;  %v1052_v12 = vld [vmem:[%s7394_s1 + $0x2048] sm:$0xff]  ;;  %v1086_v36 = vld [vmem:[%s7394_s1 + $0x2158] sm:$0xff] }
 0x1df   :  { %3661 = vmatpush1.bf16.msra.mxu1 %v3660_v55  ;;  %3087 = vmatprep.subr.bf16.mxu0 %v3086_v56  ;;  %v3106_v55 = vpack.c.bf16 %v1016_v48, %v1012_v25  ;;  %v1011_v56 = vld [vmem:[%s7394_s1 + $0x1f00] sm:$0xff]  ;;  %v1056_v25 = vld [vmem:[%s7394_s1 + $0x2068] sm:$0xff]  ;;  %v1054_v48 = vld [vmem:[%s7394_s1 + $0x2058] sm:$0xff] }
 0x1e0   :  { %3663 = vmatprep.subr.bf16.mxu1 %v3662_v59  ;;  %v1017_v59 = vld [vmem:[%s7394_s1 + $0x1f30] sm:$0xff]  ;;  %v3108_v1 = vpack.c.bf16 %v1015_v57, %v1011_v56  ;;  %v1051_v56 = vld [vmem:[%s7394_s1 + $0x2040] sm:$0xff]  ;;  %v1090_v37 = vld [vmem:[%s7394_s1 + $0x2178] sm:$0xff] }
 0x1e1   :  { %v1055_v57 = vld [vmem:[%s7394_s1 + $0x2060] sm:$0xff] }
 0x1e2   :  { %3089 = vmatpush1.bf16.msra.mxu0 %v3088_v2  ;;  %v3684_v2 = vpack.c.bf16 %v1017_v59, %v1013_v58  ;;  %v1053_v58 = vld [vmem:[%s7394_s1 + $0x2050] sm:$0xff] }
 0x1e3   :  { %3665 = vmatpush1.bf16.msra.mxu1 %v3664_v3  ;;  %3091 = vmatprep.subr.bf16.mxu0 %v3090_v4  ;;  %v3110_v3 = vpack.c.bf16 %v1024_v23, %v1020_v60  ;;  %v1019_v4 = vld [vmem:[%s7394_s1 + $0x1f40] sm:$0xff]  ;;  %v1057_v59 = vld [vmem:[%s7394_s1 + $0x2070] sm:$0xff]  ;;  %v1060_v60 = vld [vmem:[%s7394_s1 + $0x2088] sm:$0xff] }
 0x1e4   :  { %3667 = vmatprep.subr.bf16.mxu1 %v3666_v7  ;;  %v1025_v7 = vld [vmem:[%s7394_s1 + $0x1f70] sm:$0xff]  ;;  %v3112_v14 = vpack.c.bf16 %v1023_v5, %v1019_v4  ;;  %v1064_v23 = vld [vmem:[%s7394_s1 + $0x20a8] sm:$0xff]  ;;  %v1059_v5 = vld [vmem:[%s7394_s1 + $0x2080] sm:$0xff] }
 0x1e5   :  { %v3130_v4 = vpack.c.bf16 %v1064_v23, %v1060_v60  ;;  %v1100_v60 = vld [vmem:[%s7394_s1 + $0x21c8] sm:$0xff] }
 0x1e6   :  { %3093 = vmatpush1.bf16.msra.mxu0 %v3092_v15  ;;  %v3688_v15 = vpack.c.bf16 %v1025_v7, %v1021_v6  ;;  %v1063_v6 = vld [vmem:[%s7394_s1 + $0x20a0] sm:$0xff]  ;;  %v1104_v23 = vld [vmem:[%s7394_s1 + $0x21e8] sm:$0xff] }
 0x1e7   :  { %3669 = vmatpush1.bf16.msra.mxu1 %v3668_v16  ;;  %3095 = vmatprep.subr.bf16.mxu0 %v3094_v17  ;;  %v3114_v16 = vpack.c.bf16 %v1032_v45, %v1028_v8  ;;  %v1027_v17 = vld [vmem:[%s7394_s1 + $0x1f80] sm:$0xff]  ;;  %v1068_v8 = vld [vmem:[%s7394_s1 + $0x20c8] sm:$0xff] }
 0x1e8   :  { %3671 = vmatprep.subr.bf16.mxu1 %v3670_v50  ;;  %v1033_v50 = vld [vmem:[%s7394_s1 + $0x1fb0] sm:$0xff]  ;;  %v3116_v28 = vpack.c.bf16 %v1031_v18, %v1027_v17  ;;  %v1072_v45 = vld [vmem:[%s7394_s1 + $0x20e8] sm:$0xff]  ;;  %v1067_v17 = vld [vmem:[%s7394_s1 + $0x20c0] sm:$0xff] }
 0x1e9   :  { %v1071_v18 = vld [vmem:[%s7394_s1 + $0x20e0] sm:$0xff] }
 0x1ea   :  { %3097 = vmatpush1.bf16.msra.mxu0 %v3096_v29  ;;  %v3692_v29 = vpack.c.bf16 %v1033_v50, %v1029_v19  ;;  %v1069_v19 = vld [vmem:[%s7394_s1 + $0x20d0] sm:$0xff] }
 0x1eb   :  { %3673 = vmatpush1.bf16.msra.mxu1 %v3672_v30  ;;  %3099 = vmatprep.subr.bf16.mxu0 %v3098_v31  ;;  %v3118_v30 = vpack.c.bf16 %v1040_v22, %v1036_v21  ;;  %v1035_v31 = vld [vmem:[%s7394_s1 + $0x1fc0] sm:$0xff]  ;;  %v1073_v50 = vld [vmem:[%s7394_s1 + $0x20f0] sm:$0xff]  ;;  %v1076_v21 = vld [vmem:[%s7394_s1 + $0x2108] sm:$0xff] }
 0x1ec   :  { %3675 = vmatprep.subr.bf16.mxu1 %v3674_v34  ;;  %v1041_v34 = vld [vmem:[%s7394_s1 + $0x1ff0] sm:$0xff]  ;;  %v3120_v40 = vpack.c.bf16 %v1039_v32, %v1035_v31  ;;  %v1080_v22 = vld [vmem:[%s7394_s1 + $0x2128] sm:$0xff]  ;;  %v1075_v31 = vld [vmem:[%s7394_s1 + $0x2100] sm:$0xff] }
 0x1ed   :  { %v1079_v32 = vld [vmem:[%s7394_s1 + $0x2120] sm:$0xff] }
 0x1ee   :  { %3101 = vmatpush1.bf16.msra.mxu0 %v3100_v41  ;;  %v3696_v41 = vpack.c.bf16 %v1041_v34, %v1037_v33  ;;  %v1077_v33 = vld [vmem:[%s7394_s1 + $0x2110] sm:$0xff] }
 0x1ef   :  { %3677 = vmatpush1.bf16.msra.mxu1 %v3676_v42  ;;  %3103 = vmatprep.subr.bf16.mxu0 %v3102_v43  ;;  %v3122_v42 = vpack.c.bf16 %v1048_v62, %v1044_v35  ;;  %v1043_v43 = vld [vmem:[%s7394_s1 + $0x2000] sm:$0xff]  ;;  %v1081_v34 = vld [vmem:[%s7394_s1 + $0x2130] sm:$0xff]  ;;  %v1084_v35 = vld [vmem:[%s7394_s1 + $0x2148] sm:$0xff] }
 0x1f0   :  { %3679 = vmatprep.subr.bf16.mxu1 %v3678_v47  ;;  %v1049_v47 = vld [vmem:[%s7394_s1 + $0x2030] sm:$0xff]  ;;  %v1088_v62 = vld [vmem:[%s7394_s1 + $0x2168] sm:$0xff] }
 0x1f2   :  { %3105 = vmatpush1.bf16.msra.mxu0 %v3104_v53  ;;  %v3124_v53 = vpack.c.bf16 %v1047_v44, %v1043_v43  ;;  %v1083_v43 = vld [vmem:[%s7394_s1 + $0x2140] sm:$0xff] }
 0x1f3   :  { %3681 = vmatpush1.bf16.msra.mxu1 %v3680_v54  ;;  %3107 = vmatprep.subr.bf16.mxu0 %v3106_v55  ;;  %v3700_v54 = vpack.c.bf16 %v1049_v47, %v1045_v39  ;;  %v3126_v55 = vpack.c.bf16 %v1056_v25, %v1052_v12  ;;  %v1087_v44 = vld [vmem:[%s7394_s1 + $0x2160] sm:$0xff]  ;;  %v1085_v39 = vld [vmem:[%s7394_s1 + $0x2150] sm:$0xff]  ;;  %v1092_v12 = vld [vmem:[%s7394_s1 + $0x2188] sm:$0xff] }
 0x1f4   :  { %3683 = vmatprep.subr.bf16.mxu1 %v3682_v24  ;;  %v3702_v24 = vpack.c.bf16 %v1058_v49, %v1054_v48  ;;  %v1089_v47 = vld [vmem:[%s7394_s1 + $0x2170] sm:$0xff]  ;;  %v1096_v25 = vld [vmem:[%s7394_s1 + $0x21a8] sm:$0xff]  ;;  %v1094_v48 = vld [vmem:[%s7394_s1 + $0x2198] sm:$0xff] }
 0x1f5   :  { %v1098_v49 = vld [vmem:[%s7394_s1 + $0x21b8] sm:$0xff] }
 0x1f6   :  { %3109 = vmatpush1.bf16.msra.mxu0 %v3108_v1  ;;  %v1066_v1 = vld [vmem:[%s7394_s1 + $0x20b8] sm:$0xff] }
 0x1f7   :  { %3685 = vmatpush1.bf16.msra.mxu1 %v3684_v2  ;;  %3111 = vmatprep.subr.bf16.mxu0 %v3110_v3  ;;  %v3128_v2 = vpack.c.bf16 %v1055_v57, %v1051_v56  ;;  %v3704_v3 = vpack.c.bf16 %v1057_v59, %v1053_v58  ;;  %v3706_v7 = vpack.c.bf16 %v1066_v1, %v1062_v0  ;;  %v1091_v56 = vld [vmem:[%s7394_s1 + $0x2180] sm:$0xff]  ;;  %v1093_v58 = vld [vmem:[%s7394_s1 + $0x2190] sm:$0xff]  ;;  %v1106_v0 = vld [vmem:[%s7394_s1 + $0x21f8] sm:$0xff] }
 0x1f8   :  { %3687 = vmatprep.subr.bf16.mxu1 %v3686_v51  ;;  %v1061_v51 = vld [vmem:[%s7394_s1 + $0x2090] sm:$0xff]  ;;  %v1095_v57 = vld [vmem:[%s7394_s1 + $0x21a0] sm:$0xff] }
 0x1f9   :  { %v1097_v59 = vld [vmem:[%s7394_s1 + $0x21b0] sm:$0xff]  ;;  %v3148_v1 = vpack.c.bf16 %v1095_v57, %v1091_v56  ;;  %v1135_v56 = vld [vmem:[%s7394_s1 + $0x22e0] sm:$0xff] }
 0x1fa   :  { %3113 = vmatpush1.bf16.msra.mxu0 %v3112_v14  ;;  %v3132_v14 = vpack.c.bf16 %v1063_v6, %v1059_v5  ;;  %v1103_v5 = vld [vmem:[%s7394_s1 + $0x21e0] sm:$0xff]  ;;  %v1101_v6 = vld [vmem:[%s7394_s1 + $0x21d0] sm:$0xff] }
 0x1fb   :  { %3689 = vmatpush1.bf16.msra.mxu1 %v3688_v15  ;;  %3115 = vmatprep.subr.bf16.mxu0 %v3114_v16  ;;  %v3134_v16 = vpack.c.bf16 %v1072_v45, %v1068_v8  ;;  %v1112_v8 = vld [vmem:[%s7394_s1 + $0x2228] sm:$0xff]  ;;  %v1110_v45 = vld [vmem:[%s7394_s1 + $0x2218] sm:$0xff]  ;;  %v1133_v57 = vld [vmem:[%s7394_s1 + $0x22d0] sm:$0xff] }
 0x1fc   :  { %3691 = vmatprep.subr.bf16.mxu1 %v3690_v20  ;;  %v3710_v20 = vpack.c.bf16 %v1074_v10, %v1070_v9  ;;  %v1114_v9 = vld [vmem:[%s7394_s1 + $0x2238] sm:$0xff] }
 0x1fe   :  { %3117 = vmatpush1.bf16.msra.mxu0 %v3116_v28  ;;  %v3136_v28 = vpack.c.bf16 %v1071_v18, %v1067_v17  ;;  %v1111_v17 = vld [vmem:[%s7394_s1 + $0x2220] sm:$0xff]  ;;  %v1109_v18 = vld [vmem:[%s7394_s1 + $0x2210] sm:$0xff] }
 0x1ff   :  { %3693 = vmatpush1.bf16.msra.mxu1 %v3692_v29  ;;  %3119 = vmatprep.subr.bf16.mxu0 %v3118_v30  ;;  %v3712_v29 = vpack.c.bf16 %v1073_v50, %v1069_v19  ;;  %v3138_v30 = vpack.c.bf16 %v1080_v22, %v1076_v21  ;;  %v3730_v19 = vpack.c.bf16 %v1114_v9, %v1110_v45  ;;  %v1116_v50 = vld [vmem:[%s7394_s1 + $0x2248] sm:$0xff]  ;;  %v1118_v22 = vld [vmem:[%s7394_s1 + $0x2258] sm:$0xff] }
 0x200   :  { %3695 = vmatprep.subr.bf16.mxu1 %v3694_v13  ;;  %v3714_v13 = vpack.c.bf16 %v1082_v27, %v1078_v26  ;;  %v1120_v21 = vld [vmem:[%s7394_s1 + $0x2268] sm:$0xff]  ;;  %v1122_v26 = vld [vmem:[%s7394_s1 + $0x2278] sm:$0xff] }
 0x201   :  { %v1154_v45 = vld [vmem:[%s7394_s1 + $0x2378] sm:$0xff] }
 0x202   :  { %3121 = vmatpush1.bf16.msra.mxu0 %v3120_v40  ;;  %v3140_v40 = vpack.c.bf16 %v1079_v32, %v1075_v31  ;;  %v1119_v31 = vld [vmem:[%s7394_s1 + $0x2260] sm:$0xff]  ;;  %v1117_v32 = vld [vmem:[%s7394_s1 + $0x2250] sm:$0xff] }
 0x203   :  { %3697 = vmatpush1.bf16.msra.mxu1 %v3696_v41  ;;  %3123 = vmatprep.subr.bf16.mxu0 %v3122_v42  ;;  %v3716_v41 = vpack.c.bf16 %v1081_v34, %v1077_v33  ;;  %v3142_v42 = vpack.c.bf16 %v1088_v62, %v1084_v35  ;;  %v3734_v33 = vpack.c.bf16 %v1122_v26, %v1118_v22  ;;  %v1124_v34 = vld [vmem:[%s7394_s1 + $0x2288] sm:$0xff]  ;;  %v1126_v62 = vld [vmem:[%s7394_s1 + $0x2298] sm:$0xff] }
 0x204   :  { %3699 = vmatprep.subr.bf16.mxu1 %v3698_v46  ;;  %v3718_v46 = vpack.c.bf16 %v1090_v37, %v1086_v36  ;;  %v1128_v35 = vld [vmem:[%s7394_s1 + $0x22a8] sm:$0xff]  ;;  %v1130_v36 = vld [vmem:[%s7394_s1 + $0x22b8] sm:$0xff] }
 0x205   :  { %1854 = vmatmul.mubr.f32.vlgmr.msra.gmra.mrb[0].mxu0 %v6627_v38  ;;  %v1162_v22 = vld [vmem:[%s7394_s1 + $0x23b8] sm:$0xff] }
 0x206   :  { %3125 = vmatpush1.bf16.msra.mxu0 %v3124_v53  ;;  %2493 = vmatmul.mubr.f32.vlgmr.msra.gmra.mrb[0].mxu1 %v6627_v38  ;;  %v1065_v38 = vld [vmem:[%s7394_s1 + $0x20b0] sm:$0xff]  ;;  %v3144_v53 = vpack.c.bf16 %v1087_v44, %v1083_v43  ;;  %v1127_v43 = vld [vmem:[%s7394_s1 + $0x22a0] sm:$0xff] }
 0x207   :  { %3701 = vmatpush1.bf16.msra.mxu1 %v3700_v54  ;;  %3127 = vmatprep.subr.bf16.mxu0 %v3126_v55  ;;  %v3708_v15 = vpack.c.bf16 %v1065_v38, %v1061_v51  ;;  %v3720_v54 = vpack.c.bf16 %v1089_v47, %v1085_v39  ;;  %v3146_v55 = vpack.c.bf16 %v1096_v25, %v1092_v12  ;;  %v1108_v38 = vld [vmem:[%s7394_s1 + $0x2208] sm:$0xff]  ;;  %v1125_v44 = vld [vmem:[%s7394_s1 + $0x2290] sm:$0xff]  ;;  %v1134_v25 = vld [vmem:[%s7394_s1 + $0x22d8] sm:$0xff] }
 0x208   :  { %3703 = vmatprep.subr.bf16.mxu1 %v3702_v24  ;;  %1924 = vmatprep.mubr.f32.mxu0 %v1273_v63  ;;  %v3722_v24 = vpack.c.bf16 %v1098_v49, %v1094_v48  ;;  %v3738_v39 = vpack.c.bf16 %v1130_v36, %v1126_v62  ;;  %v1132_v47 = vld [vmem:[%s7394_s1 + $0x22c8] sm:$0xff]  ;;  %v1138_v48 = vld [vmem:[%s7394_s1 + $0x22f8] sm:$0xff] }
 0x209   :  { %2563 = vmatprep.mubr.f32.mxu1 %v1273_v63  ;;  %v1102_v63 = vld [vmem:[%s7394_s1 + $0x21d8] sm:$0xff]  ;;  %v1136_v12 = vld [vmem:[%s7394_s1 + $0x22e8] sm:$0xff] }
 0x20a   :  { %3129 = vmatpush1.bf16.msra.mxu0 %v3128_v2  ;;  %v3724_v2 = vpack.c.bf16 %v1097_v59, %v1093_v58  ;;  %v3726_v51 = vpack.c.bf16 %v1106_v0, %v1102_v63  ;;  %v3742_v58 = vpack.c.bf16 %v1138_v48, %v1134_v25  ;;  %v1140_v59 = vld [vmem:[%s7394_s1 + $0x2308] sm:$0xff]  ;;  %v1146_v63 = vld [vmem:[%s7394_s1 + $0x2338] sm:$0xff]  ;;  %v1171_v25 = vld [vmem:[%s7396_s2] sm:$0xf]  ;;  %v1183_v48 = vsub.s32 2, %v4076_v61 }
 0x20b   :  { %3705 = vmatpush1.bf16.msra.mxu1 %v3704_v3  ;;  %3131 = vmatprep.subr.bf16.mxu0 %v3130_v4  ;;  %v3150_v3 = vpack.c.bf16 %v1104_v23, %v1100_v60  ;;  %v1099_v4 = vld [vmem:[%s7394_s1 + $0x21c0] sm:$0xff]  ;;  %v1144_v60 = vld [vmem:[%s7394_s1 + $0x2328] sm:$0xff]  ;;  %v1142_v23 = vld [vmem:[%s7394_s1 + $0x2318] sm:$0xff] }
 0x20c   :  { %3707 = vmatprep.subr.bf16.mxu1 %v3706_v7  ;;  %v1105_v7 = vld [vmem:[%s7394_s1 + $0x21f0] sm:$0xff]  ;;  %v3152_v10 = vpack.c.bf16 %v1103_v5, %v1099_v4  ;;  %v1143_v4 = vld [vmem:[%s7394_s1 + $0x2320] sm:$0xff]  ;;  %v1170_v62 = vld [vmem:[%s7394_s1 + $0x23f8] sm:$0xff] }
 0x20d   :  { %v1141_v5 = vld [vmem:[%s7394_s1 + $0x2310] sm:$0xff] }
 0x20e   :  { %3133 = vmatpush1.bf16.msra.mxu0 %v3132_v14  ;;  %v3728_v14 = vpack.c.bf16 %v1105_v7, %v1101_v6  ;;  %v3746_v6 = vpack.c.bf16 %v1146_v63, %v1142_v23  ;;  %v1148_v7 = vld [vmem:[%s7394_s1 + $0x2348] sm:$0xff] }
 0x20f   :  { %3709 = vmatpush1.bf16.msra.mxu1 %v3708_v15  ;;  %3135 = vmatprep.subr.bf16.mxu0 %v3134_v16  ;;  %v3154_v15 = vpack.c.bf16 %v1112_v8, %v1108_v38  ;;  %v1107_v16 = vld [vmem:[%s7394_s1 + $0x2200] sm:$0xff]  ;;  %v1152_v38 = vld [vmem:[%s7394_s1 + $0x2368] sm:$0xff]  ;;  %v1150_v8 = vld [vmem:[%s7394_s1 + $0x2358] sm:$0xff] }
 0x210   :  { %3711 = vmatprep.subr.bf16.mxu1 %v3710_v20  ;;  %v1113_v20 = vld [vmem:[%s7394_s1 + $0x2230] sm:$0xff]  ;;  %v3156_v27 = vpack.c.bf16 %v1111_v17, %v1107_v16  ;;  %v1151_v16 = vld [vmem:[%s7394_s1 + $0x2360] sm:$0xff] }
 0x211   :  { %v1149_v17 = vld [vmem:[%s7394_s1 + $0x2350] sm:$0xff] }
 0x212   :  { %3137 = vmatpush1.bf16.msra.mxu0 %v3136_v28  ;;  %v3732_v28 = vpack.c.bf16 %v1113_v20, %v1109_v18  ;;  %v3750_v18 = vpack.c.bf16 %v1154_v45, %v1150_v8  ;;  %v1156_v20 = vld [vmem:[%s7394_s1 + $0x2388] sm:$0xff] }
 0x213   :  { %3713 = vmatpush1.bf16.msra.mxu1 %v3712_v29  ;;  %3139 = vmatprep.subr.bf16.mxu0 %v3138_v30  ;;  %v3158_v29 = vpack.c.bf16 %v1120_v21, %v1116_v50  ;;  %v1115_v30 = vld [vmem:[%s7394_s1 + $0x2240] sm:$0xff]  ;;  %v1160_v50 = vld [vmem:[%s7394_s1 + $0x23a8] sm:$0xff]  ;;  %v1158_v21 = vld [vmem:[%s7394_s1 + $0x2398] sm:$0xff] }
 0x214   :  { %3715 = vmatprep.subr.bf16.mxu1 %v3714_v13  ;;  %v1121_v13 = vld [vmem:[%s7394_s1 + $0x2270] sm:$0xff]  ;;  %v3160_v37 = vpack.c.bf16 %v1119_v31, %v1115_v30  ;;  %v1159_v30 = vld [vmem:[%s7394_s1 + $0x23a0] sm:$0xff] }
 0x215   :  { %v1157_v31 = vld [vmem:[%s7394_s1 + $0x2390] sm:$0xff] }
 0x216   :  { %3141 = vmatpush1.bf16.msra.mxu0 %v3140_v40  ;;  %v3736_v40 = vpack.c.bf16 %v1121_v13, %v1117_v32  ;;  %v3754_v32 = vpack.c.bf16 %v1162_v22, %v1158_v21  ;;  %v1164_v13 = vld [vmem:[%s7394_s1 + $0x23c8] sm:$0xff] }
 0x217   :  { %3717 = vmatpush1.bf16.msra.mxu1 %v3716_v41  ;;  %3143 = vmatprep.subr.bf16.mxu0 %v3142_v42  ;;  %v3162_v41 = vpack.c.bf16 %v1128_v35, %v1124_v34  ;;  %v1123_v42 = vld [vmem:[%s7394_s1 + $0x2280] sm:$0xff]  ;;  %v1168_v34 = vld [vmem:[%s7394_s1 + $0x23e8] sm:$0xff]  ;;  %v1166_v35 = vld [vmem:[%s7394_s1 + $0x23d8] sm:$0xff] }
 0x218   :  { %3719 = vmatprep.subr.bf16.mxu1 %v3718_v46  ;;  %v1129_v46 = vld [vmem:[%s7394_s1 + $0x22b0] sm:$0xff]  ;;  %v3164_v49 = vpack.c.bf16 %v1127_v43, %v1123_v42  ;;  %v1167_v42 = vld [vmem:[%s7394_s1 + $0x23e0] sm:$0xff]  ;;  %v3758_v43 = vpack.c.bf16 %v1170_v62, %v1166_v35 }
 0x21a   :  { %3145 = vmatpush1.bf16.msra.mxu0 %v3144_v53  ;;  %v3740_v53 = vpack.c.bf16 %v1129_v46, %v1125_v44  ;;  %v1165_v44 = vld [vmem:[%s7394_s1 + $0x23d0] sm:$0xff] }
 0x21b   :  { %3721 = vmatpush1.bf16.msra.mxu1 %v3720_v54  ;;  %3147 = vmatprep.subr.bf16.mxu0 %v3146_v55  ;;  %v3166_v54 = vpack.c.bf16 %v1136_v12, %v1132_v47  ;;  %v1131_v55 = vld [vmem:[%s7394_s1 + $0x22c0] sm:$0xff]  ;;  %v1175_v12 = vsub.s32 0, %v4076_v61 }
 0x21c   :  { %3723 = vmatprep.subr.bf16.mxu1 %v3722_v24  ;;  %v1137_v24 = vld [vmem:[%s7394_s1 + $0x22f0] sm:$0xff]  ;;  %v3168_v0 = vpack.c.bf16 %v1135_v56, %v1131_v55  ;;  %v1184_v55 = vrot.slane %v1171_v25, %v1183_v48 }
 0x21e   :  { %3149 = vmatpush1.bf16.msra.mxu0 %v3148_v1  ;;  %v3744_v1 = vpack.c.bf16 %v1137_v24, %v1133_v57 }
 0x21f   :  { %3725 = vmatpush1.bf16.msra.mxu1 %v3724_v2  ;;  %3151 = vmatprep.subr.bf16.mxu0 %v3150_v3  ;;  %v3170_v2 = vpack.c.bf16 %v1144_v60, %v1140_v59  ;;  %v1139_v3 = vld [vmem:[%s7394_s1 + $0x2300] sm:$0xff] }
 0x220   :  { %3727 = vmatprep.subr.bf16.mxu1 %v3726_v51  ;;  %v1145_v51 = vld [vmem:[%s7394_s1 + $0x2330] sm:$0xff]  ;;  %v3172_v9 = vpack.c.bf16 %v1143_v4, %v1139_v3 }
 0x222   :  { %3153 = vmatpush1.bf16.msra.mxu0 %v3152_v10  ;;  %v3748_v10 = vpack.c.bf16 %v1145_v51, %v1141_v5 }
 0x223   :  { %3729 = vmatpush1.bf16.msra.mxu1 %v3728_v14  ;;  %3155 = vmatprep.subr.bf16.mxu0 %v3154_v15  ;;  %v3174_v14 = vpack.c.bf16 %v1152_v38, %v1148_v7  ;;  %v1147_v15 = vld [vmem:[%s7394_s1 + $0x2340] sm:$0xff] }
 0x224   :  { %3731 = vmatprep.subr.bf16.mxu1 %v3730_v19  ;;  %v1153_v19 = vld [vmem:[%s7394_s1 + $0x2370] sm:$0xff]  ;;  %v3176_v26 = vpack.c.bf16 %v1151_v16, %v1147_v15 }
 0x226   :  { %3157 = vmatpush1.bf16.msra.mxu0 %v3156_v27  ;;  %v3752_v27 = vpack.c.bf16 %v1153_v19, %v1149_v17 }
 0x227   :  { %3733 = vmatpush1.bf16.msra.mxu1 %v3732_v28  ;;  %3159 = vmatprep.subr.bf16.mxu0 %v3158_v29  ;;  %v3178_v28 = vpack.c.bf16 %v1160_v50, %v1156_v20  ;;  %v1155_v29 = vld [vmem:[%s7394_s1 + $0x2380] sm:$0xff] }
 0x228   :  { %3735 = vmatprep.subr.bf16.mxu1 %v3734_v33  ;;  %v1161_v33 = vld [vmem:[%s7394_s1 + $0x23b0] sm:$0xff]  ;;  %v3180_v36 = vpack.c.bf16 %v1159_v30, %v1155_v29 }
 0x22a   :  { %3161 = vmatpush1.bf16.msra.mxu0 %v3160_v37  ;;  %v3756_v37 = vpack.c.bf16 %v1161_v33, %v1157_v31 }
 0x22b   :  { %3737 = vmatpush1.bf16.msra.mxu1 %v3736_v40  ;;  %3163 = vmatprep.subr.bf16.mxu0 %v3162_v41  ;;  %v3182_v40 = vpack.c.bf16 %v1168_v34, %v1164_v13  ;;  %v1163_v41 = vld [vmem:[%s7394_s1 + $0x23c0] sm:$0xff] }
 0x22c   :  { %3739 = vmatprep.subr.bf16.mxu1 %v3738_v39  ;;  %v1169_v39 = vld [vmem:[%s7394_s1 + $0x23f0] sm:$0xff]  ;;  %v3184_v46 = vpack.c.bf16 %v1167_v42, %v1163_v41 }
 0x22d   :  { %v3760_v47 = vpack.c.bf16 %v1169_v39, %v1165_v44 }
 0x22e   :  { %3165 = vmatpush1.bf16.msra.mxu0 %v3164_v49  ;;  %v1179_v49 = vsub.s32 1, %v4076_v61 }
 0x22f   :  { %3741 = vmatpush1.bf16.msra.mxu1 %v3740_v53  ;;  %3167 = vmatprep.subr.bf16.mxu0 %v3166_v54  ;;  %v1187_v53 = vsub.s32 3, %v4076_v61  ;;  %v1176_v54 = vrot.slane %v1171_v25, %v1175_v12 }
 0x230   :  { %3743 = vmatprep.subr.bf16.mxu1 %v3742_v58  ;;  %v1180_v56 = vrot.slane %v1171_v25, %v1179_v49 }
 0x231   :  { %v1188_v57 = vrot.slane %v1171_v25, %v1187_v53 }
 0x232   :  { %3169 = vmatpush1.bf16.msra.mxu0 %v3168_v0 }
 0x233   :  { %3745 = vmatpush1.bf16.msra.mxu1 %v3744_v1  ;;  %3171 = vmatprep.subr.bf16.mxu0 %v3170_v2 }
 0x234   :  { %3747 = vmatprep.subr.bf16.mxu1 %v3746_v6 }
 0x236   :  { %3173 = vmatpush1.bf16.msra.mxu0 %v3172_v9 }
 0x237   :  { %3749 = vmatpush1.bf16.msra.mxu1 %v3748_v10  ;;  %3175 = vmatprep.subr.bf16.mxu0 %v3174_v14 }
 0x238   :  { %3751 = vmatprep.subr.bf16.mxu1 %v3750_v18 }
 0x23a   :  { %3177 = vmatpush1.bf16.msra.mxu0 %v3176_v26 }
 0x23b   :  { %3753 = vmatpush1.bf16.msra.mxu1 %v3752_v27  ;;  %3179 = vmatprep.subr.bf16.mxu0 %v3178_v28 }
 0x23c   :  { %3755 = vmatprep.subr.bf16.mxu1 %v3754_v32 }
 0x23e   :  { %3181 = vmatpush1.bf16.msra.mxu0 %v3180_v36 }
 0x23f   :  { %3757 = vmatpush1.bf16.msra.mxu1 %v3756_v37  ;;  %3183 = vmatprep.subr.bf16.mxu0 %v3182_v40 }
 0x240   :  { %3759 = vmatprep.subr.bf16.mxu1 %v3758_v43 }
 0x242   :  { %3185 = vmatpush1.bf16.msra.mxu0 %v3184_v46 }
 0x243   :  { %3761 = vmatpush1.bf16.msra.mxu1 %v3760_v47 }
 0x245   :  { %1925 = vmatmul.mubr.f32.vlgmr.msra.gmra.mrb[0].mxu0 %v7026_v52 }
 0x246   :  { %2564 = vmatmul.mubr.f32.vlgmr.msra.gmra.mrb[0].mxu1 %v7026_v52 }
 0x318   :  { %v1926_v58 = vpop.f32.mrb[0].mxu0 }
 0x319   :  { %v3762_v24 = vadd.f32 %v1926_v58, %v1176_v54  ;;  %v2565_v59 = vpop.f32.mrb[0].mxu1  ;;  %v1928_v52 = vpop.f32.mrb[1].mxu0 }
 0x31a   :  { %v3764_v60 = vadd.f32 %v2565_v59, %v1184_v55  ;;  %v3763_v23 = vadd.f32 %v1928_v52, %v1180_v56  ;;  %v2567_v63 = vpop.f32.mrb[1].mxu1 }
 0x31b   :  { %vm2570_vm0 = vcmp.gt.f32.partialorder %v3762_v24, 0.0  ;;  %v2574_v0 = vmul.f32 0.1, %v3762_v24  ;;  %v3765_v1 = vadd.f32 %v2567_v63, %v1188_v57 }
 0x31c   :  { %vm2572_vm1 = vcmp.gt.f32.partialorder %v3764_v60, 0.0  ;;  %v2576_v2 = vmul.f32 0.1, %v3764_v60  ;;  %vm2571_vm2 = vcmp.gt.f32.partialorder %v3763_v23, 0.0  ;;  %v2575_v3 = vmul.f32 0.1, %v3763_v23 }
 0x31d   :  { %v2578_v4 = vsel %vm2570_vm0, %v3762_v24, %v2574_v0  ;;  %vm2573_vm3 = vcmp.gt.f32.partialorder %v3765_v1, 0.0  ;;  %v2577_v61 = vmul.f32 0.1, %v3765_v1 }
 0x31e   :  { %v2580_v5 = vsel %vm2572_vm1, %v3764_v60, %v2576_v2  ;;  %v2579_v6 = vsel %vm2571_vm2, %v3763_v23, %v2575_v3 }
 0x31f   :  { %v2586_v51 = vcombine.low %v2578_v4, %v2579_v6  ;;  %v2581_v7 = vsel %vm2573_vm3, %v3765_v1, %v2577_v61 }
 0x320   :  { %v2587_v38 = vcombine.low %v2580_v5, %v2581_v7 }
 0x321   :  { %v2594_v8 = vrot.slane %v2586_v51, %v4103_v11 }
 0x322   :  { %v2601_v45 = vrot.slane %v2587_v38, %v4103_v11 }
 0x324   :  { %v2602_v9 = vcombine.low %v2594_v8, %v2601_v45 }
 0x326   :  { %2604 = vst [vmem:[%s7397_s3] sm:$0xff] %v2602_v9 }

</bundles_post_ra>
